<compile_context>
chip_gen: v6e
topology: v6e:2x2x1
jax: 0.10.0
libtpu: 0.0.40
codegen_flags: <defaults>
</compile_context>

<pallas_src>
import functools

import jax
import jax.numpy as jnp
from jax.experimental import pallas as pl
from jax.experimental.pallas import tpu as pltpu

EPS = 1e-5                    # PyTorch BatchNorm2d default eps
LANE = 128                    # channel padding granularity (lane-dense MXU tiles)
VMEM_LIMIT = 32 * 1024 * 1024  # explicit scoped-VMEM limit (>= v5e 16MiB default)

# Sub-pixel taps for ConvTranspose2d(k=4, s=2, p=1):
#   output index 2j+parity reads input index j+dy with kernel tap kh.
_S2_TAPS = {0: ((-1, 3), (0, 1)),    # even output rows/cols
            1: ((0, 2), (1, 0))}     # odd output rows/cols
_PHASES = ((0, 0), (0, 1), (1, 0), (1, 1))


def _round_up(x, m):
    return ((x + m - 1) // m) * m


# --------------------------------- kernels ----------------------------------

def _initial_kernel(x_ref, w_ref, y_ref, ps_ref, pq_ref):
    """(tile, Cin_p) @ (Cin_p, 16*Cout) with per-step partial column stats."""
    y = jnp.dot(x_ref[...], w_ref[...], preferred_element_type=jnp.float32)
    y_ref[...] = y.astype(jnp.bfloat16)
    cs = jnp.sum(y, axis=0, keepdims=True)
    cq = jnp.sum(y * y, axis=0, keepdims=True)
    ps_ref[...] = jnp.broadcast_to(cs, ps_ref.shape)
    pq_ref[...] = jnp.broadcast_to(cq, pq_ref.shape)


def _load_act(x_ref, sc_ref, sh_ref, H, W):
    """Folded producer BN+ReLU, keeping the zero spatial padding ring zero."""
    Wp = W + 2
    x = x_ref[...].astype(jnp.float32)
    act = jnp.maximum(x * sc_ref[...] + sh_ref[...], 0.0)
    buf = x.shape[0]
    r = jax.lax.broadcasted_iota(jnp.int32, (buf, 1), 0)
    rm = r % Wp
    valid = (r >= Wp) & (r < (H + 1) * Wp) & (rm >= 1) & (rm <= W)
    return jnp.where(valid, act, 0.0).astype(jnp.bfloat16)


def _phase_acc(act, w_ref, py, px, t0, out_rows, Wp):
    """Accumulate the 4 sub-pixel taps of output phase (py, px)."""
    acc = jnp.zeros((out_rows, w_ref.shape[-1]), jnp.float32)
    t = t0
    for dy, _kh in _S2_TAPS[py]:
        for dx, _kw in _S2_TAPS[px]:
            s = (1 + dy) * Wp + (1 + dx)
            acc = acc + jnp.dot(act[s:s + out_rows, :], w_ref[t],
                                preferred_element_type=jnp.float32)
            t += 1
    return acc


def _pyramid_kernel(x_ref, sc_ref, sh_ref, w_ref, y_ref, ps_ref, pq_ref, *, H, W):
    """ConvT(4,2,1) for one image: fused BN+ReLU prologue, 16 sub-dots."""
    Wp = W + 2
    out_rows = H * Wp
    cout_p = w_ref.shape[-1]
    act = _load_act(x_ref, sc_ref, sh_ref, H, W)
    ro = jax.lax.broadcasted_iota(jnp.int32, (out_rows, 1), 0)
    valid_out = (ro % Wp) < W
    for p_idx, (py, px) in enumerate(_PHASES):
        acc = _phase_acc(act, w_ref, py, px, 4 * p_idx, out_rows, Wp)
        acc = jnp.where(valid_out, acc, 0.0)          # junk spacer rows -> 0
        c0 = p_idx * cout_p
        y_ref[:, c0:c0 + cout_p] = acc.astype(jnp.bfloat16)
        cs = jnp.sum(acc, axis=0, keepdims=True)
        cq = jnp.sum(acc * acc, axis=0, keepdims=True)
        ps_ref[:, c0:c0 + cout_p] = jnp.broadcast_to(cs, (8, cout_p))
        pq_ref[:, c0:c0 + cout_p] = jnp.broadcast_to(cq, (8, cout_p))


def _final_kernel(x_ref, sc_ref, sh_ref, w_ref, o_ref, *, H, W, nc):
    """Final ConvT(4,2,1) + sigmoid; writes only nc real output channels."""
    Wp = W + 2
    out_rows = H * Wp
    act = _load_act(x_ref, sc_ref, sh_ref, H, W)
    for p_idx, (py, px) in enumerate(_PHASES):
        acc = _phase_acc(act, w_ref, py, px, 4 * p_idx, out_rows, Wp)
        z = acc[:, :nc]
        o_ref[p_idx] = 1.0 / (1.0 + jnp.exp(-z))


# ------------------------------ pallas wrappers ------------------------------

def _initial_call(xp, w0p, tile):
    n_pad, cin_p = xp.shape
    ncolp = w0p.shape[1]
    steps = n_pad // tile
    return pl.pallas_call(
        _initial_kernel,
        out_shape=(jax.ShapeDtypeStruct((n_pad, ncolp), jnp.bfloat16),
                   jax.ShapeDtypeStruct((steps, 8, ncolp), jnp.float32),
                   jax.ShapeDtypeStruct((steps, 8, ncolp), jnp.float32)),
        grid=(steps,),
        in_specs=[pl.BlockSpec((tile, cin_p), lambda i: (i, 0)),
                  pl.BlockSpec((cin_p, ncolp), lambda i: (0, 0))],
        out_specs=(pl.BlockSpec((tile, ncolp), lambda i: (i, 0)),
                   pl.BlockSpec((None, 8, ncolp), lambda i: (i, 0, 0)),
                   pl.BlockSpec((None, 8, ncolp), lambda i: (i, 0, 0))),
        compiler_params=pltpu.CompilerParams(
            dimension_semantics=("parallel",),
            vmem_limit_bytes=VMEM_LIMIT),
    )(xp, w0p)


def _conv_block_call(x_flat, scale, shift, w16, *, H, W, last, nc=0):
    N, BUF, cin_p = x_flat.shape
    out_rows = H * (W + 2)
    cout_p = w16.shape[-1]
    if last:
        kern = functools.partial(_final_kernel, H=H, W=W, nc=nc)
        out_shape = jax.ShapeDtypeStruct((N, 4, out_rows, nc), jnp.float32)
        out_specs = pl.BlockSpec((None, 4, out_rows, nc), lambda n: (n, 0, 0, 0))
    else:
        kern = functools.partial(_pyramid_kernel, H=H, W=W)
        wide = 4 * cout_p
        out_shape = (jax.ShapeDtypeStruct((N, out_rows, wide), jnp.bfloat16),
                     jax.ShapeDtypeStruct((N, 8, wide), jnp.float32),
                     jax.ShapeDtypeStruct((N, 8, wide), jnp.float32))
        out_specs = (pl.BlockSpec((None, out_rows, wide), lambda n: (n, 0, 0)),
                     pl.BlockSpec((None, 8, wide), lambda n: (n, 0, 0)),
                     pl.BlockSpec((None, 8, wide), lambda n: (n, 0, 0)))
    return pl.pallas_call(
        kern,
        out_shape=out_shape,
        grid=(N,),
        in_specs=[pl.BlockSpec((None, BUF, cin_p), lambda n: (n, 0, 0)),
                  pl.BlockSpec((1, cin_p), lambda n: (0, 0)),
                  pl.BlockSpec((1, cin_p), lambda n: (0, 0)),
                  pl.BlockSpec((16, cin_p, cout_p), lambda n: (0, 0, 0))],
        out_specs=out_specs,
        compiler_params=pltpu.CompilerParams(
            dimension_semantics=("parallel",),
            vmem_limit_bytes=VMEM_LIMIT),
    )(x_flat, scale, shift, w16)


# ------------------------------ layout / BN glue -----------------------------

def _pack_w16(w, cin_p, cout_p):
    """(Cin,Cout,4,4) ConvT weight -> 16 (phase,tap) matrices (16,Cin_p,Cout_p)."""
    cin, cout = w.shape[0], w.shape[1]
    mats = []
    for py, px in _PHASES:
        for _dy, kh in _S2_TAPS[py]:
            for _dx, kw in _S2_TAPS[px]:
                mats.append(w[:, :, kh, kw])
    ws = jnp.stack(mats, axis=0).astype(jnp.bfloat16)
    out = jnp.zeros((16, cin_p, cout_p), jnp.bfloat16)
    return out.at[:, :cin, :cout].set(ws)


def _to_padded_flat(y_nhwc, cp):
    """NHWC raw y -> per-image flattened spatially zero-padded slab (bf16)."""
    n, h, w, c = y_nhwc.shape
    rows = (h + 2) * (w + 2)
    buf = _round_up(rows + 2, 8)
    yp = jnp.pad(y_nhwc.astype(jnp.bfloat16),
                 ((0, 0), (1, 1), (1, 1), (0, cp - c)))
    yp = yp.reshape(n, rows, cp)
    return jnp.pad(yp, ((0, 0), (0, buf - rows), (0, 0)))


def _wide_to_nhwc(y_wide, h, w, cout, cout_p):
    """(N, H*(W+2), 4*Cout_p) phase-major tiles -> NHWC (N, 2H, 2W, Cout)."""
    n = y_wide.shape[0]
    t = y_wide.reshape(n, h, w + 2, 4, cout_p)[:, :, :w, :, :cout]
    t = t.reshape(n, h, w, 2, 2, cout)
    t = jnp.transpose(t, (0, 1, 3, 2, 4, 5))
    return t.reshape(n, 2 * h, 2 * w, cout)


def _final_to_nchw(o, h, w, nc):
    """(N, 4, H*(W+2), nc) sigmoid output -> NCHW (N, nc, 2H, 2W)."""
    n = o.shape[0]
    t = o.reshape(n, 2, 2, h, w + 2, nc)[:, :, :, :, :w, :]
    t = jnp.transpose(t, (0, 3, 1, 4, 2, 5)).reshape(n, 2 * h, 2 * w, nc)
    return jnp.transpose(t, (0, 3, 1, 2))


def _finish_stats(ps, pq, count, n_groups, group_w, cout):
    s = ps[:, 0, :].sum(0)[:n_groups * group_w].reshape(n_groups, group_w)[:, :cout].sum(0)
    q = pq[:, 0, :].sum(0)[:n_groups * group_w].reshape(n_groups, group_w)[:, :cout].sum(0)
    mean = s / count
    var = q / count - mean * mean          # biased var (PyTorch training mode)
    return mean, var


def _fold_bn(mean, var, gamma, beta, cp):
    scale = gamma.astype(jnp.float32) * jax.lax.rsqrt(var + EPS)
    shift = beta.astype(jnp.float32) - mean * scale
    sc = jnp.zeros((1, cp), jnp.float32).at[0, :scale.shape[0]].set(scale)
    sh = jnp.zeros((1, cp), jnp.float32).at[0, :shift.shape[0]].set(shift)
    return sc, sh


# --------------------------------- model -------------------------------------

def init_params(key, isize, nz, nc, ngf, nfeatures, n_extra_layers=0):
    assert isize % 16 == 0, 'isize has to be a multiple of 16'
    cngf, tisize = ngf // 2, 4
    while tisize != isize:
        cngf, tisize = cngf * 2, tisize * 2

    blocks = []  # (weight, gamma, beta) for ConvT+BN+ReLU blocks
    key, k1, k2, k3 = jax.random.split(key, 4)
    blocks.append((0.05 * jax.random.normal(k1, (nz + nfeatures, cngf, 4, 4), jnp.float32),
                   1.0 + 0.1 * jax.random.normal(k2, (cngf,), jnp.float32),
                   0.1 * jax.random.normal(k3, (cngf,), jnp.float32)))

    csize = 4
    while csize < isize // 2:
        key, k1, k2, k3 = jax.random.split(key, 4)
        blocks.append((0.05 * jax.random.normal(k1, (cngf, cngf // 2, 4, 4), jnp.float32),
                       1.0 + 0.1 * jax.random.normal(k2, (cngf // 2,), jnp.float32),
                       0.1 * jax.random.normal(k3, (cngf // 2,), jnp.float32)))
        cngf, csize = cngf // 2, csize * 2

    # TODO(synk): n_extra_layers > 0 (3x3 Conv2d+BN+ReLU blocks) not implemented.
    assert n_extra_layers == 0

    key, kf = jax.random.split(key)
    final_w = 0.05 * jax.random.normal(kf, (cngf, nc, 4, 4), jnp.float32)
    return {'blocks': blocks, 'final_w': final_w}


def dcgan_g_forward(params, x, attr, nfeatures):
    # matches: attr = attr.view(-1, nfeatures, 1, 1); input = cat([input, attr], 1)
    N = x.shape[0]
    h0 = jnp.concatenate([x.reshape(N, -1), attr.reshape(N, nfeatures)], axis=1)

    # ---- initial ConvT(4,1,0) on a 1x1 input: one wide matmul ----
    w0, g0, b0 = params['blocks'][0]
    cin0, cout0 = w0.shape[0], w0.shape[1]
    cin0_p = _round_up(cin0, LANE)
    ncol = 16 * cout0
    ncolp = _round_up(ncol, LANE)
    w0p = jnp.zeros((cin0_p, ncolp), jnp.bfloat16)
    w0p = w0p.at[:cin0, :ncol].set(
        jnp.transpose(w0, (0, 2, 3, 1)).reshape(cin0, ncol).astype(jnp.bfloat16))

    tile = min(512, _round_up(N, 8))
    n_pad = _round_up(N, tile)
    xp = jnp.zeros((n_pad, cin0_p), jnp.bfloat16).at[:N, :cin0].set(h0.astype(jnp.bfloat16))
    y0, ps, pq = _initial_call(xp, w0p, tile)
    mean, var = _finish_stats(ps, pq, float(N * 16), 16, cout0, cout0)
    cp = _round_up(cout0, LANE)
    scale, shift = _fold_bn(mean, var, g0, b0, cp)

    y_nhwc = y0[:N, :ncol].reshape(N, 4, 4, cout0)   # raw (pre-BN) NHWC
    H = W = 4
    x_flat = _to_padded_flat(y_nhwc, cp)

    # ---- pyramid ConvT(4,2,1) + BN + ReLU blocks (BN/ReLU folded forward) ----
    for (w, g, b) in params['blocks'][1:]:
        cin, cout = w.shape[0], w.shape[1]
        cin_p = _round_up(cin, LANE)
        cout_p = _round_up(cout, LANE)
        w16 = _pack_w16(w, cin_p, cout_p)
        y, ps, pq = _conv_block_call(x_flat, scale, shift, w16, H=H, W=W, last=False)
        mean, var = _finish_stats(ps, pq, float(N * 4 * H * W), 4, cout_p, cout)
        scale, shift = _fold_bn(mean, var, g, b, cout_p)
        y_nhwc = _wide_to_nhwc(y, H, W, cout, cout_p)
        H, W = 2 * H, 2 * W
        x_flat = _to_padded_flat(y_nhwc, cout_p)

    # ---- final ConvT(4,2,1) + sigmoid ----
    wf = params['final_w']
    ncout = wf.shape[1]
    cin_p = _round_up(wf.shape[0], LANE)
    wf16 = _pack_w16(wf, cin_p, LANE)
    o = _conv_block_call(x_flat, scale, shift, wf16, H=H, W=W, last=True, nc=ncout)
    return _final_to_nchw(o, H, W, ncout)            # NCHW f32 at module boundary


# ------------------------- pure-JAX reference (f32) ---------------------------

def _convt_ref(x, w, stride, pad):
    k = w.shape[2]
    wf = jnp.transpose(jnp.flip(w, (2, 3)), (1, 0, 2, 3))   # OIHW, flipped
    return jax.lax.conv_general_dilated(
        x, wf, window_strides=(1, 1),
        padding=[(k - 1 - pad, k - 1 - pad)] * 2,
        lhs_dilation=(stride, stride),
        dimension_numbers=('NCHW', 'OIHW', 'NCHW'))


def _bn_relu_ref(y, gamma, beta):
    mean = y.mean(axis=(0, 2, 3), keepdims=True)
    var = ((y - mean) ** 2).mean(axis=(0, 2, 3), keepdims=True)
    yhat = (y - mean) * jax.lax.rsqrt(var + EPS)
    return jnp.maximum(yhat * gamma.reshape(1, -1, 1, 1) + beta.reshape(1, -1, 1, 1), 0.0)


def dcgan_ref(params, x, attr, nfeatures):
    N = x.shape[0]
    h = jnp.concatenate([x, attr.reshape(N, nfeatures, 1, 1)], axis=1)
    w0, g0, b0 = params['blocks'][0]
    h = _bn_relu_ref(_convt_ref(h, w0, 1, 0), g0, b0)
    for (w, g, b) in params['blocks'][1:]:
        h = _bn_relu_ref(_convt_ref(h, w, 2, 1), g, b)
    z = _convt_ref(h, params['final_w'], 2, 1)
    return 1.0 / (1.0 + jnp.exp(-z))


# ---------------------------------- main --------------------------------------

if __name__ == "__main__":
    isize, nz, nc, ngf, ngpu, nfeatures = 16, 8, 3, 8, 1, 4
    N = 2

    key = jax.random.PRNGKey(0)
    kp, kx, ka = jax.random.split(key, 3)
    params = init_params(kp, isize, nz, nc, ngf, nfeatures, n_extra_layers=0)

    x = jax.random.normal(kx, (N, nz, 1, 1), jnp.float32)       # latent z, NCHW
    attr = jax.random.normal(ka, (N, nfeatures), jnp.float32)   # conditioning attrs

    fwd = jax.jit(functools.partial(dcgan_g_forward, nfeatures=nfeatures))
    out = jax.block_until_ready(fwd(params, x, attr))

    assert out.shape == (N, nc, isize, isize), out.shape
    assert out.dtype == jnp.float32
    assert bool(jnp.all(jnp.isfinite(out)))
    assert bool(jnp.all((out >= 0.0) & (out <= 1.0)))           # sigmoid range

    ref = jax.jit(functools.partial(dcgan_ref, nfeatures=nfeatures))(params, x, attr)
    err = float(jnp.max(jnp.abs(out - ref)))
    assert err < 3e-2, f"max abs error vs reference: {err}"

    print("KERNEL_OK")
</pallas_src>

<mosaic_0001>
module attributes {stable_mosaic.version = 11 : i64} {
  func.func @_initial_kernel(%arg0: i32, %arg1: memref<8x128xbf16, #tpu.memory_space<vmem>>, %arg2: memref<128x256xbf16, #tpu.memory_space<vmem>>, %arg3: memref<8x256xbf16, #tpu.memory_space<vmem>>, %arg4: memref<1x8x256xf32, #tpu.memory_space<vmem>>, %arg5: memref<1x8x256xf32, #tpu.memory_space<vmem>>) attributes {dimension_semantics = [#tpu.dimension_semantics<parallel>], iteration_bounds = array<i64: 1>, scalar_prefetch = 0 : i64, scratch_operands = 0 : i64, tpu.core_type = #tpu.core_type<tc>, window_params = [{transform_indices = @transform_0, window_bounds = array<i64: 8, 128>}, {pipeline_mode = #tpu.pipeline_mode<synchronous>, transform_indices = @transform_1, window_bounds = array<i64: 128, 256>}, {transform_indices = @transform_2, window_bounds = array<i64: 8, 256>}, {transform_indices = @transform_3, window_bounds = array<i64: 1, 8, 256>}, {transform_indices = @transform_4, window_bounds = array<i64: 1, 8, 256>}]} {
    %c0 = arith.constant 0 : index
    %c0_0 = arith.constant 0 : index
    %0 = vector.load %arg1[%c0, %c0_0] : memref<8x128xbf16, #tpu.memory_space<vmem>>, vector<8x128xbf16>
    %c0_1 = arith.constant 0 : index
    %c0_2 = arith.constant 0 : index
    %1 = vector.load %arg2[%c0_1, %c0_2] : memref<128x256xbf16, #tpu.memory_space<vmem>>, vector<128x256xbf16>
    %cst = arith.constant dense<0.000000e+00> : vector<8x256xf32>
    %2 = tpu.matmul %0, %1, %cst {dimension_numbers = #tpu.dot_dimension_numbers<[1], [0], [0], [1], [0, 0, 1, 1], [], []>} : vector<8x128xbf16>, vector<128x256xbf16>, vector<8x256xf32> -> vector<8x256xf32>
    %3 = arith.truncf %2 : vector<8x256xf32> to vector<8x256xbf16>
    %c0_3 = arith.constant 0 : index
    %c0_4 = arith.constant 0 : index
    %4 = vector.load %arg3[%c0_3, %c0_4] : memref<8x256xbf16, #tpu.memory_space<vmem>>, vector<8x256xbf16>
    tpu.vector_store %arg3[%c0_3, %c0_4], %3 {strides = array<i32>} : memref<8x256xbf16, #tpu.memory_space<vmem>>, vector<8x256xbf16>,
    %cst_5 = arith.constant dense<0.000000e+00> : vector<256xf32>
    %5 = vector.multi_reduction <add>, %2, %cst_5 [0] : vector<8x256xf32> to vector<256xf32>
    %6 = vector.shape_cast %5 : vector<256xf32> to vector<1x256xf32>
    %7 = arith.mulf %2, %2 : vector<8x256xf32>
    %cst_6 = arith.constant dense<0.000000e+00> : vector<256xf32>
    %8 = vector.multi_reduction <add>, %7, %cst_6 [0] : vector<8x256xf32> to vector<256xf32>
    %9 = vector.shape_cast %8 : vector<256xf32> to vector<1x256xf32>
    %10 = vector.shape_cast %6 : vector<1x256xf32> to vector<1x256xf32>
    %11 = vector.broadcast %10 : vector<1x256xf32> to vector<8x256xf32>
    %c0_7 = arith.constant 0 : index
    %c0_8 = arith.constant 0 : index
    %c0_9 = arith.constant 0 : index
    %12 = vector.load %arg4[%c0_7, %c0_8, %c0_9] : memref<1x8x256xf32, #tpu.memory_space<vmem>>, vector<1x8x256xf32>
    %13 = vector.shape_cast %12 : vector<1x8x256xf32> to vector<8x256xf32>
    %14 = vector.shape_cast %11 : vector<8x256xf32> to vector<1x8x256xf32>
    tpu.vector_store %arg4[%c0_7, %c0_8, %c0_9], %14 {strides = array<i32>} : memref<1x8x256xf32, #tpu.memory_space<vmem>>, vector<1x8x256xf32>,
    %15 = vector.shape_cast %9 : vector<1x256xf32> to vector<1x256xf32>
    %16 = vector.broadcast %15 : vector<1x256xf32> to vector<8x256xf32>
    %c0_10 = arith.constant 0 : index
    %c0_11 = arith.constant 0 : index
    %c0_12 = arith.constant 0 : index
    %17 = vector.load %arg5[%c0_10, %c0_11, %c0_12] : memref<1x8x256xf32, #tpu.memory_space<vmem>>, vector<1x8x256xf32>
    %18 = vector.shape_cast %17 : vector<1x8x256xf32> to vector<8x256xf32>
    %19 = vector.shape_cast %16 : vector<8x256xf32> to vector<1x8x256xf32>
    tpu.vector_store %arg5[%c0_10, %c0_11, %c0_12], %19 {strides = array<i32>} : memref<1x8x256xf32, #tpu.memory_space<vmem>>, vector<1x8x256xf32>,
    return
  }
  func.func @transform_0(%arg0: i32) -> (i32, i32) {
    %c0_i32 = arith.constant 0 : i32
    %c0_i32_0 = arith.constant 0 : i32
    return %arg0, %c0_i32 : i32, i32
  }
  func.func @transform_1(%arg0: i32) -> (i32, i32) {
    %c0_i32 = arith.constant 0 : i32
    %c0_i32_0 = arith.constant 0 : i32
    %c0_i32_1 = arith.constant 0 : i32
    return %c0_i32, %c0_i32_0 : i32, i32
  }
  func.func @transform_2(%arg0: i32) -> (i32, i32) {
    %c0_i32 = arith.constant 0 : i32
    %c0_i32_0 = arith.constant 0 : i32
    return %arg0, %c0_i32 : i32, i32
  }
  func.func @transform_3(%arg0: i32) -> (i32, i32, i32) {
    %c0_i32 = arith.constant 0 : i32
    %c0_i32_0 = arith.constant 0 : i32
    %c0_i32_1 = arith.constant 0 : i32
    return %arg0, %c0_i32, %c0_i32_0 : i32, i32, i32
  }
  func.func @transform_4(%arg0: i32) -> (i32, i32, i32) {
    %c0_i32 = arith.constant 0 : i32
    %c0_i32_0 = arith.constant 0 : i32
    %c0_i32_1 = arith.constant 0 : i32
    return %arg0, %c0_i32, %c0_i32_0 : i32, i32, i32
  }
}

module attributes {stable_mosaic.version = 11 : i64} {
  func.func @_pyramid_kernel(%arg0: i32, %arg1: memref<1x40x128xbf16, #tpu.memory_space<vmem>>, %arg2: memref<1x128xf32, #tpu.memory_space<vmem>>, %arg3: memref<1x128xf32, #tpu.memory_space<vmem>>, %arg4: memref<16x128x128xbf16, #tpu.memory_space<vmem>>, %arg5: memref<1x24x512xbf16, #tpu.memory_space<vmem>>, %arg6: memref<1x8x512xf32, #tpu.memory_space<vmem>>, %arg7: memref<1x8x512xf32, #tpu.memory_space<vmem>>) attributes {dimension_semantics = [#tpu.dimension_semantics<parallel>], iteration_bounds = array<i64: 2>, scalar_prefetch = 0 : i64, scratch_operands = 0 : i64, tpu.core_type = #tpu.core_type<tc>, window_params = [{transform_indices = @transform_0, window_bounds = array<i64: 1, 40, 128>}, {pipeline_mode = #tpu.pipeline_mode<synchronous>, transform_indices = @transform_1, window_bounds = array<i64: 1, 128>}, {pipeline_mode = #tpu.pipeline_mode<synchronous>, transform_indices = @transform_2, window_bounds = array<i64: 1, 128>}, {pipeline_mode = #tpu.pipeline_mode<synchronous>, transform_indices = @transform_3, window_bounds = array<i64: 16, 128, 128>}, {transform_indices = @transform_4, window_bounds = array<i64: 1, 24, 512>}, {transform_indices = @transform_5, window_bounds = array<i64: 1, 8, 512>}, {transform_indices = @transform_6, window_bounds = array<i64: 1, 8, 512>}]} {
    %c0 = arith.constant 0 : index
    %c0_0 = arith.constant 0 : index
    %c0_1 = arith.constant 0 : index
    %0 = vector.load %arg1[%c0, %c0_0, %c0_1] : memref<1x40x128xbf16, #tpu.memory_space<vmem>>, vector<1x40x128xbf16>
    %1 = vector.shape_cast %0 : vector<1x40x128xbf16> to vector<40x128xbf16>
    %2 = arith.extf %1 : vector<40x128xbf16> to vector<40x128xf32>
    %c0_2 = arith.constant 0 : index
    %c0_3 = arith.constant 0 : index
    %3 = vector.load %arg2[%c0_2, %c0_3] : memref<1x128xf32, #tpu.memory_space<vmem>>, vector<1x128xf32>
    %4 = vector.broadcast %3 : vector<1x128xf32> to vector<40x128xf32>
    %5 = arith.mulf %2, %4 : vector<40x128xf32>
    %c0_4 = arith.constant 0 : index
    %c0_5 = arith.constant 0 : index
    %6 = vector.load %arg3[%c0_4, %c0_5] : memref<1x128xf32, #tpu.memory_space<vmem>>, vector<1x128xf32>
    %7 = vector.broadcast %6 : vector<1x128xf32> to vector<40x128xf32>
    %8 = arith.addf %5, %7 : vector<40x128xf32>
    %cst = arith.constant 0.000000e+00 : f32
    %9 = vector.broadcast %cst : f32 to vector<40x128xf32>
    %10 = arith.maximumf %8, %9 : vector<40x128xf32>
    %11 = tpu.iota {dimensions = array<i32: 0>} : vector<40x1xi32>
    %c6_i32 = arith.constant 6 : i32
    %c0_i32 = arith.constant 0 : i32
    %12 = arith.cmpi eq, %c6_i32, %c0_i32 : i32
    %c1_i32 = arith.constant 1 : i32
    %13 = arith.select %12, %c1_i32, %c6_i32 : i32
    %14 = vector.broadcast %13 : i32 to vector<40x1xi32>
    %15 = arith.remsi %11, %14 : vector<40x1xi32>
    %c0_i32_6 = arith.constant 0 : i32
    %16 = vector.broadcast %c0_i32_6 : i32 to vector<40x1xi32>
    %17 = arith.cmpi ne, %15, %16 : vector<40x1xi32>
    %c0_i32_7 = arith.constant 0 : i32
    %18 = vector.broadcast %c0_i32_7 : i32 to vector<40x1xi32>
    %19 = arith.cmpi slt, %15, %18 : vector<40x1xi32>
    %c0_i32_8 = arith.constant 0 : i32
    %20 = arith.cmpi slt, %13, %c0_i32_8 : i32
    %21 = vector.broadcast %20 : i1 to vector<40x1xi1>
    %22 = vector.broadcast %21 : vector<40x1xi1> to vector<40x1xi1>
    %23 = arith.xori %19, %22 : vector<40x1xi1>
    %24 = arith.andi %23, %17 : vector<40x1xi1>
    %25 = vector.broadcast %13 : i32 to vector<40x1xi32>
    %26 = arith.addi %15, %25 : vector<40x1xi32>
    %27 = arith.select %24, %26, %15 : vector<40x1xi1>, vector<40x1xi32>
    %c6_i32_9 = arith.constant 6 : i32
    %28 = vector.broadcast %c6_i32_9 : i32 to vector<40x1xi32>
    %29 = arith.cmpi sge, %11, %28 : vector<40x1xi32>
    %c30_i32 = arith.constant 30 : i32
    %30 = vector.broadcast %c30_i32 : i32 to vector<40x1xi32>
    %31 = arith.cmpi slt, %11, %30 : vector<40x1xi32>
    %32 = arith.andi %29, %31 : vector<40x1xi1>
    %c1_i32_10 = arith.constant 1 : i32
    %33 = vector.broadcast %c1_i32_10 : i32 to vector<40x1xi32>
    %34 = arith.cmpi sge, %27, %33 : vector<40x1xi32>
    %35 = arith.andi %32, %34 : vector<40x1xi1>
    %c4_i32 = arith.constant 4 : i32
    %36 = vector.broadcast %c4_i32 : i32 to vector<40x1xi32>
    %37 = arith.cmpi sle, %27, %36 : vector<40x1xi32>
    %38 = arith.andi %35, %37 : vector<40x1xi1>
    %cst_11 = arith.constant 0.000000e+00 : f32
    %39 = vector.shape_cast %38 : vector<40x1xi1> to vector<40x1xi1>
    %40 = vector.broadcast %39 : vector<40x1xi1> to vector<40x128xi1>
    %41 = vector.broadcast %cst_11 : f32 to vector<40x128xf32>
    %42 = arith.select %40, %10, %41 : vector<40x128xi1>, vector<40x128xf32>
    %43 = arith.truncf %42 : vector<40x128xf32> to vector<40x128xbf16>
    %44 = tpu.iota {dimensions = array<i32: 0>} : vector<24x1xi32>
    %c6_i32_12 = arith.constant 6 : i32
    %c0_i32_13 = arith.constant 0 : i32
    %45 = arith.cmpi eq, %c6_i32_12, %c0_i32_13 : i32
    %c1_i32_14 = arith.constant 1 : i32
    %46 = arith.select %45, %c1_i32_14, %c6_i32_12 : i32
    %47 = vector.broadcast %46 : i32 to vector<24x1xi32>
    %48 = arith.remsi %44, %47 : vector<24x1xi32>
    %c0_i32_15 = arith.constant 0 : i32
    %49 = vector.broadcast %c0_i32_15 : i32 to vector<24x1xi32>
    %50 = arith.cmpi ne, %48, %49 : vector<24x1xi32>
    %c0_i32_16 = arith.constant 0 : i32
    %51 = vector.broadcast %c0_i32_16 : i32 to vector<24x1xi32>
    %52 = arith.cmpi slt, %48, %51 : vector<24x1xi32>
    %c0_i32_17 = arith.constant 0 : i32
    %53 = arith.cmpi slt, %46, %c0_i32_17 : i32
    %54 = vector.broadcast %53 : i1 to vector<24x1xi1>
    %55 = vector.broadcast %54 : vector<24x1xi1> to vector<24x1xi1>
    %56 = arith.xori %52, %55 : vector<24x1xi1>
    %57 = arith.andi %56, %50 : vector<24x1xi1>
    %58 = vector.broadcast %46 : i32 to vector<24x1xi32>
    %59 = arith.addi %48, %58 : vector<24x1xi32>
    %60 = arith.select %57, %59, %48 : vector<24x1xi1>, vector<24x1xi32>
    %c4_i32_18 = arith.constant 4 : i32
    %61 = vector.broadcast %c4_i32_18 : i32 to vector<24x1xi32>
    %62 = arith.cmpi slt, %60, %61 : vector<24x1xi32>
    %cst_19 = arith.constant 0.000000e+00 : f32
    %63 = vector.broadcast %cst_19 : f32 to vector<24x128xf32>
    %64 = vector.extract_strided_slice %43 {offsets = [0, 0], sizes = [24, 128], strides = [1, 1]} : vector<40x128xbf16> to vector<24x128xbf16>
    %c0_20 = arith.constant 0 : index
    %c0_21 = arith.constant 0 : index
    %c0_22 = arith.constant 0 : index
    %65 = vector.load %arg4[%c0_20, %c0_21, %c0_22] : memref<16x128x128xbf16, #tpu.memory_space<vmem>>, vector<1x128x128xbf16>
    %66 = vector.shape_cast %65 : vector<1x128x128xbf16> to vector<128x128xbf16>
    %cst_23 = arith.constant dense<0.000000e+00> : vector<24x128xf32>
    %67 = tpu.matmul %64, %66, %cst_23 {dimension_numbers = #tpu.dot_dimension_numbers<[1], [0], [0], [1], [0, 0, 1, 1], [], []>} : vector<24x128xbf16>, vector<128x128xbf16>, vector<24x128xf32> -> vector<24x128xf32>
    %68 = arith.addf %63, %67 : vector<24x128xf32>
    %69 = vector.extract_strided_slice %43 {offsets = [1, 0], sizes = [24, 128], strides = [1, 1]} : vector<40x128xbf16> to vector<24x128xbf16>
    %c1 = arith.constant 1 : index
    %c0_24 = arith.constant 0 : index
    %c0_25 = arith.constant 0 : index
    %70 = vector.load %arg4[%c1, %c0_24, %c0_25] : memref<16x128x128xbf16, #tpu.memory_space<vmem>>, vector<1x128x128xbf16>
    %71 = vector.shape_cast %70 : vector<1x128x128xbf16> to vector<128x128xbf16>
    %cst_26 = arith.constant dense<0.000000e+00> : vector<24x128xf32>
    %72 = tpu.matmul %69, %71, %cst_26 {dimension_numbers = #tpu.dot_dimension_numbers<[1], [0], [0], [1], [0, 0, 1, 1], [], []>} : vector<24x128xbf16>, vector<128x128xbf16>, vector<24x128xf32> -> vector<24x128xf32>
    %73 = arith.addf %68, %72 : vector<24x128xf32>
    %74 = vector.extract_strided_slice %43 {offsets = [6, 0], sizes = [24, 128], strides = [1, 1]} : vector<40x128xbf16> to vector<24x128xbf16>
    %c2 = arith.constant 2 : index
    %c0_27 = arith.constant 0 : index
    %c0_28 = arith.constant 0 : index
    %75 = vector.load %arg4[%c2, %c0_27, %c0_28] : memref<16x128x128xbf16, #tpu.memory_space<vmem>>, vector<1x128x128xbf16>
    %76 = vector.shape_cast %75 : vector<1x128x128xbf16> to vector<128x128xbf16>
    %cst_29 = arith.constant dense<0.000000e+00> : vector<24x128xf32>
    %77 = tpu.matmul %74, %76, %cst_29 {dimension_numbers = #tpu.dot_dimension_numbers<[1], [0], [0], [1], [0, 0, 1, 1], [], []>} : vector<24x128xbf16>, vector<128x128xbf16>, vector<24x128xf32> -> vector<24x128xf32>
    %78 = arith.addf %73, %77 : vector<24x128xf32>
    %79 = vector.extract_strided_slice %43 {offsets = [7, 0], sizes = [24, 128], strides = [1, 1]} : vector<40x128xbf16> to vector<24x128xbf16>
    %c3 = arith.constant 3 : index
    %c0_30 = arith.constant 0 : index
    %c0_31 = arith.constant 0 : index
    %80 = vector.load %arg4[%c3, %c0_30, %c0_31] : memref<16x128x128xbf16, #tpu.memory_space<vmem>>, vector<1x128x128xbf16>
    %81 = vector.shape_cast %80 : vector<1x128x128xbf16> to vector<128x128xbf16>
    %cst_32 = arith.constant dense<0.000000e+00> : vector<24x128xf32>
    %82 = tpu.matmul %79, %81, %cst_32 {dimension_numbers = #tpu.dot_dimension_numbers<[1], [0], [0], [1], [0, 0, 1, 1], [], []>} : vector<24x128xbf16>, vector<128x128xbf16>, vector<24x128xf32> -> vector<24x128xf32>
    %83 = arith.addf %78, %82 : vector<24x128xf32>
    %cst_33 = arith.constant 0.000000e+00 : f32
    %84 = vector.shape_cast %62 : vector<24x1xi1> to vector<24x1xi1>
    %85 = vector.broadcast %84 : vector<24x1xi1> to vector<24x128xi1>
    %86 = vector.broadcast %cst_33 : f32 to vector<24x128xf32>
    %87 = arith.select %85, %83, %86 : vector<24x128xi1>, vector<24x128xf32>
    %88 = arith.truncf %87 : vector<24x128xf32> to vector<24x128xbf16>
    %c0_34 = arith.constant 0 : index
    %c0_35 = arith.constant 0 : index
    %c0_36 = arith.constant 0 : index
    %89 = vector.load %arg5[%c0_34, %c0_35, %c0_36] : memref<1x24x512xbf16, #tpu.memory_space<vmem>>, vector<1x24x128xbf16>
    %90 = vector.shape_cast %89 : vector<1x24x128xbf16> to vector<24x128xbf16>
    %91 = vector.shape_cast %88 : vector<24x128xbf16> to vector<1x24x128xbf16>
    tpu.vector_store %arg5[%c0_34, %c0_35, %c0_36], %91 {strides = array<i32>} : memref<1x24x512xbf16, #tpu.memory_space<vmem>>, vector<1x24x128xbf16>,
    %cst_37 = arith.constant dense<0.000000e+00> : vector<128xf32>
    %92 = vector.multi_reduction <add>, %87, %cst_37 [0] : vector<24x128xf32> to vector<128xf32>
    %93 = vector.shape_cast %92 : vector<128xf32> to vector<1x128xf32>
    %94 = arith.mulf %87, %87 : vector<24x128xf32>
    %cst_38 = arith.constant dense<0.000000e+00> : vector<128xf32>
    %95 = vector.multi_reduction <add>, %94, %cst_38 [0] : vector<24x128xf32> to vector<128xf32>
    %96 = vector.shape_cast %95 : vector<128xf32> to vector<1x128xf32>
    %97 = vector.shape_cast %93 : vector<1x128xf32> to vector<1x128xf32>
    %98 = vector.broadcast %97 : vector<1x128xf32> to vector<8x128xf32>
    %c0_39 = arith.constant 0 : index
    %c0_40 = arith.constant 0 : index
    %c0_41 = arith.constant 0 : index
    %99 = vector.load %arg6[%c0_39, %c0_40, %c0_41] : memref<1x8x512xf32, #tpu.memory_space<vmem>>, vector<1x8x128xf32>
    %100 = vector.shape_cast %99 : vector<1x8x128xf32> to vector<8x128xf32>
    %101 = vector.shape_cast %98 : vector<8x128xf32> to vector<1x8x128xf32>
    tpu.vector_store %arg6[%c0_39, %c0_40, %c0_41], %101 {strides = array<i32>} : memref<1x8x512xf32, #tpu.memory_space<vmem>>, vector<1x8x128xf32>,
    %102 = vector.shape_cast %96 : vector<1x128xf32> to vector<1x128xf32>
    %103 = vector.broadcast %102 : vector<1x128xf32> to vector<8x128xf32>
    %c0_42 = arith.constant 0 : index
    %c0_43 = arith.constant 0 : index
    %c0_44 = arith.constant 0 : index
    %104 = vector.load %arg7[%c0_42, %c0_43, %c0_44] : memref<1x8x512xf32, #tpu.memory_space<vmem>>, vector<1x8x128xf32>
    %105 = vector.shape_cast %104 : vector<1x8x128xf32> to vector<8x128xf32>
    %106 = vector.shape_cast %103 : vector<8x128xf32> to vector<1x8x128xf32>
    tpu.vector_store %arg7[%c0_42, %c0_43, %c0_44], %106 {strides = array<i32>} : memref<1x8x512xf32, #tpu.memory_space<vmem>>, vector<1x8x128xf32>,
    %cst_45 = arith.constant 0.000000e+00 : f32
    %107 = vector.broadcast %cst_45 : f32 to vector<24x128xf32>
    %108 = vector.extract_strided_slice %43 {offsets = [1, 0], sizes = [24, 128], strides = [1, 1]} : vector<40x128xbf16> to vector<24x128xbf16>
    %c4 = arith.constant 4 : index
    %c0_46 = arith.constant 0 : index
    %c0_47 = arith.constant 0 : index
    %109 = vector.load %arg4[%c4, %c0_46, %c0_47] : memref<16x128x128xbf16, #tpu.memory_space<vmem>>, vector<1x128x128xbf16>
    %110 = vector.shape_cast %109 : vector<1x128x128xbf16> to vector<128x128xbf16>
    %cst_48 = arith.constant dense<0.000000e+00> : vector<24x128xf32>
    %111 = tpu.matmul %108, %110, %cst_48 {dimension_numbers = #tpu.dot_dimension_numbers<[1], [0], [0], [1], [0, 0, 1, 1], [], []>} : vector<24x128xbf16>, vector<128x128xbf16>, vector<24x128xf32> -> vector<24x128xf32>
    %112 = arith.addf %107, %111 : vector<24x128xf32>
    %113 = vector.extract_strided_slice %43 {offsets = [2, 0], sizes = [24, 128], strides = [1, 1]} : vector<40x128xbf16> to vector<24x128xbf16>
    %c5 = arith.constant 5 : index
    %c0_49 = arith.constant 0 : index
    %c0_50 = arith.constant 0 : index
    %114 = vector.load %arg4[%c5, %c0_49, %c0_50] : memref<16x128x128xbf16, #tpu.memory_space<vmem>>, vector<1x128x128xbf16>
    %115 = vector.shape_cast %114 : vector<1x128x128xbf16> to vector<128x128xbf16>
    %cst_51 = arith.constant dense<0.000000e+00> : vector<24x128xf32>
    %116 = tpu.matmul %113, %115, %cst_51 {dimension_numbers = #tpu.dot_dimension_numbers<[1], [0], [0], [1], [0, 0, 1, 1], [], []>} : vector<24x128xbf16>, vector<128x128xbf16>, vector<24x128xf32> -> vector<24x128xf32>
    %117 = arith.addf %112, %116 : vector<24x128xf32>
    %118 = vector.extract_strided_slice %43 {offsets = [7, 0], sizes = [24, 128], strides = [1, 1]} : vector<40x128xbf16> to vector<24x128xbf16>
    %c6 = arith.constant 6 : index
    %c0_52 = arith.constant 0 : index
    %c0_53 = arith.constant 0 : index
    %119 = vector.load %arg4[%c6, %c0_52, %c0_53] : memref<16x128x128xbf16, #tpu.memory_space<vmem>>, vector<1x128x128xbf16>
    %120 = vector.shape_cast %119 : vector<1x128x128xbf16> to vector<128x128xbf16>
    %cst_54 = arith.constant dense<0.000000e+00> : vector<24x128xf32>
    %121 = tpu.matmul %118, %120, %cst_54 {dimension_numbers = #tpu.dot_dimension_numbers<[1], [0], [0], [1], [0, 0, 1, 1], [], []>} : vector<24x128xbf16>, vector<128x128xbf16>, vector<24x128xf32> -> vector<24x128xf32>
    %122 = arith.addf %117, %121 : vector<24x128xf32>
    %123 = vector.extract_strided_slice %43 {offsets = [8, 0], sizes = [24, 128], strides = [1, 1]} : vector<40x128xbf16> to vector<24x128xbf16>
    %c7 = arith.constant 7 : index
    %c0_55 = arith.constant 0 : index
    %c0_56 = arith.constant 0 : index
    %124 = vector.load %arg4[%c7, %c0_55, %c0_56] : memref<16x128x128xbf16, #tpu.memory_space<vmem>>, vector<1x128x128xbf16>
    %125 = vector.shape_cast %124 : vector<1x128x128xbf16> to vector<128x128xbf16>
    %cst_57 = arith.constant dense<0.000000e+00> : vector<24x128xf32>
    %126 = tpu.matmul %123, %125, %cst_57 {dimension_numbers = #tpu.dot_dimension_numbers<[1], [0], [0], [1], [0, 0, 1, 1], [], []>} : vector<24x128xbf16>, vector<128x128xbf16>, vector<24x128xf32> -> vector<24x128xf32>
    %127 = arith.addf %122, %126 : vector<24x128xf32>
    %cst_58 = arith.constant 0.000000e+00 : f32
    %128 = vector.shape_cast %62 : vector<24x1xi1> to vector<24x1xi1>
    %129 = vector.broadcast %128 : vector<24x1xi1> to vector<24x128xi1>
    %130 = vector.broadcast %cst_58 : f32 to vector<24x128xf32>
    %131 = arith.select %129, %127, %130 : vector<24x128xi1>, vector<24x128xf32>
    %132 = arith.truncf %131 : vector<24x128xf32> to vector<24x128xbf16>
    %c0_59 = arith.constant 0 : index
    %c0_60 = arith.constant 0 : index
    %c128 = arith.constant 128 : index
    %133 = vector.load %arg5[%c0_59, %c0_60, %c128] : memref<1x24x512xbf16, #tpu.memory_space<vmem>>, vector<1x24x128xbf16>
    %134 = vector.shape_cast %133 : vector<1x24x128xbf16> to vector<24x128xbf16>
    %135 = vector.shape_cast %132 : vector<24x128xbf16> to vector<1x24x128xbf16>
    tpu.vector_store %arg5[%c0_59, %c0_60, %c128], %135 {strides = array<i32>} : memref<1x24x512xbf16, #tpu.memory_space<vmem>>, vector<1x24x128xbf16>,
    %cst_61 = arith.constant dense<0.000000e+00> : vector<128xf32>
    %136 = vector.multi_reduction <add>, %131, %cst_61 [0] : vector<24x128xf32> to vector<128xf32>
    %137 = vector.shape_cast %136 : vector<128xf32> to vector<1x128xf32>
    %138 = arith.mulf %131, %131 : vector<24x128xf32>
    %cst_62 = arith.constant dense<0.000000e+00> : vector<128xf32>
    %139 = vector.multi_reduction <add>, %138, %cst_62 [0] : vector<24x128xf32> to vector<128xf32>
    %140 = vector.shape_cast %139 : vector<128xf32> to vector<1x128xf32>
    %141 = vector.shape_cast %137 : vector<1x128xf32> to vector<1x128xf32>
    %142 = vector.broadcast %141 : vector<1x128xf32> to vector<8x128xf32>
    %c0_63 = arith.constant 0 : index
    %c0_64 = arith.constant 0 : index
    %c128_65 = arith.constant 128 : index
    %143 = vector.load %arg6[%c0_63, %c0_64, %c128_65] : memref<1x8x512xf32, #tpu.memory_space<vmem>>, vector<1x8x128xf32>
    %144 = vector.shape_cast %143 : vector<1x8x128xf32> to vector<8x128xf32>
    %145 = vector.shape_cast %142 : vector<8x128xf32> to vector<1x8x128xf32>
    tpu.vector_store %arg6[%c0_63, %c0_64, %c128_65], %145 {strides = array<i32>} : memref<1x8x512xf32, #tpu.memory_space<vmem>>, vector<1x8x128xf32>,
    %146 = vector.shape_cast %140 : vector<1x128xf32> to vector<1x128xf32>
    %147 = vector.broadcast %146 : vector<1x128xf32> to vector<8x128xf32>
    %c0_66 = arith.constant 0 : index
    %c0_67 = arith.constant 0 : index
    %c128_68 = arith.constant 128 : index
    %148 = vector.load %arg7[%c0_66, %c0_67, %c128_68] : memref<1x8x512xf32, #tpu.memory_space<vmem>>, vector<1x8x128xf32>
    %149 = vector.shape_cast %148 : vector<1x8x128xf32> to vector<8x128xf32>
    %150 = vector.shape_cast %147 : vector<8x128xf32> to vector<1x8x128xf32>
    tpu.vector_store %arg7[%c0_66, %c0_67, %c128_68], %150 {strides = array<i32>} : memref<1x8x512xf32, #tpu.memory_space<vmem>>, vector<1x8x128xf32>,
    %cst_69 = arith.constant 0.000000e+00 : f32
    %151 = vector.broadcast %cst_69 : f32 to vector<24x128xf32>
    %152 = vector.extract_strided_slice %43 {offsets = [6, 0], sizes = [24, 128], strides = [1, 1]} : vector<40x128xbf16> to vector<24x128xbf16>
    %c8 = arith.constant 8 : index
    %c0_70 = arith.constant 0 : index
    %c0_71 = arith.constant 0 : index
    %153 = vector.load %arg4[%c8, %c0_70, %c0_71] : memref<16x128x128xbf16, #tpu.memory_space<vmem>>, vector<1x128x128xbf16>
    %154 = vector.shape_cast %153 : vector<1x128x128xbf16> to vector<128x128xbf16>
    %cst_72 = arith.constant dense<0.000000e+00> : vector<24x128xf32>
    %155 = tpu.matmul %152, %154, %cst_72 {dimension_numbers = #tpu.dot_dimension_numbers<[1], [0], [0], [1], [0, 0, 1, 1], [], []>} : vector<24x128xbf16>, vector<128x128xbf16>, vector<24x128xf32> -> vector<24x128xf32>
    %156 = arith.addf %151, %155 : vector<24x128xf32>
    %157 = vector.extract_strided_slice %43 {offsets = [7, 0], sizes = [24, 128], strides = [1, 1]} : vector<40x128xbf16> to vector<24x128xbf16>
    %c9 = arith.constant 9 : index
    %c0_73 = arith.constant 0 : index
    %c0_74 = arith.constant 0 : index
    %158 = vector.load %arg4[%c9, %c0_73, %c0_74] : memref<16x128x128xbf16, #tpu.memory_space<vmem>>, vector<1x128x128xbf16>
    %159 = vector.shape_cast %158 : vector<1x128x128xbf16> to vector<128x128xbf16>
    %cst_75 = arith.constant dense<0.000000e+00> : vector<24x128xf32>
    %160 = tpu.matmul %157, %159, %cst_75 {dimension_numbers = #tpu.dot_dimension_numbers<[1], [0], [0], [1], [0, 0, 1, 1], [], []>} : vector<24x128xbf16>, vector<128x128xbf16>, vector<24x128xf32> -> vector<24x128xf32>
    %161 = arith.addf %156, %160 : vector<24x128xf32>
    %162 = vector.extract_strided_slice %43 {offsets = [12, 0], sizes = [24, 128], strides = [1, 1]} : vector<40x128xbf16> to vector<24x128xbf16>
    %c10 = arith.constant 10 : index
    %c0_76 = arith.constant 0 : index
    %c0_77 = arith.constant 0 : index
    %163 = vector.load %arg4[%c10, %c0_76, %c0_77] : memref<16x128x128xbf16, #tpu.memory_space<vmem>>, vector<1x128x128xbf16>
    %164 = vector.shape_cast %163 : vector<1x128x128xbf16> to vector<128x128xbf16>
    %cst_78 = arith.constant dense<0.000000e+00> : vector<24x128xf32>
    %165 = tpu.matmul %162, %164, %cst_78 {dimension_numbers = #tpu.dot_dimension_numbers<[1], [0], [0], [1], [0, 0, 1, 1], [], []>} : vector<24x128xbf16>, vector<128x128xbf16>, vector<24x128xf32> -> vector<24x128xf32>
    %166 = arith.addf %161, %165 : vector<24x128xf32>
    %167 = vector.extract_strided_slice %43 {offsets = [13, 0], sizes = [24, 128], strides = [1, 1]} : vector<40x128xbf16> to vector<24x128xbf16>
    %c11 = arith.constant 11 : index
    %c0_79 = arith.constant 0 : index
    %c0_80 = arith.constant 0 : index
    %168 = vector.load %arg4[%c11, %c0_79, %c0_80] : memref<16x128x128xbf16, #tpu.memory_space<vmem>>, vector<1x128x128xbf16>
    %169 = vector.shape_cast %168 : vector<1x128x128xbf16> to vector<128x128xbf16>
    %cst_81 = arith.constant dense<0.000000e+00> : vector<24x128xf32>
    %170 = tpu.matmul %167, %169, %cst_81 {dimension_numbers = #tpu.dot_dimension_numbers<[1], [0], [0], [1], [0, 0, 1, 1], [], []>} : vector<24x128xbf16>, vector<128x128xbf16>, vector<24x128xf32> -> vector<24x128xf32>
    %171 = arith.addf %166, %170 : vector<24x128xf32>
    %cst_82 = arith.constant 0.000000e+00 : f32
    %172 = vector.shape_cast %62 : vector<24x1xi1> to vector<24x1xi1>
    %173 = vector.broadcast %172 : vector<24x1xi1> to vector<24x128xi1>
    %174 = vector.broadcast %cst_82 : f32 to vector<24x128xf32>
    %175 = arith.select %173, %171, %174 : vector<24x128xi1>, vector<24x128xf32>
    %176 = arith.truncf %175 : vector<24x128xf32> to vector<24x128xbf16>
    %c0_83 = arith.constant 0 : index
    %c0_84 = arith.constant 0 : index
    %c256 = arith.constant 256 : index
    %177 = vector.load %arg5[%c0_83, %c0_84, %c256] : memref<1x24x512xbf16, #tpu.memory_space<vmem>>, vector<1x24x128xbf16>
    %178 = vector.shape_cast %177 : vector<1x24x128xbf16> to vector<24x128xbf16>
    %179 = vector.shape_cast %176 : vector<24x128xbf16> to vector<1x24x128xbf16>
    tpu.vector_store %arg5[%c0_83, %c0_84, %c256], %179 {strides = array<i32>} : memref<1x24x512xbf16, #tpu.memory_space<vmem>>, vector<1x24x128xbf16>,
    %cst_85 = arith.constant dense<0.000000e+00> : vector<128xf32>
    %180 = vector.multi_reduction <add>, %175, %cst_85 [0] : vector<24x128xf32> to vector<128xf32>
    %181 = vector.shape_cast %180 : vector<128xf32> to vector<1x128xf32>
    %182 = arith.mulf %175, %175 : vector<24x128xf32>
    %cst_86 = arith.constant dense<0.000000e+00> : vector<128xf32>
    %183 = vector.multi_reduction <add>, %182, %cst_86 [0] : vector<24x128xf32> to vector<128xf32>
    %184 = vector.shape_cast %183 : vector<128xf32> to vector<1x128xf32>
    %185 = vector.shape_cast %181 : vector<1x128xf32> to vector<1x128xf32>
    %186 = vector.broadcast %185 : vector<1x128xf32> to vector<8x128xf32>
    %c0_87 = arith.constant 0 : index
    %c0_88 = arith.constant 0 : index
    %c256_89 = arith.constant 256 : index
    %187 = vector.load %arg6[%c0_87, %c0_88, %c256_89] : memref<1x8x512xf32, #tpu.memory_space<vmem>>, vector<1x8x128xf32>
    %188 = vector.shape_cast %187 : vector<1x8x128xf32> to vector<8x128xf32>
    %189 = vector.shape_cast %186 : vector<8x128xf32> to vector<1x8x128xf32>
    tpu.vector_store %arg6[%c0_87, %c0_88, %c256_89], %189 {strides = array<i32>} : memref<1x8x512xf32, #tpu.memory_space<vmem>>, vector<1x8x128xf32>,
    %190 = vector.shape_cast %184 : vector<1x128xf32> to vector<1x128xf32>
    %191 = vector.broadcast %190 : vector<1x128xf32> to vector<8x128xf32>
    %c0_90 = arith.constant 0 : index
    %c0_91 = arith.constant 0 : index
    %c256_92 = arith.constant 256 : index
    %192 = vector.load %arg7[%c0_90, %c0_91, %c256_92] : memref<1x8x512xf32, #tpu.memory_space<vmem>>, vector<1x8x128xf32>
    %193 = vector.shape_cast %192 : vector<1x8x128xf32> to vector<8x128xf32>
    %194 = vector.shape_cast %191 : vector<8x128xf32> to vector<1x8x128xf32>
    tpu.vector_store %arg7[%c0_90, %c0_91, %c256_92], %194 {strides = array<i32>} : memref<1x8x512xf32, #tpu.memory_space<vmem>>, vector<1x8x128xf32>,
    %cst_93 = arith.constant 0.000000e+00 : f32
    %195 = vector.broadcast %cst_93 : f32 to vector<24x128xf32>
    %196 = vector.extract_strided_slice %43 {offsets = [7, 0], sizes = [24, 128], strides = [1, 1]} : vector<40x128xbf16> to vector<24x128xbf16>
    %c12 = arith.constant 12 : index
    %c0_94 = arith.constant 0 : index
    %c0_95 = arith.constant 0 : index
    %197 = vector.load %arg4[%c12, %c0_94, %c0_95] : memref<16x128x128xbf16, #tpu.memory_space<vmem>>, vector<1x128x128xbf16>
    %198 = vector.shape_cast %197 : vector<1x128x128xbf16> to vector<128x128xbf16>
    %cst_96 = arith.constant dense<0.000000e+00> : vector<24x128xf32>
    %199 = tpu.matmul %196, %198, %cst_96 {dimension_numbers = #tpu.dot_dimension_numbers<[1], [0], [0], [1], [0, 0, 1, 1], [], []>} : vector<24x128xbf16>, vector<128x128xbf16>, vector<24x128xf32> -> vector<24x128xf32>
    %200 = arith.addf %195, %199 : vector<24x128xf32>
    %201 = vector.extract_strided_slice %43 {offsets = [8, 0], sizes = [24, 128], strides = [1, 1]} : vector<40x128xbf16> to vector<24x128xbf16>
    %c13 = arith.constant 13 : index
    %c0_97 = arith.constant 0 : index
    %c0_98 = arith.constant 0 : index
    %202 = vector.load %arg4[%c13, %c0_97, %c0_98] : memref<16x128x128xbf16, #tpu.memory_space<vmem>>, vector<1x128x128xbf16>
    %203 = vector.shape_cast %202 : vector<1x128x128xbf16> to vector<128x128xbf16>
    %cst_99 = arith.constant dense<0.000000e+00> : vector<24x128xf32>
    %204 = tpu.matmul %201, %203, %cst_99 {dimension_numbers = #tpu.dot_dimension_numbers<[1], [0], [0], [1], [0, 0, 1, 1], [], []>} : vector<24x128xbf16>, vector<128x128xbf16>, vector<24x128xf32> -> vector<24x128xf32>
    %205 = arith.addf %200, %204 : vector<24x128xf32>
    %206 = vector.extract_strided_slice %43 {offsets = [13, 0], sizes = [24, 128], strides = [1, 1]} : vector<40x128xbf16> to vector<24x128xbf16>
    %c14 = arith.constant 14 : index
    %c0_100 = arith.constant 0 : index
    %c0_101 = arith.constant 0 : index
    %207 = vector.load %arg4[%c14, %c0_100, %c0_101] : memref<16x128x128xbf16, #tpu.memory_space<vmem>>, vector<1x128x128xbf16>
    %208 = vector.shape_cast %207 : vector<1x128x128xbf16> to vector<128x128xbf16>
    %cst_102 = arith.constant dense<0.000000e+00> : vector<24x128xf32>
    %209 = tpu.matmul %206, %208, %cst_102 {dimension_numbers = #tpu.dot_dimension_numbers<[1], [0], [0], [1], [0, 0, 1, 1], [], []>} : vector<24x128xbf16>, vector<128x128xbf16>, vector<24x128xf32> -> vector<24x128xf32>
    %210 = arith.addf %205, %209 : vector<24x128xf32>
    %211 = vector.extract_strided_slice %43 {offsets = [14, 0], sizes = [24, 128], strides = [1, 1]} : vector<40x128xbf16> to vector<24x128xbf16>
    %c15 = arith.constant 15 : index
    %c0_103 = arith.constant 0 : index
    %c0_104 = arith.constant 0 : index
    %212 = vector.load %arg4[%c15, %c0_103, %c0_104] : memref<16x128x128xbf16, #tpu.memory_space<vmem>>, vector<1x128x128xbf16>
    %213 = vector.shape_cast %212 : vector<1x128x128xbf16> to vector<128x128xbf16>
    %cst_105 = arith.constant dense<0.000000e+00> : vector<24x128xf32>
    %214 = tpu.matmul %211, %213, %cst_105 {dimension_numbers = #tpu.dot_dimension_numbers<[1], [0], [0], [1], [0, 0, 1, 1], [], []>} : vector<24x128xbf16>, vector<128x128xbf16>, vector<24x128xf32> -> vector<24x128xf32>
    %215 = arith.addf %210, %214 : vector<24x128xf32>
    %cst_106 = arith.constant 0.000000e+00 : f32
    %216 = vector.shape_cast %62 : vector<24x1xi1> to vector<24x1xi1>
    %217 = vector.broadcast %216 : vector<24x1xi1> to vector<24x128xi1>
    %218 = vector.broadcast %cst_106 : f32 to vector<24x128xf32>
    %219 = arith.select %217, %215, %218 : vector<24x128xi1>, vector<24x128xf32>
    %220 = arith.truncf %219 : vector<24x128xf32> to vector<24x128xbf16>
    %c0_107 = arith.constant 0 : index
    %c0_108 = arith.constant 0 : index
    %c384 = arith.constant 384 : index
    %221 = vector.load %arg5[%c0_107, %c0_108, %c384] : memref<1x24x512xbf16, #tpu.memory_space<vmem>>, vector<1x24x128xbf16>
    %222 = vector.shape_cast %221 : vector<1x24x128xbf16> to vector<24x128xbf16>
    %223 = vector.shape_cast %220 : vector<24x128xbf16> to vector<1x24x128xbf16>
    tpu.vector_store %arg5[%c0_107, %c0_108, %c384], %223 {strides = array<i32>} : memref<1x24x512xbf16, #tpu.memory_space<vmem>>, vector<1x24x128xbf16>,
    %cst_109 = arith.constant dense<0.000000e+00> : vector<128xf32>
    %224 = vector.multi_reduction <add>, %219, %cst_109 [0] : vector<24x128xf32> to vector<128xf32>
    %225 = vector.shape_cast %224 : vector<128xf32> to vector<1x128xf32>
    %226 = arith.mulf %219, %219 : vector<24x128xf32>
    %cst_110 = arith.constant dense<0.000000e+00> : vector<128xf32>
    %227 = vector.multi_reduction <add>, %226, %cst_110 [0] : vector<24x128xf32> to vector<128xf32>
    %228 = vector.shape_cast %227 : vector<128xf32> to vector<1x128xf32>
    %229 = vector.shape_cast %225 : vector<1x128xf32> to vector<1x128xf32>
    %230 = vector.broadcast %229 : vector<1x128xf32> to vector<8x128xf32>
    %c0_111 = arith.constant 0 : index
    %c0_112 = arith.constant 0 : index
    %c384_113 = arith.constant 384 : index
    %231 = vector.load %arg6[%c0_111, %c0_112, %c384_113] : memref<1x8x512xf32, #tpu.memory_space<vmem>>, vector<1x8x128xf32>
    %232 = vector.shape_cast %231 : vector<1x8x128xf32> to vector<8x128xf32>
    %233 = vector.shape_cast %230 : vector<8x128xf32> to vector<1x8x128xf32>
    tpu.vector_store %arg6[%c0_111, %c0_112, %c384_113], %233 {strides = array<i32>} : memref<1x8x512xf32, #tpu.memory_space<vmem>>, vector<1x8x128xf32>,
    %234 = vector.shape_cast %228 : vector<1x128xf32> to vector<1x128xf32>
    %235 = vector.broadcast %234 : vector<1x128xf32> to vector<8x128xf32>
    %c0_114 = arith.constant 0 : index
    %c0_115 = arith.constant 0 : index
    %c384_116 = arith.constant 384 : index
    %236 = vector.load %arg7[%c0_114, %c0_115, %c384_116] : memref<1x8x512xf32, #tpu.memory_space<vmem>>, vector<1x8x128xf32>
    %237 = vector.shape_cast %236 : vector<1x8x128xf32> to vector<8x128xf32>
    %238 = vector.shape_cast %235 : vector<8x128xf32> to vector<1x8x128xf32>
    tpu.vector_store %arg7[%c0_114, %c0_115, %c384_116], %238 {strides = array<i32>} : memref<1x8x512xf32, #tpu.memory_space<vmem>>, vector<1x8x128xf32>,
    return
  }
  func.func @transform_0(%arg0: i32) -> (i32, i32, i32) {
    %c0_i32 = arith.constant 0 : i32
    %c0_i32_0 = arith.constant 0 : i32
    %c0_i32_1 = arith.constant 0 : i32
    return %arg0, %c0_i32, %c0_i32_0 : i32, i32, i32
  }
  func.func @transform_1(%arg0: i32) -> (i32, i32) {
    %c0_i32 = arith.constant 0 : i32
    %c0_i32_0 = arith.constant 0 : i32
    %c0_i32_1 = arith.constant 0 : i32
    return %c0_i32, %c0_i32_0 : i32, i32
  }
  func.func @transform_2(%arg0: i32) -> (i32, i32) {
    %c0_i32 = arith.constant 0 : i32
    %c0_i32_0 = arith.constant 0 : i32
    %c0_i32_1 = arith.constant 0 : i32
    return %c0_i32, %c0_i32_0 : i32, i32
  }
  func.func @transform_3(%arg0: i32) -> (i32, i32, i32) {
    %c0_i32 = arith.constant 0 : i32
    %c0_i32_0 = arith.constant 0 : i32
    %c0_i32_1 = arith.constant 0 : i32
    %c0_i32_2 = arith.constant 0 : i32
    return %c0_i32, %c0_i32_0, %c0_i32_1 : i32, i32, i32
  }
  func.func @transform_4(%arg0: i32) -> (i32, i32, i32) {
    %c0_i32 = arith.constant 0 : i32
    %c0_i32_0 = arith.constant 0 : i32
    %c0_i32_1 = arith.constant 0 : i32
    return %arg0, %c0_i32, %c0_i32_0 : i32, i32, i32
  }
  func.func @transform_5(%arg0: i32) -> (i32, i32, i32) {
    %c0_i32 = arith.constant 0 : i32
    %c0_i32_0 = arith.constant 0 : i32
    %c0_i32_1 = arith.constant 0 : i32
    return %arg0, %c0_i32, %c0_i32_0 : i32, i32, i32
  }
  func.func @transform_6(%arg0: i32) -> (i32, i32, i32) {
    %c0_i32 = arith.constant 0 : i32
    %c0_i32_0 = arith.constant 0 : i32
    %c0_i32_1 = arith.constant 0 : i32
    return %arg0, %c0_i32, %c0_i32_0 : i32, i32, i32
  }
}

module attributes {stable_mosaic.version = 11 : i64} {
  func.func @_final_kernel(%arg0: i32, %arg1: memref<1x104x128xbf16, #tpu.memory_space<vmem>>, %arg2: memref<1x128xf32, #tpu.memory_space<vmem>>, %arg3: memref<1x128xf32, #tpu.memory_space<vmem>>, %arg4: memref<16x128x128xbf16, #tpu.memory_space<vmem>>, %arg5: memref<1x4x80x3xf32, #tpu.memory_space<vmem>>) attributes {dimension_semantics = [#tpu.dimension_semantics<parallel>], iteration_bounds = array<i64: 2>, scalar_prefetch = 0 : i64, scratch_operands = 0 : i64, tpu.core_type = #tpu.core_type<tc>, window_params = [{transform_indices = @transform_0, window_bounds = array<i64: 1, 104, 128>}, {pipeline_mode = #tpu.pipeline_mode<synchronous>, transform_indices = @transform_1, window_bounds = array<i64: 1, 128>}, {pipeline_mode = #tpu.pipeline_mode<synchronous>, transform_indices = @transform_2, window_bounds = array<i64: 1, 128>}, {pipeline_mode = #tpu.pipeline_mode<synchronous>, transform_indices = @transform_3, window_bounds = array<i64: 16, 128, 128>}, {transform_indices = @transform_4, window_bounds = array<i64: 1, 4, 80, 3>}]} {
    %c0 = arith.constant 0 : index
    %c0_0 = arith.constant 0 : index
    %c0_1 = arith.constant 0 : index
    %0 = vector.load %arg1[%c0, %c0_0, %c0_1] : memref<1x104x128xbf16, #tpu.memory_space<vmem>>, vector<1x104x128xbf16>
    %1 = vector.shape_cast %0 : vector<1x104x128xbf16> to vector<104x128xbf16>
    %2 = arith.extf %1 : vector<104x128xbf16> to vector<104x128xf32>
    %c0_2 = arith.constant 0 : index
    %c0_3 = arith.constant 0 : index
    %3 = vector.load %arg2[%c0_2, %c0_3] : memref<1x128xf32, #tpu.memory_space<vmem>>, vector<1x128xf32>
    %4 = vector.broadcast %3 : vector<1x128xf32> to vector<104x128xf32>
    %5 = arith.mulf %2, %4 : vector<104x128xf32>
    %c0_4 = arith.constant 0 : index
    %c0_5 = arith.constant 0 : index
    %6 = vector.load %arg3[%c0_4, %c0_5] : memref<1x128xf32, #tpu.memory_space<vmem>>, vector<1x128xf32>
    %7 = vector.broadcast %6 : vector<1x128xf32> to vector<104x128xf32>
    %8 = arith.addf %5, %7 : vector<104x128xf32>
    %cst = arith.constant 0.000000e+00 : f32
    %9 = vector.broadcast %cst : f32 to vector<104x128xf32>
    %10 = arith.maximumf %8, %9 : vector<104x128xf32>
    %11 = tpu.iota {dimensions = array<i32: 0>} : vector<104x1xi32>
    %c10_i32 = arith.constant 10 : i32
    %c0_i32 = arith.constant 0 : i32
    %12 = arith.cmpi eq, %c10_i32, %c0_i32 : i32
    %c1_i32 = arith.constant 1 : i32
    %13 = arith.select %12, %c1_i32, %c10_i32 : i32
    %14 = vector.broadcast %13 : i32 to vector<104x1xi32>
    %15 = arith.remsi %11, %14 : vector<104x1xi32>
    %c0_i32_6 = arith.constant 0 : i32
    %16 = vector.broadcast %c0_i32_6 : i32 to vector<104x1xi32>
    %17 = arith.cmpi ne, %15, %16 : vector<104x1xi32>
    %c0_i32_7 = arith.constant 0 : i32
    %18 = vector.broadcast %c0_i32_7 : i32 to vector<104x1xi32>
    %19 = arith.cmpi slt, %15, %18 : vector<104x1xi32>
    %c0_i32_8 = arith.constant 0 : i32
    %20 = arith.cmpi slt, %13, %c0_i32_8 : i32
    %21 = vector.broadcast %20 : i1 to vector<104x1xi1>
    %22 = vector.broadcast %21 : vector<104x1xi1> to vector<104x1xi1>
    %23 = arith.xori %19, %22 : vector<104x1xi1>
    %24 = arith.andi %23, %17 : vector<104x1xi1>
    %25 = vector.broadcast %13 : i32 to vector<104x1xi32>
    %26 = arith.addi %15, %25 : vector<104x1xi32>
    %27 = arith.select %24, %26, %15 : vector<104x1xi1>, vector<104x1xi32>
    %c10_i32_9 = arith.constant 10 : i32
    %28 = vector.broadcast %c10_i32_9 : i32 to vector<104x1xi32>
    %29 = arith.cmpi sge, %11, %28 : vector<104x1xi32>
    %c90_i32 = arith.constant 90 : i32
    %30 = vector.broadcast %c90_i32 : i32 to vector<104x1xi32>
    %31 = arith.cmpi slt, %11, %30 : vector<104x1xi32>
    %32 = arith.andi %29, %31 : vector<104x1xi1>
    %c1_i32_10 = arith.constant 1 : i32
    %33 = vector.broadcast %c1_i32_10 : i32 to vector<104x1xi32>
    %34 = arith.cmpi sge, %27, %33 : vector<104x1xi32>
    %35 = arith.andi %32, %34 : vector<104x1xi1>
    %c8_i32 = arith.constant 8 : i32
    %36 = vector.broadcast %c8_i32 : i32 to vector<104x1xi32>
    %37 = arith.cmpi sle, %27, %36 : vector<104x1xi32>
    %38 = arith.andi %35, %37 : vector<104x1xi1>
    %cst_11 = arith.constant 0.000000e+00 : f32
    %39 = vector.shape_cast %38 : vector<104x1xi1> to vector<104x1xi1>
    %40 = vector.broadcast %39 : vector<104x1xi1> to vector<104x128xi1>
    %41 = vector.broadcast %cst_11 : f32 to vector<104x128xf32>
    %42 = arith.select %40, %10, %41 : vector<104x128xi1>, vector<104x128xf32>
    %43 = arith.truncf %42 : vector<104x128xf32> to vector<104x128xbf16>
    %cst_12 = arith.constant 0.000000e+00 : f32
    %44 = vector.broadcast %cst_12 : f32 to vector<80x128xf32>
    %45 = vector.extract_strided_slice %43 {offsets = [0, 0], sizes = [80, 128], strides = [1, 1]} : vector<104x128xbf16> to vector<80x128xbf16>
    %c0_13 = arith.constant 0 : index
    %c0_14 = arith.constant 0 : index
    %c0_15 = arith.constant 0 : index
    %46 = vector.load %arg4[%c0_13, %c0_14, %c0_15] : memref<16x128x128xbf16, #tpu.memory_space<vmem>>, vector<1x128x128xbf16>
    %47 = vector.shape_cast %46 : vector<1x128x128xbf16> to vector<128x128xbf16>
    %cst_16 = arith.constant dense<0.000000e+00> : vector<80x128xf32>
    %48 = tpu.matmul %45, %47, %cst_16 {dimension_numbers = #tpu.dot_dimension_numbers<[1], [0], [0], [1], [0, 0, 1, 1], [], []>} : vector<80x128xbf16>, vector<128x128xbf16>, vector<80x128xf32> -> vector<80x128xf32>
    %49 = arith.addf %44, %48 : vector<80x128xf32>
    %50 = vector.extract_strided_slice %43 {offsets = [1, 0], sizes = [80, 128], strides = [1, 1]} : vector<104x128xbf16> to vector<80x128xbf16>
    %c1 = arith.constant 1 : index
    %c0_17 = arith.constant 0 : index
    %c0_18 = arith.constant 0 : index
    %51 = vector.load %arg4[%c1, %c0_17, %c0_18] : memref<16x128x128xbf16, #tpu.memory_space<vmem>>, vector<1x128x128xbf16>
    %52 = vector.shape_cast %51 : vector<1x128x128xbf16> to vector<128x128xbf16>
    %cst_19 = arith.constant dense<0.000000e+00> : vector<80x128xf32>
    %53 = tpu.matmul %50, %52, %cst_19 {dimension_numbers = #tpu.dot_dimension_numbers<[1], [0], [0], [1], [0, 0, 1, 1], [], []>} : vector<80x128xbf16>, vector<128x128xbf16>, vector<80x128xf32> -> vector<80x128xf32>
    %54 = arith.addf %49, %53 : vector<80x128xf32>
    %55 = vector.extract_strided_slice %43 {offsets = [10, 0], sizes = [80, 128], strides = [1, 1]} : vector<104x128xbf16> to vector<80x128xbf16>
    %c2 = arith.constant 2 : index
    %c0_20 = arith.constant 0 : index
    %c0_21 = arith.constant 0 : index
    %56 = vector.load %arg4[%c2, %c0_20, %c0_21] : memref<16x128x128xbf16, #tpu.memory_space<vmem>>, vector<1x128x128xbf16>
    %57 = vector.shape_cast %56 : vector<1x128x128xbf16> to vector<128x128xbf16>
    %cst_22 = arith.constant dense<0.000000e+00> : vector<80x128xf32>
    %58 = tpu.matmul %55, %57, %cst_22 {dimension_numbers = #tpu.dot_dimension_numbers<[1], [0], [0], [1], [0, 0, 1, 1], [], []>} : vector<80x128xbf16>, vector<128x128xbf16>, vector<80x128xf32> -> vector<80x128xf32>
    %59 = arith.addf %54, %58 : vector<80x128xf32>
    %60 = vector.extract_strided_slice %43 {offsets = [11, 0], sizes = [80, 128], strides = [1, 1]} : vector<104x128xbf16> to vector<80x128xbf16>
    %c3 = arith.constant 3 : index
    %c0_23 = arith.constant 0 : index
    %c0_24 = arith.constant 0 : index
    %61 = vector.load %arg4[%c3, %c0_23, %c0_24] : memref<16x128x128xbf16, #tpu.memory_space<vmem>>, vector<1x128x128xbf16>
    %62 = vector.shape_cast %61 : vector<1x128x128xbf16> to vector<128x128xbf16>
    %cst_25 = arith.constant dense<0.000000e+00> : vector<80x128xf32>
    %63 = tpu.matmul %60, %62, %cst_25 {dimension_numbers = #tpu.dot_dimension_numbers<[1], [0], [0], [1], [0, 0, 1, 1], [], []>} : vector<80x128xbf16>, vector<128x128xbf16>, vector<80x128xf32> -> vector<80x128xf32>
    %64 = arith.addf %59, %63 : vector<80x128xf32>
    %65 = vector.extract_strided_slice %64 {offsets = [0, 0], sizes = [80, 3], strides = [1, 1]} : vector<80x128xf32> to vector<80x3xf32>
    %cst_26 = arith.constant 0.000000e+00 : f32
    %66 = vector.broadcast %cst_26 : f32 to vector<80x3xf32>
    %67 = arith.subf %66, %65 : vector<80x3xf32>
    %68 = math.exp %67 : vector<80x3xf32>
    %cst_27 = arith.constant 1.000000e+00 : f32
    %69 = vector.broadcast %cst_27 : f32 to vector<80x3xf32>
    %70 = arith.addf %69, %68 : vector<80x3xf32>
    %cst_28 = arith.constant 1.000000e+00 : f32
    %71 = vector.broadcast %cst_28 : f32 to vector<80x3xf32>
    %72 = arith.divf %71, %70 : vector<80x3xf32>
    %c0_29 = arith.constant 0 : index
    %c0_30 = arith.constant 0 : index
    %c0_31 = arith.constant 0 : index
    %c0_32 = arith.constant 0 : index
    %73 = vector.load %arg5[%c0_29, %c0_30, %c0_31, %c0_32] : memref<1x4x80x3xf32, #tpu.memory_space<vmem>>, vector<1x1x80x3xf32>
    %74 = vector.shape_cast %73 : vector<1x1x80x3xf32> to vector<80x3xf32>
    %75 = vector.shape_cast %72 : vector<80x3xf32> to vector<1x1x80x3xf32>
    tpu.vector_store %arg5[%c0_29, %c0_30, %c0_31, %c0_32], %75 {strides = array<i32>} : memref<1x4x80x3xf32, #tpu.memory_space<vmem>>, vector<1x1x80x3xf32>,
    %cst_33 = arith.constant 0.000000e+00 : f32
    %76 = vector.broadcast %cst_33 : f32 to vector<80x128xf32>
    %77 = vector.extract_strided_slice %43 {offsets = [1, 0], sizes = [80, 128], strides = [1, 1]} : vector<104x128xbf16> to vector<80x128xbf16>
    %c4 = arith.constant 4 : index
    %c0_34 = arith.constant 0 : index
    %c0_35 = arith.constant 0 : index
    %78 = vector.load %arg4[%c4, %c0_34, %c0_35] : memref<16x128x128xbf16, #tpu.memory_space<vmem>>, vector<1x128x128xbf16>
    %79 = vector.shape_cast %78 : vector<1x128x128xbf16> to vector<128x128xbf16>
    %cst_36 = arith.constant dense<0.000000e+00> : vector<80x128xf32>
    %80 = tpu.matmul %77, %79, %cst_36 {dimension_numbers = #tpu.dot_dimension_numbers<[1], [0], [0], [1], [0, 0, 1, 1], [], []>} : vector<80x128xbf16>, vector<128x128xbf16>, vector<80x128xf32> -> vector<80x128xf32>
    %81 = arith.addf %76, %80 : vector<80x128xf32>
    %82 = vector.extract_strided_slice %43 {offsets = [2, 0], sizes = [80, 128], strides = [1, 1]} : vector<104x128xbf16> to vector<80x128xbf16>
    %c5 = arith.constant 5 : index
    %c0_37 = arith.constant 0 : index
    %c0_38 = arith.constant 0 : index
    %83 = vector.load %arg4[%c5, %c0_37, %c0_38] : memref<16x128x128xbf16, #tpu.memory_space<vmem>>, vector<1x128x128xbf16>
    %84 = vector.shape_cast %83 : vector<1x128x128xbf16> to vector<128x128xbf16>
    %cst_39 = arith.constant dense<0.000000e+00> : vector<80x128xf32>
    %85 = tpu.matmul %82, %84, %cst_39 {dimension_numbers = #tpu.dot_dimension_numbers<[1], [0], [0], [1], [0, 0, 1, 1], [], []>} : vector<80x128xbf16>, vector<128x128xbf16>, vector<80x128xf32> -> vector<80x128xf32>
    %86 = arith.addf %81, %85 : vector<80x128xf32>
    %87 = vector.extract_strided_slice %43 {offsets = [11, 0], sizes = [80, 128], strides = [1, 1]} : vector<104x128xbf16> to vector<80x128xbf16>
    %c6 = arith.constant 6 : index
    %c0_40 = arith.constant 0 : index
    %c0_41 = arith.constant 0 : index
    %88 = vector.load %arg4[%c6, %c0_40, %c0_41] : memref<16x128x128xbf16, #tpu.memory_space<vmem>>, vector<1x128x128xbf16>
    %89 = vector.shape_cast %88 : vector<1x128x128xbf16> to vector<128x128xbf16>
    %cst_42 = arith.constant dense<0.000000e+00> : vector<80x128xf32>
    %90 = tpu.matmul %87, %89, %cst_42 {dimension_numbers = #tpu.dot_dimension_numbers<[1], [0], [0], [1], [0, 0, 1, 1], [], []>} : vector<80x128xbf16>, vector<128x128xbf16>, vector<80x128xf32> -> vector<80x128xf32>
    %91 = arith.addf %86, %90 : vector<80x128xf32>
    %92 = vector.extract_strided_slice %43 {offsets = [12, 0], sizes = [80, 128], strides = [1, 1]} : vector<104x128xbf16> to vector<80x128xbf16>
    %c7 = arith.constant 7 : index
    %c0_43 = arith.constant 0 : index
    %c0_44 = arith.constant 0 : index
    %93 = vector.load %arg4[%c7, %c0_43, %c0_44] : memref<16x128x128xbf16, #tpu.memory_space<vmem>>, vector<1x128x128xbf16>
    %94 = vector.shape_cast %93 : vector<1x128x128xbf16> to vector<128x128xbf16>
    %cst_45 = arith.constant dense<0.000000e+00> : vector<80x128xf32>
    %95 = tpu.matmul %92, %94, %cst_45 {dimension_numbers = #tpu.dot_dimension_numbers<[1], [0], [0], [1], [0, 0, 1, 1], [], []>} : vector<80x128xbf16>, vector<128x128xbf16>, vector<80x128xf32> -> vector<80x128xf32>
    %96 = arith.addf %91, %95 : vector<80x128xf32>
    %97 = vector.extract_strided_slice %96 {offsets = [0, 0], sizes = [80, 3], strides = [1, 1]} : vector<80x128xf32> to vector<80x3xf32>
    %cst_46 = arith.constant 0.000000e+00 : f32
    %98 = vector.broadcast %cst_46 : f32 to vector<80x3xf32>
    %99 = arith.subf %98, %97 : vector<80x3xf32>
    %100 = math.exp %99 : vector<80x3xf32>
    %cst_47 = arith.constant 1.000000e+00 : f32
    %101 = vector.broadcast %cst_47 : f32 to vector<80x3xf32>
    %102 = arith.addf %101, %100 : vector<80x3xf32>
    %cst_48 = arith.constant 1.000000e+00 : f32
    %103 = vector.broadcast %cst_48 : f32 to vector<80x3xf32>
    %104 = arith.divf %103, %102 : vector<80x3xf32>
    %c0_49 = arith.constant 0 : index
    %c1_50 = arith.constant 1 : index
    %c0_51 = arith.constant 0 : index
    %c0_52 = arith.constant 0 : index
    %105 = vector.load %arg5[%c0_49, %c1_50, %c0_51, %c0_52] : memref<1x4x80x3xf32, #tpu.memory_space<vmem>>, vector<1x1x80x3xf32>
    %106 = vector.shape_cast %105 : vector<1x1x80x3xf32> to vector<80x3xf32>
    %107 = vector.shape_cast %104 : vector<80x3xf32> to vector<1x1x80x3xf32>
    tpu.vector_store %arg5[%c0_49, %c1_50, %c0_51, %c0_52], %107 {strides = array<i32>} : memref<1x4x80x3xf32, #tpu.memory_space<vmem>>, vector<1x1x80x3xf32>,
    %cst_53 = arith.constant 0.000000e+00 : f32
    %108 = vector.broadcast %cst_53 : f32 to vector<80x128xf32>
    %109 = vector.extract_strided_slice %43 {offsets = [10, 0], sizes = [80, 128], strides = [1, 1]} : vector<104x128xbf16> to vector<80x128xbf16>
    %c8 = arith.constant 8 : index
    %c0_54 = arith.constant 0 : index
    %c0_55 = arith.constant 0 : index
    %110 = vector.load %arg4[%c8, %c0_54, %c0_55] : memref<16x128x128xbf16, #tpu.memory_space<vmem>>, vector<1x128x128xbf16>
    %111 = vector.shape_cast %110 : vector<1x128x128xbf16> to vector<128x128xbf16>
    %cst_56 = arith.constant dense<0.000000e+00> : vector<80x128xf32>
    %112 = tpu.matmul %109, %111, %cst_56 {dimension_numbers = #tpu.dot_dimension_numbers<[1], [0], [0], [1], [0, 0, 1, 1], [], []>} : vector<80x128xbf16>, vector<128x128xbf16>, vector<80x128xf32> -> vector<80x128xf32>
    %113 = arith.addf %108, %112 : vector<80x128xf32>
    %114 = vector.extract_strided_slice %43 {offsets = [11, 0], sizes = [80, 128], strides = [1, 1]} : vector<104x128xbf16> to vector<80x128xbf16>
    %c9 = arith.constant 9 : index
    %c0_57 = arith.constant 0 : index
    %c0_58 = arith.constant 0 : index
    %115 = vector.load %arg4[%c9, %c0_57, %c0_58] : memref<16x128x128xbf16, #tpu.memory_space<vmem>>, vector<1x128x128xbf16>
    %116 = vector.shape_cast %115 : vector<1x128x128xbf16> to vector<128x128xbf16>
    %cst_59 = arith.constant dense<0.000000e+00> : vector<80x128xf32>
    %117 = tpu.matmul %114, %116, %cst_59 {dimension_numbers = #tpu.dot_dimension_numbers<[1], [0], [0], [1], [0, 0, 1, 1], [], []>} : vector<80x128xbf16>, vector<128x128xbf16>, vector<80x128xf32> -> vector<80x128xf32>
    %118 = arith.addf %113, %117 : vector<80x128xf32>
    %119 = vector.extract_strided_slice %43 {offsets = [20, 0], sizes = [80, 128], strides = [1, 1]} : vector<104x128xbf16> to vector<80x128xbf16>
    %c10 = arith.constant 10 : index
    %c0_60 = arith.constant 0 : index
    %c0_61 = arith.constant 0 : index
    %120 = vector.load %arg4[%c10, %c0_60, %c0_61] : memref<16x128x128xbf16, #tpu.memory_space<vmem>>, vector<1x128x128xbf16>
    %121 = vector.shape_cast %120 : vector<1x128x128xbf16> to vector<128x128xbf16>
    %cst_62 = arith.constant dense<0.000000e+00> : vector<80x128xf32>
    %122 = tpu.matmul %119, %121, %cst_62 {dimension_numbers = #tpu.dot_dimension_numbers<[1], [0], [0], [1], [0, 0, 1, 1], [], []>} : vector<80x128xbf16>, vector<128x128xbf16>, vector<80x128xf32> -> vector<80x128xf32>
    %123 = arith.addf %118, %122 : vector<80x128xf32>
    %124 = vector.extract_strided_slice %43 {offsets = [21, 0], sizes = [80, 128], strides = [1, 1]} : vector<104x128xbf16> to vector<80x128xbf16>
    %c11 = arith.constant 11 : index
    %c0_63 = arith.constant 0 : index
    %c0_64 = arith.constant 0 : index
    %125 = vector.load %arg4[%c11, %c0_63, %c0_64] : memref<16x128x128xbf16, #tpu.memory_space<vmem>>, vector<1x128x128xbf16>
    %126 = vector.shape_cast %125 : vector<1x128x128xbf16> to vector<128x128xbf16>
    %cst_65 = arith.constant dense<0.000000e+00> : vector<80x128xf32>
    %127 = tpu.matmul %124, %126, %cst_65 {dimension_numbers = #tpu.dot_dimension_numbers<[1], [0], [0], [1], [0, 0, 1, 1], [], []>} : vector<80x128xbf16>, vector<128x128xbf16>, vector<80x128xf32> -> vector<80x128xf32>
    %128 = arith.addf %123, %127 : vector<80x128xf32>
    %129 = vector.extract_strided_slice %128 {offsets = [0, 0], sizes = [80, 3], strides = [1, 1]} : vector<80x128xf32> to vector<80x3xf32>
    %cst_66 = arith.constant 0.000000e+00 : f32
    %130 = vector.broadcast %cst_66 : f32 to vector<80x3xf32>
    %131 = arith.subf %130, %129 : vector<80x3xf32>
    %132 = math.exp %131 : vector<80x3xf32>
    %cst_67 = arith.constant 1.000000e+00 : f32
    %133 = vector.broadcast %cst_67 : f32 to vector<80x3xf32>
    %134 = arith.addf %133, %132 : vector<80x3xf32>
    %cst_68 = arith.constant 1.000000e+00 : f32
    %135 = vector.broadcast %cst_68 : f32 to vector<80x3xf32>
    %136 = arith.divf %135, %134 : vector<80x3xf32>
    %c0_69 = arith.constant 0 : index
    %c2_70 = arith.constant 2 : index
    %c0_71 = arith.constant 0 : index
    %c0_72 = arith.constant 0 : index
    %137 = vector.load %arg5[%c0_69, %c2_70, %c0_71, %c0_72] : memref<1x4x80x3xf32, #tpu.memory_space<vmem>>, vector<1x1x80x3xf32>
    %138 = vector.shape_cast %137 : vector<1x1x80x3xf32> to vector<80x3xf32>
    %139 = vector.shape_cast %136 : vector<80x3xf32> to vector<1x1x80x3xf32>
    tpu.vector_store %arg5[%c0_69, %c2_70, %c0_71, %c0_72], %139 {strides = array<i32>} : memref<1x4x80x3xf32, #tpu.memory_space<vmem>>, vector<1x1x80x3xf32>,
    %cst_73 = arith.constant 0.000000e+00 : f32
    %140 = vector.broadcast %cst_73 : f32 to vector<80x128xf32>
    %141 = vector.extract_strided_slice %43 {offsets = [11, 0], sizes = [80, 128], strides = [1, 1]} : vector<104x128xbf16> to vector<80x128xbf16>
    %c12 = arith.constant 12 : index
    %c0_74 = arith.constant 0 : index
    %c0_75 = arith.constant 0 : index
    %142 = vector.load %arg4[%c12, %c0_74, %c0_75] : memref<16x128x128xbf16, #tpu.memory_space<vmem>>, vector<1x128x128xbf16>
    %143 = vector.shape_cast %142 : vector<1x128x128xbf16> to vector<128x128xbf16>
    %cst_76 = arith.constant dense<0.000000e+00> : vector<80x128xf32>
    %144 = tpu.matmul %141, %143, %cst_76 {dimension_numbers = #tpu.dot_dimension_numbers<[1], [0], [0], [1], [0, 0, 1, 1], [], []>} : vector<80x128xbf16>, vector<128x128xbf16>, vector<80x128xf32> -> vector<80x128xf32>
    %145 = arith.addf %140, %144 : vector<80x128xf32>
    %146 = vector.extract_strided_slice %43 {offsets = [12, 0], sizes = [80, 128], strides = [1, 1]} : vector<104x128xbf16> to vector<80x128xbf16>
    %c13 = arith.constant 13 : index
    %c0_77 = arith.constant 0 : index
    %c0_78 = arith.constant 0 : index
    %147 = vector.load %arg4[%c13, %c0_77, %c0_78] : memref<16x128x128xbf16, #tpu.memory_space<vmem>>, vector<1x128x128xbf16>
    %148 = vector.shape_cast %147 : vector<1x128x128xbf16> to vector<128x128xbf16>
    %cst_79 = arith.constant dense<0.000000e+00> : vector<80x128xf32>
    %149 = tpu.matmul %146, %148, %cst_79 {dimension_numbers = #tpu.dot_dimension_numbers<[1], [0], [0], [1], [0, 0, 1, 1], [], []>} : vector<80x128xbf16>, vector<128x128xbf16>, vector<80x128xf32> -> vector<80x128xf32>
    %150 = arith.addf %145, %149 : vector<80x128xf32>
    %151 = vector.extract_strided_slice %43 {offsets = [21, 0], sizes = [80, 128], strides = [1, 1]} : vector<104x128xbf16> to vector<80x128xbf16>
    %c14 = arith.constant 14 : index
    %c0_80 = arith.constant 0 : index
    %c0_81 = arith.constant 0 : index
    %152 = vector.load %arg4[%c14, %c0_80, %c0_81] : memref<16x128x128xbf16, #tpu.memory_space<vmem>>, vector<1x128x128xbf16>
    %153 = vector.shape_cast %152 : vector<1x128x128xbf16> to vector<128x128xbf16>
    %cst_82 = arith.constant dense<0.000000e+00> : vector<80x128xf32>
    %154 = tpu.matmul %151, %153, %cst_82 {dimension_numbers = #tpu.dot_dimension_numbers<[1], [0], [0], [1], [0, 0, 1, 1], [], []>} : vector<80x128xbf16>, vector<128x128xbf16>, vector<80x128xf32> -> vector<80x128xf32>
    %155 = arith.addf %150, %154 : vector<80x128xf32>
    %156 = vector.extract_strided_slice %43 {offsets = [22, 0], sizes = [80, 128], strides = [1, 1]} : vector<104x128xbf16> to vector<80x128xbf16>
    %c15 = arith.constant 15 : index
    %c0_83 = arith.constant 0 : index
    %c0_84 = arith.constant 0 : index
    %157 = vector.load %arg4[%c15, %c0_83, %c0_84] : memref<16x128x128xbf16, #tpu.memory_space<vmem>>, vector<1x128x128xbf16>
    %158 = vector.shape_cast %157 : vector<1x128x128xbf16> to vector<128x128xbf16>
    %cst_85 = arith.constant dense<0.000000e+00> : vector<80x128xf32>
    %159 = tpu.matmul %156, %158, %cst_85 {dimension_numbers = #tpu.dot_dimension_numbers<[1], [0], [0], [1], [0, 0, 1, 1], [], []>} : vector<80x128xbf16>, vector<128x128xbf16>, vector<80x128xf32> -> vector<80x128xf32>
    %160 = arith.addf %155, %159 : vector<80x128xf32>
    %161 = vector.extract_strided_slice %160 {offsets = [0, 0], sizes = [80, 3], strides = [1, 1]} : vector<80x128xf32> to vector<80x3xf32>
    %cst_86 = arith.constant 0.000000e+00 : f32
    %162 = vector.broadcast %cst_86 : f32 to vector<80x3xf32>
    %163 = arith.subf %162, %161 : vector<80x3xf32>
    %164 = math.exp %163 : vector<80x3xf32>
    %cst_87 = arith.constant 1.000000e+00 : f32
    %165 = vector.broadcast %cst_87 : f32 to vector<80x3xf32>
    %166 = arith.addf %165, %164 : vector<80x3xf32>
    %cst_88 = arith.constant 1.000000e+00 : f32
    %167 = vector.broadcast %cst_88 : f32 to vector<80x3xf32>
    %168 = arith.divf %167, %166 : vector<80x3xf32>
    %c0_89 = arith.constant 0 : index
    %c3_90 = arith.constant 3 : index
    %c0_91 = arith.constant 0 : index
    %c0_92 = arith.constant 0 : index
    %169 = vector.load %arg5[%c0_89, %c3_90, %c0_91, %c0_92] : memref<1x4x80x3xf32, #tpu.memory_space<vmem>>, vector<1x1x80x3xf32>
    %170 = vector.shape_cast %169 : vector<1x1x80x3xf32> to vector<80x3xf32>
    %171 = vector.shape_cast %168 : vector<80x3xf32> to vector<1x1x80x3xf32>
    tpu.vector_store %arg5[%c0_89, %c3_90, %c0_91, %c0_92], %171 {strides = array<i32>} : memref<1x4x80x3xf32, #tpu.memory_space<vmem>>, vector<1x1x80x3xf32>,
    return
  }
  func.func @transform_0(%arg0: i32) -> (i32, i32, i32) {
    %c0_i32 = arith.constant 0 : i32
    %c0_i32_0 = arith.constant 0 : i32
    %c0_i32_1 = arith.constant 0 : i32
    return %arg0, %c0_i32, %c0_i32_0 : i32, i32, i32
  }
  func.func @transform_1(%arg0: i32) -> (i32, i32) {
    %c0_i32 = arith.constant 0 : i32
    %c0_i32_0 = arith.constant 0 : i32
    %c0_i32_1 = arith.constant 0 : i32
    return %c0_i32, %c0_i32_0 : i32, i32
  }
  func.func @transform_2(%arg0: i32) -> (i32, i32) {
    %c0_i32 = arith.constant 0 : i32
    %c0_i32_0 = arith.constant 0 : i32
    %c0_i32_1 = arith.constant 0 : i32
    return %c0_i32, %c0_i32_0 : i32, i32
  }
  func.func @transform_3(%arg0: i32) -> (i32, i32, i32) {
    %c0_i32 = arith.constant 0 : i32
    %c0_i32_0 = arith.constant 0 : i32
    %c0_i32_1 = arith.constant 0 : i32
    %c0_i32_2 = arith.constant 0 : i32
    return %c0_i32, %c0_i32_0, %c0_i32_1 : i32, i32, i32
  }
  func.func @transform_4(%arg0: i32) -> (i32, i32, i32, i32) {
    %c0_i32 = arith.constant 0 : i32
    %c0_i32_0 = arith.constant 0 : i32
    %c0_i32_1 = arith.constant 0 : i32
    %c0_i32_2 = arith.constant 0 : i32
    return %arg0, %c0_i32, %c0_i32_0, %c0_i32_1 : i32, i32, i32, i32
  }
}

</mosaic_0001>

<bundles_post_ra>
// kernel: dcgan_g_forward.3
= control target key start
LH: loop header
LB: loop body
LE: loop exit
PB: predicated region body
PF: predicated region fallthrough
CT: control target
= control target key end

     0   :  { %v247_v1 = vmov 0   ;;  %s339_s1 = inlined_call_operand.vmem [shape: bf16[128,256], index: 1, kind: input, shape index: {}]   ;;  %s340_s0 = inlined_call_operand.vmem [shape: bf16[8,128], index: 0, kind: input, shape index: {}]   ;;  %s341_s2 = inlined_call_operand.vmem [shape: bf16[8,256], index: 2, kind: output, shape index: {0}]   ;;  %s342_s3 = inlined_call_operand.vmem [shape: f32[1,8,256], index: 3, kind: output, shape index: {1}]   ;;  %s343_s4 = inlined_call_operand.vmem [shape: f32[1,8,256], index: 4, kind: output, shape index: {2}]  }
   0x1   :  { %v223_v0 = vld [vmem:[%s339_s1 + $0x74] ss:$8 sps:$4 sm:$0xff]   ;;  %144 = vmatprep.mubr.bf16.mxu0 %v247_v1  ;;  %v225_v2 = vld [vmem:[%s339_s1 + $0x70] ss:$8 sps:$4 sm:$0xff]   ;;  %v226_v3 = vld [vmem:[%s339_s1 + $0x64] ss:$8 sps:$4 sm:$0xff]  }
   0x2   :  { %112 = vmatprep.subr.bf16.mxu0 %v223_v0  ;;  %v228_v4 = vld [vmem:[%s339_s1 + $0x60] ss:$8 sps:$4 sm:$0xff]   ;;  %v229_v5 = vld [vmem:[%s339_s1 + $0x54] ss:$8 sps:$4 sm:$0xff]   ;;  %v231_v6 = vld [vmem:[%s339_s1 + $0x50] ss:$8 sps:$4 sm:$0xff]  }
   0x3   :  { %113 = vmatpush1.bf16.msra.mxu0 %v225_v2  ;;  %v232_v7 = vld [vmem:[%s339_s1 + $0x44] ss:$8 sps:$4 sm:$0xff]   ;;  %v234_v8 = vld [vmem:[%s339_s1 + $0x40] ss:$8 sps:$4 sm:$0xff]   ;;  %v235_v9 = vld [vmem:[%s339_s1 + $0x34] ss:$8 sps:$4 sm:$0xff]  }
   0x4   :  { %114 = vmatprep.subr.bf16.mxu0 %v226_v3  ;;  %v237_v10 = vld [vmem:[%s339_s1 + $0x30] ss:$8 sps:$4 sm:$0xff]   ;;  %v238_v11 = vld [vmem:[%s339_s1 + $0x24] ss:$8 sps:$4 sm:$0xff]   ;;  %v240_v12 = vld [vmem:[%s339_s1 + $0x20] ss:$8 sps:$4 sm:$0xff]  }
   0x5   :  { %v241_v13 = vld [vmem:[%s339_s1 + $0x14] ss:$8 sps:$4 sm:$0xff]   ;;  %v243_v14 = vld [vmem:[%s339_s1 + $0x10] ss:$8 sps:$4 sm:$0xff]   ;;  %v244_v15 = vld [vmem:[%s339_s1 + $0x4] ss:$8 sps:$4 sm:$0xff]  }
   0x6   :  { %v246_v16 = vld [vmem:[%s339_s1] ss:$8 sps:$4 sm:$0xff]  }
   0x7   :  { %115 = vmatpush1.bf16.msra.mxu0 %v228_v4  ;;  %v15_v17 = vld [vmem:[%s340_s0] sm:$0xf] }
   0x8   :  { %116 = vmatprep.subr.bf16.mxu0 %v229_v5 }
   0xb   :  { %117 = vmatpush1.bf16.msra.mxu0 %v231_v6 }
   0xc   :  { %118 = vmatprep.subr.bf16.mxu0 %v232_v7 }
   0xf   :  { %119 = vmatpush1.bf16.msra.mxu0 %v234_v8 }
  0x10   :  { %120 = vmatprep.subr.bf16.mxu0 %v235_v9 }
  0x13   :  { %121 = vmatpush1.bf16.msra.mxu0 %v237_v10 }
  0x14   :  { %122 = vmatprep.subr.bf16.mxu0 %v238_v11 }
  0x17   :  { %123 = vmatpush1.bf16.msra.mxu0 %v240_v12 }
  0x18   :  { %124 = vmatprep.subr.bf16.mxu0 %v241_v13 }
  0x1b   :  { %125 = vmatpush1.bf16.msra.mxu0 %v243_v14 }
  0x1c   :  { %126 = vmatprep.subr.bf16.mxu0 %v244_v15 }
  0x1f   :  { %127 = vmatpush1.bf16.msra.mxu0 %v246_v16 }
  0x22   :  { %145 = vmatmul.mubr.bf16.vlgmr.msra.gmra.mxu0 %v15_v17 }
  0xe2   :  { %v146_v18 = vpop.f32.mrf.mxu0 }
  0xe3   :  { %v162_v19 = vrot.slane %v146_v18, 4  ;;  %v174_v20 = vmul.f32 %v146_v18, %v146_v18 }
  0xe4   :  { %v148_v21 = vpop.f32.mrf.mxu0 }
  0xe5   :  { %v163_v22 = vadd.f32 %v162_v19, %v146_v18  ;;  %v176_v23 = vrot.slane %v174_v20, 4  ;;  %v221_v24 = vpack.c.bf16 %v148_v21, %v146_v18  ;;  %v168_v25 = vrot.slane %v148_v21, 4 }
  0xe6   :  { %v175_v26 = vmul.f32 %v148_v21, %v148_v21  ;;  %v150_v27 = vpop.f32.mrf.mxu0 }
  0xe7   :  { %v164_v28 = vrot.slane %v163_v22, 2  ;;  %v177_v29 = vadd.f32 %v176_v23, %v174_v20  ;;  %161 = vst [vmem:[%s341_s2] sm:$0xff] %v221_v24  ;;  %v169_v30 = vadd.f32 %v168_v25, %v148_v21 }
  0xe8   :  { %v182_v31 = vrot.slane %v175_v26, 4  ;;  %v151_v32 = vpop.f32.mrf.mxu0 }
  0xe9   :  { %v165_v33 = vadd.f32 %v164_v28, %v163_v22  ;;  %v178_v34 = vrot.slane %v177_v29, 2  ;;  %v170_v35 = vrot.slane %v169_v30, 2 }
  0xea   :  { %v183_v36 = vadd.f32 %v182_v31, %v175_v26 }
  0xeb   :  { %v166_v37 = vrot.slane %v165_v33, 1  ;;  %v179_v38 = vadd.f32 %v178_v34, %v177_v29  ;;  %v171_v39 = vadd.f32 %v170_v35, %v169_v30 }
  0xec   :  { %v184_v40 = vrot.slane %v183_v36, 2 }
  0xed   :  { %v167_v41 = vadd.f32 %v166_v37, %v165_v33  ;;  %v180_v42 = vrot.slane %v179_v38, 1  ;;  %v172_v43 = vrot.slane %v171_v39, 1 }
  0xee   :  { %v185_v44 = vadd.f32 %v184_v40, %v183_v36 }
  0xef   :  { %v181_v45 = vadd.f32 %v180_v42, %v179_v38  ;;  %188 = vst [vmem:[%s342_s3] sm:$0xff] %v167_v41  ;;  %v173_v46 = vadd.f32 %v172_v43, %v171_v39 }
  0xf0   :  { %v186_v47 = vrot.slane %v185_v44, 1 }
  0xf1   :  { %190 = vst [vmem:[%s343_s4] sm:$0xff] %v181_v45  ;;  %189 = vst [vmem:[%s342_s3 + $0x8] sm:$0xff] %v173_v46 }
  0xf2   :  { %v187_v48 = vadd.f32 %v186_v47, %v185_v44 }
  0xf4   :  { %191 = vst [vmem:[%s343_s4 + $0x8] sm:$0xff] %v187_v48 }

// kernel: dcgan_g_forward.4
= control target key start
LH: loop header
LB: loop body
LE: loop exit
PB: predicated region body
PF: predicated region fallthrough
CT: control target
= control target key end

     0   :  { %s3758_s21 = smov 0   ;;  %s4420_s0 = inlined_call_operand.vmem [shape: bf16[2,40,128], index: 0, kind: input, shape index: {}]   ;;  %s4421_s1 = inlined_call_operand.vmem [shape: f32[1,128], index: 1, kind: input, shape index: {}]   ;;  %s4422_s2 = inlined_call_operand.vmem [shape: f32[1,128], index: 2, kind: input, shape index: {}]   ;;  %s4423_s3 = inlined_call_operand.vmem [shape: bf16[16,128,128], index: 3, kind: input, shape index: {}]   ;;  %s4424_s4 = inlined_call_operand.vmem [shape: bf16[2,24,512], index: 4, kind: output, shape index: {0}]   ;;  %s4425_s5 = inlined_call_operand.vmem [shape: f32[2,8,512], index: 5, kind: output, shape index: {1}]   ;;  %s4426_s6 = inlined_call_operand.vmem [shape: f32[2,8,512], index: 6, kind: output, shape index: {2}]  }
   0x1 LB: > { %s2661_s22 = sadd.s32 4294967295, %s3719_s21   ;;  %p2665_p0 = scmp.ge.s32.totalorder %s3719_s21, 1  ;;  %s3719_s21 = sphi %s3758_s21, %s17_s21  }
   0x2   : > { %p217_p1 = scmp.lt.s32.totalorder %s3719_s21, 3 }
   0x4   : > { %p218_p2 = pnand %p2665_p0, %p217_p1 }
   0x5   : > { %p257_p3 = scmp.lt.s32.totalorder (!%p218_p2), %s2661_s22, 1 }
   0x6   : > { %221 = sbr.rel (%p218_p2) target bundleno = 491 (0x1eb), region = 36 }
   0xb   : > { %v3585_v0 = vld [vmem:[%s4423_s3 + $0x78] sm:$0xff]   ;;  %v3587_v2 = vld [vmem:[%s4423_s3 + $0x70] sm:$0xff]   ;;  %v3589_v4 = vld [vmem:[%s4423_s3 + $0x68] sm:$0xff]   ;;  %s4434_s22 = smov (!%p257_p3, %s2661_s22), 1  ;;  %v317_v6 = vlaneseq }
   0xc   : > { %v3586_v1 = vld [vmem:[%s4423_s3 + $0x38] sm:$0xff]   ;;  %3245 = vmatprep.subr.bf16.mxu0 %v3585_v0  ;;  %v3588_v3 = vld [vmem:[%s4423_s3 + $0x30] sm:$0xff]   ;;  %v3590_v5 = vld [vmem:[%s4423_s3 + $0x28] sm:$0xff]   ;;  %s3565_s15 = smul.u32 20, %s4434_s22  ;;  %s3062_s27 = sshll.u32 %s4434_s22, 5 }
   0xd   : > { %3265 = vmatprep.subr.bf16.mxu1 %v3586_v1  ;;  %3246 = vmatpush3.bf16.msra.mxu0 %v3585_v0  ;;  %v3591_v7 = vld [vmem:[%s4423_s3 + $0x60] sm:$0xff]   ;;  %v3793_v9 = vshrl.u32 %v317_v6, 7  ;;  %v3593_v10 = vld [vmem:[%s4423_s3 + $0x58] sm:$0xff]   ;;  %v3595_v14 = vld [vmem:[%s4423_s3 + $0x50] sm:$0xff]   ;;  %s3566_s23 = smul.u32 48, %s4434_s22  ;;  %s4375_s30 = scalar_lea.vmem %s4425_s5, %s3062_s27 }
   0xe   : > { %3266 = vmatpush3.bf16.msra.mxu1 %v3586_v1  ;;  %3247 = vmatprep.subr.bf16.mxu0 %v3587_v2  ;;  %v3592_v8 = vld [vmem:[%s4423_s3 + $0x20] sm:$0xff]   ;;  %v3594_v11 = vld [vmem:[%s4423_s3 + $0x18] sm:$0xff]   ;;  %s261_s24 = scalar_lea.vmem %s4420_s0, %s3565_s15  ;;  %v3596_v21 = vld [vmem:[%s4423_s3 + $0x10] sm:$0xff]   ;;  %s4380_s9 = scalar_lea.vmem %s4426_s6, %s3062_s27 }
   0xf   : > { %3267 = vmatprep.subr.bf16.mxu1 %v3588_v3  ;;  %v319_v12 = vadd.s32 8, %v3793_v9  ;;  %v320_v13 = vadd.s32 16, %v3793_v9  ;;  %v3810_v15 = vadd.s32 24, %v3793_v9  ;;  %v3077_v16 = vld [vmem:[%s261_s24] sm:$0xff]   ;;  %v3084_v17 = vld [vmem:[%s261_s24 + $0x8] sm:$0xff]   ;;  %vm403_vm0 = vcmp.ge.s32.totalorder %v3793_v9, 6  ;;  %s4359_s26 = scalar_lea.vmem %s4424_s4, %s3566_s23 }
  0x10   : > { %v2672_v18 = vld [vmem:[%s4421_s1] ss:$0 sm:$0xff]  ;;  %v3816_v19 = vmul.u32.u64.low 2863311531, %v3793_v9  ;;  %v3817_v20 = vmul.u32.u64.high 2863311531, %v3793_v9, %v3816_v19  ;;  %v3078_v22 = vunpack.c.l.bf16 %v3077_v16  ;;  %v3079_v23 = vunpack.c.h.bf16 %v3077_v16  ;;  %v3597_v32 = vld [vmem:[%s4423_s3 + $0x48] sm:$0xff]   ;;  %v3861_v59 = vld [vmem:[%s4423_s3 + $0xb8] sm:$0xff]  }
  0x11   : > { %3248 = vmatpush3.bf16.msra.mxu0 %v3587_v2  ;;  %v2673_v24 = vld [vmem:[%s4422_s2] ss:$0 sm:$0xff]  ;;  %v3825_v25 = vmul.u32.u64.low 2863311531, %v319_v12  ;;  %v3826_v26 = vmul.u32.u64.high 2863311531, %v319_v12, %v3825_v25  ;;  %v3828_v27 = vmul.u32.u64.low 2863311531, %v320_v13  ;;  %v3829_v28 = vmul.u32.u64.high 2863311531, %v320_v13, %v3828_v27 }
  0x12   : > { %3268 = vmatpush3.bf16.msra.mxu1 %v3588_v3  ;;  %3249 = vmatprep.subr.bf16.mxu0 %v3589_v4  ;;  %v3082_v29 = vunpack.c.l.bf16 %v3084_v17  ;;  %v3083_v30 = vunpack.c.h.bf16 %v3084_v17  ;;  %v295_v31 = vmul.f32 %v3078_v22, %v2672_v18  ;;  %v3598_v33 = vld [vmem:[%s4423_s3 + $0x8] sm:$0xff]   ;;  %v329_v34 = vshrl.u32 %v3817_v20, 2  ;;  %v3599_v44 = vld [vmem:[%s4423_s3 + $0x40] sm:$0xff]   ;;  %v3602_v63 = vld [vmem:[%s4423_s3 + $0xf8] sm:$0xff]  }
  0x13   : > { %3269 = vmatprep.subr.bf16.mxu1 %v3590_v5  ;;  %v3839_v35 = vmul.u32.u64.low 2863311531, %v3810_v15  ;;  %v3840_v36 = vmul.u32.u64.high 2863311531, %v3810_v15, %v3839_v35  ;;  %v296_v37 = vmul.f32 %v3079_v23, %v2672_v18  ;;  %v340_v40 = vshrl.u32 %v3826_v26, 2  ;;  %v3600_v49 = vld [vmem:[%s4423_s3] sm:$0xff]   ;;  %v3604_v17 = vld [vmem:[%s4423_s3 + $0xf0] sm:$0xff]   ;;  %v3606_v25 = vld [vmem:[%s4423_s3 + $0xe8] sm:$0xff]  }
  0x14   : > { %v3842_v38 = vadd.f32 %v2673_v24, %v295_v31  ;;  %v330_v39 = vmul.u32 6, %v329_v34  ;;  %v351_v41 = vshrl.u32 %v3829_v28, 2  ;;  %v297_v42 = vmul.f32 %v3082_v29, %v2672_v18 }
  0x15   : > { %3250 = vmatpush3.bf16.msra.mxu0 %v3589_v4  ;;  %v298_v43 = vmul.f32 %v3083_v30, %v2672_v18  ;;  %vm411_vm1 = vcmp.lt.s32.totalorder %v3810_v15, 30  ;;  %v341_v46 = vmul.u32 6, %v340_v40  ;;  %v362_v48 = vshrl.u32 %v3840_v36, 2 }
  0x16   : > { %3270 = vmatpush3.bf16.msra.mxu1 %v3590_v5  ;;  %3251 = vmatprep.subr.bf16.mxu0 %v3591_v7  ;;  %v331_v45 = vsub.s32 %v3793_v9, %v330_v39  ;;  %v352_v47 = vmul.u32 6, %v351_v41  ;;  %v308_v50 = vadd.f32 %v2673_v24, %v296_v37  ;;  %v312_v51 = vmax.f32 %v3842_v38, 0.0  ;;  %v3603_v37 = vld [vmem:[%s4423_s3 + $0xb0] sm:$0xff]   ;;  %v3608_v39 = vld [vmem:[%s4423_s3 + $0xe0] sm:$0xff]   ;;  %v3605_v41 = vld [vmem:[%s4423_s3 + $0xa8] sm:$0xff]  }
  0x17   : > { %3271 = vmatprep.subr.bf16.mxu1 %v3592_v8  ;;  %v342_v52 = vsub.s32 %v319_v12, %v341_v46  ;;  %v363_v54 = vmul.u32 6, %v362_v48  ;;  %v309_v55 = vadd.f32 %v2673_v24, %v297_v42  ;;  %v310_v56 = vadd.f32 %v2673_v24, %v298_v43  ;;  %v3610_v42 = vld [vmem:[%s4423_s3 + $0xd8] sm:$0xff]   ;;  %v3607_v43 = vld [vmem:[%s4423_s3 + $0xa0] sm:$0xff]   ;;  %v3614_v46 = vld [vmem:[%s4423_s3 + $0xc8] sm:$0xff]  }
  0x18   : > { %v353_v53 = vsub.s32 %v320_v13, %v352_v47  ;;  %vm378_vm2 = vcmp.ne.s32.totalorder %v331_v45, 0  ;;  %vm383_vm3 = vcmp.lt.s32.totalorder %v331_v45, 0  ;;  %v393_v57 = vadd.s32 6, %v331_v45  ;;  %v3611_v47 = vld [vmem:[%s4423_s3 + $0x90] sm:$0xff]   ;;  %v3616_v48 = vld [vmem:[%s4423_s3 + $0xc0] sm:$0xff]   ;;  %v3625_v9 = vld [vmem:[%s4423_s3 + $0x158] sm:$0xff]  }
  0x19   : > { %3252 = vmatpush3.bf16.msra.mxu0 %v3591_v7  ;;  %v364_v58 = vsub.s32 %v3810_v15, %v363_v54  ;;  %vm379_vm4 = vcmp.ne.s32.totalorder %v342_v52, 0  ;;  %vm384_vm6 = vcmp.lt.s32.totalorder %v342_v52, 0  ;;  %vm388_vm7 = vmand %vm383_vm3, %vm378_vm2  ;;  %v394_v60 = vadd.s32 6, %v342_v52  ;;  %v3623_v7 = vld [vmem:[%s4423_s3 + $0x160] sm:$0xff]  }
  0x1a   : > { %3272 = vmatpush3.bf16.msra.mxu1 %v3592_v8  ;;  %3253 = vmatprep.subr.bf16.mxu0 %v3593_v10  ;;  %vm380_vm5 = vcmp.ne.s32.totalorder %v353_v53, 0  ;;  %vm385_vm8 = vcmp.lt.s32.totalorder %v353_v53, 0  ;;  %vm389_vm9 = vmand %vm384_vm6, %vm379_vm4  ;;  %v395_v61 = vadd.s32 6, %v353_v53  ;;  %v3863_v62 = vsel %vm388_vm7, %v393_v57, %v331_v45  ;;  %v3609_v45 = vld [vmem:[%s4423_s3 + $0x98] sm:$0xff]   ;;  %v3622_v57 = vld [vmem:[%s4423_s3 + $0x128] sm:$0xff]  }
  0x1b   : > { %3273 = vmatprep.subr.bf16.mxu1 %v3594_v11  ;;  %vm381_vm10 = vcmp.ne.s32.totalorder %v364_v58, 0  ;;  %vm386_vm11 = vcmp.lt.s32.totalorder %v364_v58, 0  ;;  %vm390_vm12 = vmand %vm385_vm8, %vm380_vm5  ;;  %v396_v0 = vadd.s32 6, %v364_v58  ;;  %vm418_vm13 = vcmp.ge.s32.totalorder %v3863_v62, 1 }
  0x1c   : > { %v313_v1 = vmax.f32 %v308_v50, 0.0  ;;  %vm391_vm14 = vmand %vm386_vm11, %vm381_vm10  ;;  %v3869_v2 = vsel %vm389_vm9, %v394_v60, %v342_v52  ;;  %v3871_v3 = vsel %vm390_vm12, %v395_v61, %v353_v53  ;;  %vm428_vm15 = vcmp.le.s32.totalorder %v3863_v62, 4  ;;  %v3618_v50 = vld [vmem:[%s4423_s3 + $0x138] sm:$0xff]   ;;  %v3620_v52 = vld [vmem:[%s4423_s3 + $0x130] sm:$0xff]  }
  0x1d   : > { %3254 = vmatpush3.bf16.msra.mxu0 %v3593_v10  ;;  %v314_v4 = vmax.f32 %v309_v55, 0.0  ;;  %v401_v5 = vsel %vm391_vm14, %v396_v0, %v364_v58  ;;  %vm419_vm2 = vcmp.ge.s32.totalorder %v3869_v2, 1  ;;  %vm423_vm3 = vmand %vm403_vm0, %vm418_vm13  ;;  %vm429_vm4 = vcmp.le.s32.totalorder %v3869_v2, 4  ;;  %v3617_v53 = vld [vmem:[%s4423_s3 + $0x178] sm:$0xff]   ;;  %v3619_v60 = vld [vmem:[%s4423_s3 + $0x170] sm:$0xff]  }
  0x1e   : > { %3274 = vmatpush3.bf16.msra.mxu1 %v3594_v11  ;;  %3255 = vmatprep.subr.bf16.mxu0 %v3595_v14  ;;  %v315_v6 = vmax.f32 %v310_v56, 0.0  ;;  %vm420_vm5 = vcmp.ge.s32.totalorder %v3871_v3, 1  ;;  %vm421_vm6 = vcmp.ge.s32.totalorder %v401_v5, 1  ;;  %vm430_vm7 = vcmp.le.s32.totalorder %v3871_v3, 4  ;;  %vm3881_vm8 = vmand %vm423_vm3, %vm428_vm15  ;;  %v3627_v11 = vld [vmem:[%s4423_s3 + $0x150] sm:$0xff]  }
  0x1f   : > { %3275 = vmatprep.subr.bf16.mxu1 %v3596_v21  ;;  %vm426_vm9 = vmand %vm411_vm1, %vm421_vm6  ;;  %vm431_vm10 = vcmp.le.s32.totalorder %v401_v5, 4  ;;  %v448_v8 = vsel %vm3881_vm8, %v312_v51, 0.0  ;;  %v2707_v10 = vpack.c.bf16 %v313_v1, %v312_v51  ;;  %vm492_vm1 = vsmask.f32 7424  ;;  %v3615_v51 = vld [vmem:[%s4423_s3 + $0x80] sm:$0xff]  }
  0x20   : > { %vm3889_vm0 = vmand %vm419_vm2, %vm429_vm4  ;;  %v2710_v13 = vpack.c.bf16 %v315_v6, %v314_v4  ;;  %vm843_vm14 = vsmask.f32 4352  ;;  %vm721_vm2 = vcmask 1044480   ;;  %vm1032_vm3 = vcmask 1046528  }
  0x21   : > { %3256 = vmatpush3.bf16.msra.mxu0 %v3595_v14  ;;  %vm3893_vm11 = vmand %vm420_vm5, %vm430_vm7  ;;  %v449_v12 = vsel %vm3889_vm0, %v313_v1, 0.0  ;;  %vm1363_vm4 = vcmask 1043456   ;;  %vm1876_vm5 = vsmask.f32 1280  ;;  %vm1752_vm6 = vcmask 1041408  }
  0x22   : > { %3276 = vmatpush3.bf16.msra.mxu1 %v3596_v21  ;;  %3257 = vmatprep.subr.bf16.mxu0 %v3597_v32  ;;  %vm436_vm12 = vmand %vm426_vm9, %vm431_vm10  ;;  %v450_v14 = vsel %vm3893_vm11, %v314_v4, 0.0  ;;  %v3901_v15 = vpack.c.bf16 %v449_v12, %v448_v8  ;;  %v3621_v4 = vld [vmem:[%s4423_s3 + $0x168] sm:$0xff]   ;;  %v3628_v8 = vld [vmem:[%s4423_s3 + $0x110] sm:$0xff]   ;;  %vm2393_vm7 = vcmask 1040384   ;;  %vm456_vm9 = vcmp.lt.s32.totalorder %v3863_v62, 4 }
  0x23   : > { %3277 = vmatprep.subr.bf16.mxu1 %v3598_v33  ;;  %v451_v16 = vsel %vm436_vm12, %v315_v6, 0.0  ;;  %vm2706_vm13 = vmpackc.low %vm3889_vm0, %vm3881_vm8  ;;  %v3626_v6 = vld [vmem:[%s4423_s3 + $0x118] sm:$0xff]   ;;  %v3632_v12 = vld [vmem:[%s4423_s3 + $0x100] sm:$0xff]   ;;  %vm458_vm8 = vcmp.lt.s32.totalorder %v3871_v3, 4  ;;  %vm457_vm10 = vcmp.lt.s32.totalorder %v3869_v2, 4 }
  0x24   : > { %v3910_v18 = vpack.c.bf16 %v451_v16, %v450_v14  ;;  %v3913_v19 = vshrl.u32 %v3901_v15, 16  ;;  %v3916_v20 = vshll.u32 %v3901_v15, 16  ;;  %3281 = vmatprep.mubr.msk.bf16.mxu1 %vm2706_vm13, %v2707_v10  ;;  %vm2709_vm15 = vmpackc.low %vm436_vm12, %vm3893_vm11  ;;  %v722_v21 = vrot.slane %v3901_v15, 3  ;;  %v3630_v10 = vld [vmem:[%s4423_s3 + $0x108] sm:$0xff]   ;;  %v3634_v14 = vld [vmem:[%s4423_s3 + $0x1f8] sm:$0xff]  }
  0x25   : > { %3258 = vmatpush3.bf16.msra.mxu0 %v3597_v32  ;;  %v1033_v54 = vrot.slane %v3901_v15, 1  ;;  %v1364_v16 = vrot.slane %v3901_v15, 4 }
  0x26   : > { %3278 = vmatpush3.bf16.msra.mxu1 %v3598_v33  ;;  %3259 = vmatprep.subr.bf16.mxu0 %v3599_v44  ;;  %v498_v22 = vrot.slane %v3916_v20, 1  ;;  %v3923_v23 = vshll.u32 %v3910_v18, 16  ;;  %v3926_v24 = vshrl.u32 %v3910_v18, 16  ;;  %v3932_v26 = vrot.slane %v3910_v18, 3 }
  0x27   : > { %3279 = vmatprep.subr.bf16.mxu1 %v3600_v49  ;;  %v844_v27 = vrot.slane %v3913_v19, 3  ;;  %v845_v28 = vrot.slane %v3916_v20, 4  ;;  %v1034_v55 = vrot.slane %v3910_v18, 1  ;;  %v1877_v56 = vrot.slane %v3913_v19, 6 }
  0x28   : > { %v499_v29 = vor.u32 %v498_v22, %v3913_v19  ;;  %v503_v30 = vrot.slane %v3923_v23, 1  ;;  %v848_v31 = vrot.slane %v3923_v23, 4  ;;  %v847_v32 = vrot.slane %v3926_v24, 3  ;;  %v3631_v19 = vld [vmem:[%s4423_s3 + $0x140] sm:$0xff]   ;;  %v3633_v22 = vld [vmem:[%s4423_s3 + $0x1b8] sm:$0xff]  }
  0x29   : > { %3260 = vmatpush3.bf16.msra.mxu0 %v3599_v44  ;;  %v846_v33 = vor.u32 %v845_v28, %v844_v27  ;;  %v3951_v38 = vsel %vm721_vm2, %v722_v21, %v3932_v26  ;;  %v3612_v44 = vld [vmem:[%s4423_s3 + $0xd0] sm:$0xff]   ;;  %v1878_v58 = vrot.slane %v3916_v20, 7  ;;  %v1035_v61 = vsel %vm1032_vm3, %v1033_v54, %v1034_v55  ;;  %v3640_v27 = vld [vmem:[%s4423_s3 + $0x1e0] sm:$0xff]   ;;  %v3637_v28 = vld [vmem:[%s4423_s3 + $0x1a8] sm:$0xff]  }
  0x2a   : > { %3280 = vmatpush3.bf16.msra.mxu1 %v3600_v49  ;;  %3285 = vmatprep.subr.bf16.mxu0 %v3861_v59  ;;  %v504_v34 = vsel %vm492_vm1, %v499_v29, %v503_v30  ;;  %v3942_v35 = vor.u32 %v3926_v24, %v503_v30  ;;  %v3944_v36 = vor.u32 %v848_v31, %v847_v32  ;;  %v3613_v49 = vld [vmem:[%s4423_s3 + $0x88] sm:$0xff]   ;;  %v1880_v0 = vrot.slane %v3926_v24, 6  ;;  %v3636_v20 = vld [vmem:[%s4423_s3 + $0x1f0] sm:$0xff]   ;;  %v3642_v29 = vld [vmem:[%s4423_s3 + $0x1d8] sm:$0xff]  }
  0x2b   : > { %3305 = vmatprep.subr.bf16.mxu1 %v3602_v63  ;;  %3261 = vmatprep.mubr.bf16.mxu0 %v504_v34  ;;  %v1881_v1 = vrot.slane %v3923_v23, 7  ;;  %v3638_v23 = vld [vmem:[%s4423_s3 + $0x1e8] sm:$0xff]   ;;  %v3639_v30 = vld [vmem:[%s4423_s3 + $0x1a0] sm:$0xff]   ;;  %v3644_v31 = vld [vmem:[%s4423_s3 + $0x1d0] sm:$0xff]  }
  0x2c   : > { %3262 = vmatmul.mubr.bf16.vlgmr.msra.gmra.mxu0 %v3942_v35  ;;  %v3959_v40 = vsel %vm843_vm14, %v846_v33, %v3944_v36  ;;  %v3641_v32 = vld [vmem:[%s4423_s3 + $0x198] sm:$0xff]   ;;  %v3646_v33 = vld [vmem:[%s4423_s3 + $0x1c8] sm:$0xff]  }
  0x2d   : > { %3282 = vmatmul.mubr.msk.bf16.vlgmr.msra.gmra.mxu1 %vm2709_vm15, %v2710_v13  ;;  %3286 = vmatpush3.bf16.msra.mxu0 %v3861_v59  ;;  %v1879_v59 = vor.u32 %v1878_v58, %v1877_v56  ;;  %v4026_v5 = vor.u32 %v1881_v1, %v1880_v0  ;;  %v3629_v13 = vld [vmem:[%s4423_s3 + $0x148] sm:$0xff]   ;;  %v3663_v56 = vld [vmem:[%s4423_s3 + $0x240] sm:$0xff]   ;;  %v3665_v58 = vld [vmem:[%s4423_s3 + $0x2b8] sm:$0xff]  }
  0x2e   : > { %3306 = vmatpush3.bf16.msra.mxu1 %v3602_v63  ;;  %3301 = vmatprep.mubr.bf16.mxu0 %v3951_v38  ;;  %v3624_v63 = vld [vmem:[%s4423_s3 + $0x120] sm:$0xff]   ;;  %v3661_v54 = vld [vmem:[%s4423_s3 + $0x248] sm:$0xff]  }
  0x2f   : > { %3307 = vmatprep.subr.bf16.mxu1 %v3604_v17  ;;  %3287 = vmatprep.subr.bf16.mxu0 %v3603_v37  ;;  %v4078_v24 = vsel %vm1876_vm5, %v1879_v59, %v4026_v5  ;;  %v1753_v59 = vrot.slane %v3901_v15, 6  ;;  %v3672_v0 = vld [vmem:[%s4423_s3 + $0x2e0] sm:$0xff]   ;;  %v3669_v1 = vld [vmem:[%s4423_s3 + $0x2a8] sm:$0xff]  }
  0x30   : > { %3321 = vmatprep.mubr.bf16.mxu1 %v3959_v40 }
  0x31   : > { %3288 = vmatpush3.bf16.msra.mxu0 %v3603_v37  ;;  %v3645_v37 = vld [vmem:[%s4423_s3 + $0x188] sm:$0xff]  }
  0x32   : > { %3308 = vmatpush3.bf16.msra.mxu1 %v3604_v17  ;;  %3289 = vmatprep.subr.bf16.mxu0 %v3605_v41  ;;  %v4057_v17 = vrot.slane %v3910_v18, 4 }
  0x33   : > { %3309 = vmatprep.subr.bf16.mxu1 %v3606_v25 }
  0x34   : > { %v4066_v21 = vsel %vm1363_vm4, %v1364_v16, %v4057_v17  ;;  %v3677_v16 = vld [vmem:[%s4423_s3 + $0x288] sm:$0xff]  }
  0x35   : > { %3290 = vmatpush3.bf16.msra.mxu0 %v3605_v41  ;;  %v3647_v41 = vld [vmem:[%s4423_s3 + $0x180] sm:$0xff]  }
  0x36   : > { %3310 = vmatpush3.bf16.msra.mxu1 %v3606_v25  ;;  %3291 = vmatprep.subr.bf16.mxu0 %v3607_v43  ;;  %v3635_v25 = vld [vmem:[%s4423_s3 + $0x1b0] sm:$0xff]  }
  0x37   : > { %3311 = vmatprep.subr.bf16.mxu1 %v3608_v39 }
  0x39   : > { %3292 = vmatpush3.bf16.msra.mxu0 %v3607_v43  ;;  %v3649_v43 = vld [vmem:[%s4423_s3 + $0x278] sm:$0xff]  }
  0x3a   : > { %3312 = vmatpush3.bf16.msra.mxu1 %v3608_v39  ;;  %3293 = vmatprep.subr.bf16.mxu0 %v3609_v45  ;;  %v3650_v39 = vld [vmem:[%s4423_s3 + $0x238] sm:$0xff]  }
  0x3b   : > { %3313 = vmatprep.subr.bf16.mxu1 %v3610_v42 }
  0x3d   : > { %3294 = vmatpush3.bf16.msra.mxu0 %v3609_v45  ;;  %v3651_v45 = vld [vmem:[%s4423_s3 + $0x270] sm:$0xff]  }
  0x3e   : > { %3314 = vmatpush3.bf16.msra.mxu1 %v3610_v42  ;;  %3295 = vmatprep.subr.bf16.mxu0 %v3611_v47  ;;  %v3652_v42 = vld [vmem:[%s4423_s3 + $0x230] sm:$0xff]  }
  0x3f   : > { %3315 = vmatprep.subr.bf16.mxu1 %v3612_v44 }
  0x41   : > { %3296 = vmatpush3.bf16.msra.mxu0 %v3611_v47  ;;  %v3658_v47 = vld [vmem:[%s4423_s3 + $0x218] sm:$0xff]  }
  0x42   : > { %3316 = vmatpush3.bf16.msra.mxu1 %v3612_v44  ;;  %3297 = vmatprep.subr.bf16.mxu0 %v3613_v49  ;;  %v3654_v44 = vld [vmem:[%s4423_s3 + $0x228] sm:$0xff]  }
  0x43   : > { %3317 = vmatprep.subr.bf16.mxu1 %v3614_v46 }
  0x45   : > { %3298 = vmatpush3.bf16.msra.mxu0 %v3613_v49  ;;  %v3660_v49 = vld [vmem:[%s4423_s3 + $0x210] sm:$0xff]  }
  0x46   : > { %3318 = vmatpush3.bf16.msra.mxu1 %v3614_v46  ;;  %3299 = vmatprep.subr.bf16.mxu0 %v3615_v51  ;;  %v3656_v46 = vld [vmem:[%s4423_s3 + $0x220] sm:$0xff]  }
  0x47   : > { %3319 = vmatprep.subr.bf16.mxu1 %v3616_v48 }
  0x49   : > { %3300 = vmatpush3.bf16.msra.mxu0 %v3615_v51  ;;  %v3662_v51 = vld [vmem:[%s4423_s3 + $0x208] sm:$0xff]  }
  0x4a   : > { %3320 = vmatpush3.bf16.msra.mxu1 %v3616_v48  ;;  %3325 = vmatprep.subr.bf16.mxu0 %v3617_v53  ;;  %v3655_v48 = vld [vmem:[%s4423_s3 + $0x260] sm:$0xff]  }
  0x4b   : > { %3345 = vmatprep.subr.bf16.mxu1 %v3618_v50 }
  0x4c   : > { %3302 = vmatmul.mubr.bf16.vlgmr.msra.gmra.mxu0 %v3932_v26 }
  0x4d   : > { %3322 = vmatmul.mubr.bf16.vlgmr.msra.gmra.mxu1 %v3944_v36  ;;  %3326 = vmatpush3.bf16.msra.mxu0 %v3617_v53  ;;  %v3664_v53 = vld [vmem:[%s4423_s3 + $0x200] sm:$0xff]  }
  0x4e   : > { %3346 = vmatpush3.bf16.msra.mxu1 %v3618_v50  ;;  %3361 = vmatprep.mubr.bf16.mxu1 %v504_v34  ;;  %v3643_v34 = vld [vmem:[%s4423_s3 + $0x190] sm:$0xff]   ;;  %v3657_v50 = vld [vmem:[%s4423_s3 + $0x258] sm:$0xff]  }
  0x4f   : > { %3347 = vmatprep.subr.bf16.mxu1 %v3620_v52  ;;  %3341 = vmatprep.mubr.bf16.mxu0 %v1035_v61  ;;  %v3670_v61 = vld [vmem:[%s4423_s3 + $0x2e8] sm:$0xff]  }
  0x50   : > { %3327 = vmatprep.subr.bf16.mxu0 %v3619_v60 }
  0x51   : > { %3328 = vmatpush3.bf16.msra.mxu0 %v3619_v60  ;;  %v1754_v60 = vrot.slane %v3910_v18, 6 }
  0x52   : > { %3348 = vmatpush3.bf16.msra.mxu1 %v3620_v52  ;;  %3329 = vmatprep.subr.bf16.mxu0 %v3621_v4  ;;  %v3659_v52 = vld [vmem:[%s4423_s3 + $0x250] sm:$0xff]  }
  0x53   : > { %3349 = vmatprep.subr.bf16.mxu1 %v3622_v57 }
  0x55   : > { %3330 = vmatpush3.bf16.msra.mxu0 %v3621_v4  ;;  %v3674_v4 = vld [vmem:[%s4423_s3 + $0x2d8] sm:$0xff]  }
  0x56   : > { %3350 = vmatpush3.bf16.msra.mxu1 %v3622_v57  ;;  %3331 = vmatprep.subr.bf16.mxu0 %v3623_v7  ;;  %v3668_v57 = vld [vmem:[%s4423_s3 + $0x2f0] sm:$0xff]  }
  0x57   : > { %3351 = vmatprep.subr.bf16.mxu1 %v3624_v63 }
  0x59   : > { %3332 = vmatpush3.bf16.msra.mxu0 %v3623_v7  ;;  %v3676_v7 = vld [vmem:[%s4423_s3 + $0x2d0] sm:$0xff]  }
  0x5a   : > { %3352 = vmatpush3.bf16.msra.mxu1 %v3624_v63  ;;  %3333 = vmatprep.subr.bf16.mxu0 %v3625_v9  ;;  %v1755_v63 = vsel %vm1752_vm6, %v1753_v59, %v1754_v60  ;;  %v3710_v59 = vld [vmem:[%s4423_s3 + $0x3c8] sm:$0xff]  }
  0x5b   : > { %3353 = vmatprep.subr.bf16.mxu1 %v3626_v6 }
  0x5d   : > { %3334 = vmatpush3.bf16.msra.mxu0 %v3625_v9  ;;  %v3678_v9 = vld [vmem:[%s4423_s3 + $0x2c8] sm:$0xff]  }
  0x5e   : > { %3354 = vmatpush3.bf16.msra.mxu1 %v3626_v6  ;;  %3335 = vmatprep.subr.bf16.mxu0 %v3627_v11  ;;  %v3671_v6 = vld [vmem:[%s4423_s3 + $0x2a0] sm:$0xff]  }
  0x5f   : > { %3355 = vmatprep.subr.bf16.mxu1 %v3628_v8 }
  0x61   : > { %3336 = vmatpush3.bf16.msra.mxu0 %v3627_v11  ;;  %v3721_v11 = vmov 0  }
  0x62   : > { %3356 = vmatpush3.bf16.msra.mxu1 %v3628_v8  ;;  %3337 = vmatprep.subr.bf16.mxu0 %v3629_v13  ;;  %v3673_v8 = vld [vmem:[%s4423_s3 + $0x298] sm:$0xff]  }
  0x63   : > { %3357 = vmatprep.subr.bf16.mxu1 %v3630_v10 }
  0x65   : > { %3338 = vmatpush3.bf16.msra.mxu0 %v3629_v13  ;;  %v1890_v13 = vrot.slane %v3721_v11, 7 }
  0x66   : > { %3358 = vmatpush3.bf16.msra.mxu1 %v3630_v10  ;;  %3339 = vmatprep.subr.bf16.mxu0 %v3631_v19  ;;  %v3675_v10 = vld [vmem:[%s4423_s3 + $0x290] sm:$0xff]  }
  0x67   : > { %3359 = vmatprep.subr.bf16.mxu1 %v3632_v12 }
  0x69   : > { %3340 = vmatpush3.bf16.msra.mxu0 %v3631_v19 }
  0x6a   : > { %3360 = vmatpush3.bf16.msra.mxu1 %v3632_v12  ;;  %3365 = vmatprep.subr.bf16.mxu0 %v3633_v22  ;;  %v1887_v12 = vrot.slane %v3721_v11, 6 }
  0x6b   : > { %3385 = vmatprep.subr.bf16.mxu1 %v3634_v14 }
  0x6c   : > { %3342 = vmatmul.mubr.bf16.vlgmr.msra.gmra.mxu0 %v1034_v55  ;;  %v3666_v55 = vld [vmem:[%s4423_s3 + $0x2f8] sm:$0xff]   ;;  %v1891_v19 = vor.u32 %v1890_v13, %v1887_v12 }
  0x6d   : > { %3362 = vmatmul.mubr.bf16.vlgmr.msra.gmra.mxu1 %v3942_v35  ;;  %3366 = vmatpush3.bf16.msra.mxu0 %v3633_v22  ;;  %v3648_v35 = vld [vmem:[%s4423_s3 + $0x1c0] sm:$0xff]  }
  0x6e   : > { %3386 = vmatpush3.bf16.msra.mxu1 %v3634_v14  ;;  %3401 = vmatprep.mubr.bf16.mxu1 %v4066_v21  ;;  %v3680_v14 = vld [vmem:[%s4423_s3 + $0x2c0] sm:$0xff]  }
  0x6f   : > { %3387 = vmatprep.subr.bf16.mxu1 %v3636_v20  ;;  %3381 = vmatprep.mubr.bf16.mxu0 %v3959_v40  ;;  %v3679_v22 = vld [vmem:[%s4423_s3 + $0x280] sm:$0xff]  }
  0x70   : > { %3367 = vmatprep.subr.bf16.mxu0 %v3635_v25 }
  0x71   : > { %3368 = vmatpush3.bf16.msra.mxu0 %v3635_v25  ;;  %v3684_v25 = vld [vmem:[%s4423_s3 + $0x330] sm:$0xff]  }
  0x72   : > { %3388 = vmatpush3.bf16.msra.mxu1 %v3636_v20  ;;  %3369 = vmatprep.subr.bf16.mxu0 %v3637_v28  ;;  %v3682_v20 = vld [vmem:[%s4423_s3 + $0x338] sm:$0xff]  }
  0x73   : > { %3389 = vmatprep.subr.bf16.mxu1 %v3638_v23 }
  0x75   : > { %3370 = vmatpush3.bf16.msra.mxu0 %v3637_v28 }
  0x76   : > { %3390 = vmatpush3.bf16.msra.mxu1 %v3638_v23  ;;  %3371 = vmatprep.subr.bf16.mxu0 %v3639_v30  ;;  %v4232_v23 = vsel %vm1876_vm5, %v4026_v5, %v1891_v19  ;;  %v3686_v5 = vld [vmem:[%s4423_s3 + $0x328] sm:$0xff]  }
  0x77   : > { %3391 = vmatprep.subr.bf16.mxu1 %v3640_v27 }
  0x79   : > { %3372 = vmatpush3.bf16.msra.mxu0 %v3639_v30 }
  0x7a   : > { %3392 = vmatpush3.bf16.msra.mxu1 %v3640_v27  ;;  %3373 = vmatprep.subr.bf16.mxu0 %v3641_v32  ;;  %v3722_v27 = vmov 0.0|0.0  }
  0x7b   : > { %3393 = vmatprep.subr.bf16.mxu1 %v3642_v29  ;;  %v1756_v28 = vrot.slane %v3722_v27, 6 }
  0x7d   : > { %3374 = vmatpush3.bf16.msra.mxu0 %v3641_v32  ;;  %v1757_v30 = vsel %vm1752_vm6, %v1754_v60, %v1756_v28  ;;  %v3688_v32 = vld [vmem:[%s4423_s3 + $0x320] sm:$0xff]   ;;  %v3707_v60 = vld [vmem:[%s4423_s3 + $0x390] sm:$0xff]  }
  0x7e   : > { %3394 = vmatpush3.bf16.msra.mxu1 %v3642_v29  ;;  %3375 = vmatprep.subr.bf16.mxu0 %v3643_v34  ;;  %v3681_v29 = vld [vmem:[%s4423_s3 + $0x378] sm:$0xff]  }
  0x7f   : > { %3395 = vmatprep.subr.bf16.mxu1 %v3644_v31 }
  0x81   : > { %3376 = vmatpush3.bf16.msra.mxu0 %v3643_v34  ;;  %v3687_v34 = vld [vmem:[%s4423_s3 + $0x360] sm:$0xff]  }
  0x82   : > { %3396 = vmatpush3.bf16.msra.mxu1 %v3644_v31  ;;  %3377 = vmatprep.subr.bf16.mxu0 %v3645_v37  ;;  %v3683_v31 = vld [vmem:[%s4423_s3 + $0x370] sm:$0xff]  }
  0x83   : > { %3397 = vmatprep.subr.bf16.mxu1 %v3646_v33 }
  0x85   : > { %3378 = vmatpush3.bf16.msra.mxu0 %v3645_v37  ;;  %v3694_v37 = vld [vmem:[%s4423_s3 + $0x308] sm:$0xff]  }
  0x86   : > { %3398 = vmatpush3.bf16.msra.mxu1 %v3646_v33  ;;  %3379 = vmatprep.subr.bf16.mxu0 %v3647_v41  ;;  %v3690_v33 = vld [vmem:[%s4423_s3 + $0x318] sm:$0xff]  }
  0x87   : > { %3399 = vmatprep.subr.bf16.mxu1 %v3648_v35 }
  0x89   : > { %3380 = vmatpush3.bf16.msra.mxu0 %v3647_v41  ;;  %v3696_v41 = vld [vmem:[%s4423_s3 + $0x300] sm:$0xff]  }
  0x8a   : > { %3400 = vmatpush3.bf16.msra.mxu1 %v3648_v35  ;;  %3405 = vmatprep.subr.bf16.mxu0 %v3649_v43  ;;  %v3689_v35 = vld [vmem:[%s4423_s3 + $0x358] sm:$0xff]  }
  0x8b   : > { %3425 = vmatprep.subr.bf16.mxu1 %v3650_v39 }
  0x8c   : > { %3382 = vmatmul.mubr.bf16.vlgmr.msra.gmra.mxu0 %v3944_v36 }
  0x8d   : > { %3402 = vmatmul.mubr.bf16.vlgmr.msra.gmra.mxu1 %v4057_v17  ;;  %3406 = vmatpush3.bf16.msra.mxu0 %v3649_v43  ;;  %v3698_v43 = vld [vmem:[%s4423_s3 + $0x3f8] sm:$0xff]  }
  0x8e   : > { %3426 = vmatpush3.bf16.msra.mxu1 %v3650_v39  ;;  %3441 = vmatprep.mubr.bf16.mxu1 %v3951_v38  ;;  %v3653_v38 = vld [vmem:[%s4423_s3 + $0x268] sm:$0xff]   ;;  %v3691_v39 = vld [vmem:[%s4423_s3 + $0x350] sm:$0xff]  }
  0x8f   : > { %3427 = vmatprep.subr.bf16.mxu1 %v3652_v42  ;;  %3421 = vmatprep.mubr.bf16.mxu0 %v3959_v40 }
  0x90   : > { %3407 = vmatprep.subr.bf16.mxu0 %v3651_v45 }
  0x91   : > { %3408 = vmatpush3.bf16.msra.mxu0 %v3651_v45  ;;  %v2395_v45 = vrot.slane %v3910_v18, 7 }
  0x92   : > { %3428 = vmatpush3.bf16.msra.mxu1 %v3652_v42  ;;  %3409 = vmatprep.subr.bf16.mxu0 %v3653_v38  ;;  %v3693_v42 = vld [vmem:[%s4423_s3 + $0x348] sm:$0xff]  }
  0x93   : > { %3429 = vmatprep.subr.bf16.mxu1 %v3654_v44 }
  0x95   : > { %3410 = vmatpush3.bf16.msra.mxu0 %v3653_v38  ;;  %v3700_v38 = vld [vmem:[%s4423_s3 + $0x3f0] sm:$0xff]  }
  0x96   : > { %3430 = vmatpush3.bf16.msra.mxu1 %v3654_v44  ;;  %3411 = vmatprep.subr.bf16.mxu0 %v3655_v48  ;;  %v2394_v44 = vrot.slane %v3901_v15, 7 }
  0x97   : > { %3431 = vmatprep.subr.bf16.mxu1 %v3656_v46 }
  0x99   : > { %3412 = vmatpush3.bf16.msra.mxu0 %v3655_v48  ;;  %v3697_v48 = vld [vmem:[%s4423_s3 + $0x3b8] sm:$0xff]  }
  0x9a   : > { %3432 = vmatpush3.bf16.msra.mxu1 %v3656_v46  ;;  %3413 = vmatprep.subr.bf16.mxu0 %v3657_v50  ;;  %v3695_v46 = vld [vmem:[%s4423_s3 + $0x340] sm:$0xff]  }
  0x9b   : > { %3433 = vmatprep.subr.bf16.mxu1 %v3658_v47 }
  0x9d   : > { %3414 = vmatpush3.bf16.msra.mxu0 %v3657_v50  ;;  %v3702_v50 = vld [vmem:[%s4423_s3 + $0x3e8] sm:$0xff]  }
  0x9e   : > { %3434 = vmatpush3.bf16.msra.mxu1 %v3658_v47  ;;  %3415 = vmatprep.subr.bf16.mxu0 %v3659_v52  ;;  %v2396_v47 = vsel %vm2393_vm7, %v2394_v44, %v2395_v45 }
  0x9f   : > { %3435 = vmatprep.subr.bf16.mxu1 %v3660_v49 }
  0xa1   : > { %3416 = vmatpush3.bf16.msra.mxu0 %v3659_v52  ;;  %v3704_v52 = vld [vmem:[%s4423_s3 + $0x3e0] sm:$0xff]  }
  0xa2   : > { %3436 = vmatpush3.bf16.msra.mxu1 %v3660_v49  ;;  %3417 = vmatprep.subr.bf16.mxu0 %v3661_v54 }
  0xa3   : > { %3437 = vmatprep.subr.bf16.mxu1 %v3662_v51 }
  0xa5   : > { %3418 = vmatpush3.bf16.msra.mxu0 %v3661_v54 }
  0xa6   : > { %3438 = vmatpush3.bf16.msra.mxu1 %v3662_v51  ;;  %3419 = vmatprep.subr.bf16.mxu0 %v3663_v56 }
  0xa7   : > { %3439 = vmatprep.subr.bf16.mxu1 %v3664_v53 }
  0xa9   : > { %3420 = vmatpush3.bf16.msra.mxu0 %v3663_v56  ;;  %v3706_v56 = vld [vmem:[%s4423_s3 + $0x3d8] sm:$0xff]  }
  0xaa   : > { %3440 = vmatpush3.bf16.msra.mxu1 %v3664_v53  ;;  %3445 = vmatprep.subr.bf16.mxu0 %v3665_v58 }
  0xab   : > { %3465 = vmatprep.subr.bf16.mxu1 %v3666_v55 }
  0xac   : > { %3422 = vmatmul.mubr.bf16.vlgmr.msra.gmra.mxu0 %v3944_v36 }
  0xad   : > { %3442 = vmatmul.mubr.bf16.vlgmr.msra.gmra.mxu1 %v3932_v26  ;;  %v3667_v26 = vld [vmem:[%s4423_s3 + $0x2b0] sm:$0xff]   ;;  %3446 = vmatpush3.bf16.msra.mxu0 %v3665_v58  ;;  %v3705_v58 = vld [vmem:[%s4423_s3 + $0x398] sm:$0xff]  }
  0xae   : > { %3466 = vmatpush3.bf16.msra.mxu1 %v3666_v55  ;;  %3481 = vmatprep.mubr.bf16.mxu1 %v4078_v24  ;;  %v3701_v55 = vld [vmem:[%s4423_s3 + $0x3a8] sm:$0xff]  }
  0xaf   : > { %3467 = vmatprep.subr.bf16.mxu1 %v3668_v57  ;;  %3461 = vmatprep.mubr.bf16.mxu0 %v1755_v63  ;;  %v2397_v63 = vrot.slane %v3722_v27, 7 }
  0xb0   : > { %3447 = vmatprep.subr.bf16.mxu0 %v3667_v26 }
  0xb1   : > { %3448 = vmatpush3.bf16.msra.mxu0 %v3667_v26  ;;  %v3709_v26 = vld [vmem:[%s4423_s3 + $0x388] sm:$0xff]  }
  0xb2   : > { %3468 = vmatpush3.bf16.msra.mxu1 %v3668_v57  ;;  %3449 = vmatprep.subr.bf16.mxu0 %v3669_v1 }
  0xb3   : > { %3469 = vmatprep.subr.bf16.mxu1 %v3670_v61 }
  0xb5   : > { %3450 = vmatpush3.bf16.msra.mxu0 %v3669_v1  ;;  %v2398_v1 = vsel %vm2393_vm7, %v2395_v45, %v2397_v63 }
  0xb6   : > { %3470 = vmatpush3.bf16.msra.mxu1 %v3670_v61  ;;  %3451 = vmatprep.subr.bf16.mxu0 %v3671_v6  ;;  %v3712_v61 = vld [vmem:[%s4423_s3 + $0x3c0] sm:$0xff]  }
  0xb7   : > { %3471 = vmatprep.subr.bf16.mxu1 %v3672_v0 }
  0xb9   : > { %3452 = vmatpush3.bf16.msra.mxu0 %v3671_v6 }
  0xba   : > { %3472 = vmatpush3.bf16.msra.mxu1 %v3672_v0  ;;  %3453 = vmatprep.subr.bf16.mxu0 %v3673_v8  ;;  %v3711_v0 = vld [vmem:[%s4423_s3 + $0x380] sm:$0xff]  }
  0xbb   : > { %3473 = vmatprep.subr.bf16.mxu1 %v3674_v4 }
  0xbd   : > { %3454 = vmatpush3.bf16.msra.mxu0 %v3673_v8 }
  0xbe   : > { %3474 = vmatpush3.bf16.msra.mxu1 %v3674_v4  ;;  %3455 = vmatprep.subr.bf16.mxu0 %v3675_v10 }
  0xbf   : > { %3475 = vmatprep.subr.bf16.mxu1 %v3676_v7 }
  0xc1   : > { %3456 = vmatpush3.bf16.msra.mxu0 %v3675_v10 }
  0xc2   : > { %3476 = vmatpush3.bf16.msra.mxu1 %v3676_v7  ;;  %3457 = vmatprep.subr.bf16.mxu0 %v3677_v16 }
  0xc3   : > { %3477 = vmatprep.subr.bf16.mxu1 %v3678_v9 }
  0xc5   : > { %3458 = vmatpush3.bf16.msra.mxu0 %v3677_v16 }
  0xc6   : > { %3478 = vmatpush3.bf16.msra.mxu1 %v3678_v9  ;;  %3459 = vmatprep.subr.bf16.mxu0 %v3679_v22 }
  0xc7   : > { %3479 = vmatprep.subr.bf16.mxu1 %v3680_v14 }
  0xc9   : > { %3460 = vmatpush3.bf16.msra.mxu0 %v3679_v22 }
  0xca   : > { %3480 = vmatpush3.bf16.msra.mxu1 %v3680_v14  ;;  %3485 = vmatprep.subr.bf16.mxu0 %v3681_v29 }
  0xcb   : > { %3505 = vmatprep.subr.bf16.mxu1 %v3682_v20 }
  0xcc   : > { %3462 = vmatmul.mubr.bf16.vlgmr.msra.gmra.mxu0 %v1757_v30 }
  0xcd   : > { %3482 = vmatmul.mubr.bf16.vlgmr.msra.gmra.mxu1 %v4232_v23  ;;  %3486 = vmatpush3.bf16.msra.mxu0 %v3681_v29 }
  0xce   : > { %3506 = vmatpush3.bf16.msra.mxu1 %v3682_v20  ;;  %3521 = vmatprep.mubr.bf16.mxu1 %v3959_v40  ;;  %v3685_v40 = vld [vmem:[%s4423_s3 + $0x368] sm:$0xff]  }
  0xcf   : > { %3507 = vmatprep.subr.bf16.mxu1 %v3684_v25  ;;  %3501 = vmatprep.mubr.bf16.mxu0 %v4066_v21  ;;  %v3692_v21 = vld [vmem:[%s4423_s3 + $0x310] sm:$0xff]  }
  0xd0   : > { %3487 = vmatprep.subr.bf16.mxu0 %v3683_v31 }
  0xd1   : > { %3488 = vmatpush3.bf16.msra.mxu0 %v3683_v31 }
  0xd2   : > { %3508 = vmatpush3.bf16.msra.mxu1 %v3684_v25  ;;  %3489 = vmatprep.subr.bf16.mxu0 %v3685_v40 }
  0xd3   : > { %3509 = vmatprep.subr.bf16.mxu1 %v3686_v5 }
  0xd5   : > { %3490 = vmatpush3.bf16.msra.mxu0 %v3685_v40 }
  0xd6   : > { %3510 = vmatpush3.bf16.msra.mxu1 %v3686_v5  ;;  %3491 = vmatprep.subr.bf16.mxu0 %v3687_v34 }
  0xd7   : > { %3511 = vmatprep.subr.bf16.mxu1 %v3688_v32 }
  0xd9   : > { %3492 = vmatpush3.bf16.msra.mxu0 %v3687_v34 }
  0xda   : > { %3512 = vmatpush3.bf16.msra.mxu1 %v3688_v32  ;;  %3493 = vmatprep.subr.bf16.mxu0 %v3689_v35 }
  0xdb   : > { %3513 = vmatprep.subr.bf16.mxu1 %v3690_v33 }
  0xdd   : > { %3494 = vmatpush3.bf16.msra.mxu0 %v3689_v35 }
  0xde   : > { %3514 = vmatpush3.bf16.msra.mxu1 %v3690_v33  ;;  %3495 = vmatprep.subr.bf16.mxu0 %v3691_v39 }
  0xdf   : > { %3515 = vmatprep.subr.bf16.mxu1 %v3692_v21 }
  0xe1   : > { %3496 = vmatpush3.bf16.msra.mxu0 %v3691_v39 }
  0xe2   : > { %3516 = vmatpush3.bf16.msra.mxu1 %v3692_v21  ;;  %3497 = vmatprep.subr.bf16.mxu0 %v3693_v42 }
  0xe3   : > { %3517 = vmatprep.subr.bf16.mxu1 %v3694_v37 }
  0xe5   : > { %3498 = vmatpush3.bf16.msra.mxu0 %v3693_v42 }
  0xe6   : > { %3518 = vmatpush3.bf16.msra.mxu1 %v3694_v37  ;;  %3499 = vmatprep.subr.bf16.mxu0 %v3695_v46 }
  0xe7   : > { %3519 = vmatprep.subr.bf16.mxu1 %v3696_v41 }
  0xe9   : > { %3500 = vmatpush3.bf16.msra.mxu0 %v3695_v46 }
  0xea   : > { %3520 = vmatpush3.bf16.msra.mxu1 %v3696_v41  ;;  %3525 = vmatprep.subr.bf16.mxu0 %v3697_v48 }
  0xeb   : > { %3545 = vmatprep.subr.bf16.mxu1 %v3698_v43 }
  0xec   : > { %v3263_v53 = vpop.f32.mrf.mxu0  ;;  %3502 = vmatmul.mubr.bf16.vlgmr.msra.gmra.mxu0 %v4057_v17  ;;  %v3703_v17 = vld [vmem:[%s4423_s3 + $0x3a0] sm:$0xff]  }
  0xed   : > { %v4297_v15 = vpop.f32.mrf.mxu1  ;;  %3522 = vmatmul.mubr.bf16.vlgmr.msra.gmra.mxu1 %v3944_v36  ;;  %v3699_v36 = vld [vmem:[%s4423_s3 + $0x3b0] sm:$0xff]   ;;  %3526 = vmatpush3.bf16.msra.mxu0 %v3697_v48 }
  0xee   : > { %3546 = vmatpush3.bf16.msra.mxu1 %v3698_v43  ;;  %3561 = vmatprep.mubr.bf16.mxu1 %v2396_v47  ;;  %v592_v54 = vpop.f32.mrf.mxu0  ;;  %v697_v10 = vadd.f32 %v4297_v15, %v3263_v53 }
  0xef   : > { %v4303_v49 = vpop.f32.mrf.mxu1  ;;  %3547 = vmatprep.subr.bf16.mxu1 %v3700_v38  ;;  %3541 = vmatprep.mubr.bf16.mxu0 %v4078_v24  ;;  %v3708_v24 = vld [vmem:[%s4423_s3 + $0x3d0] sm:$0xff]  }
  0xf0   : > { %3527 = vmatprep.subr.bf16.mxu0 %v3699_v36  ;;  %v3264_v57 = vpop.f32.mrf.mxu0  ;;  %v689_v12 = vadd.f32 %v4303_v49, %v592_v54 }
  0xf1   : > { %v3284_v51 = vpop.f32.mrf.mxu1  ;;  %3528 = vmatpush3.bf16.msra.mxu0 %v3699_v36 }
  0xf2   : > { %3548 = vmatpush3.bf16.msra.mxu1 %v3700_v38  ;;  %3529 = vmatprep.subr.bf16.mxu0 %v3701_v55  ;;  %v595_v9 = vpop.f32.mrf.mxu0 }
  0xf3   : > { %3549 = vmatprep.subr.bf16.mxu1 %v3702_v50  ;;  %v691_v4 = vpop.f32.mrf.mxu1 }
  0xf4   : > { %v692_v20 = vadd.f32 %v691_v4, %v595_v9 }
  0xf5   : > { %3530 = vmatpush3.bf16.msra.mxu0 %v3701_v55 }
  0xf6   : > { %3550 = vmatpush3.bf16.msra.mxu1 %v3702_v50  ;;  %3531 = vmatprep.subr.bf16.mxu0 %v3703_v17 }
  0xf7   : > { %3551 = vmatprep.subr.bf16.mxu1 %v3704_v52 }
  0xf9   : > { %3532 = vmatpush3.bf16.msra.mxu0 %v3703_v17 }
  0xfa   : > { %3552 = vmatpush3.bf16.msra.mxu1 %v3704_v52  ;;  %3533 = vmatprep.subr.bf16.mxu0 %v3705_v58 }
  0xfb   : > { %3553 = vmatprep.subr.bf16.mxu1 %v3706_v56 }
  0xfd   : > { %3534 = vmatpush3.bf16.msra.mxu0 %v3705_v58 }
  0xfe   : > { %3554 = vmatpush3.bf16.msra.mxu1 %v3706_v56  ;;  %3535 = vmatprep.subr.bf16.mxu0 %v3707_v60 }
  0xff   : > { %3555 = vmatprep.subr.bf16.mxu1 %v3708_v24 }
 0x101   : > { %3536 = vmatpush3.bf16.msra.mxu0 %v3707_v60 }
 0x102   : > { %3556 = vmatpush3.bf16.msra.mxu1 %v3708_v24  ;;  %3537 = vmatprep.subr.bf16.mxu0 %v3709_v26 }
 0x103   : > { %3557 = vmatprep.subr.bf16.mxu1 %v3710_v59 }
 0x105   : > { %3538 = vmatpush3.bf16.msra.mxu0 %v3709_v26 }
 0x106   : > { %3558 = vmatpush3.bf16.msra.mxu1 %v3710_v59  ;;  %3539 = vmatprep.subr.bf16.mxu0 %v3711_v0 }
 0x107   : > { %3559 = vmatprep.subr.bf16.mxu1 %v3712_v61 }
 0x109   : > { %3540 = vmatpush3.bf16.msra.mxu0 %v3711_v0 }
 0x10a   : > { %3560 = vmatpush3.bf16.msra.mxu1 %v3712_v61 }
 0x10c   : > { %v3303_v11 = vpop.f32.mrf.mxu0  ;;  %3542 = vmatmul.mubr.bf16.vlgmr.msra.gmra.mxu0 %v4232_v23 }
 0x10d   : > { %v3323_v6 = vpop.f32.mrf.mxu1  ;;  %3562 = vmatmul.mubr.bf16.vlgmr.msra.gmra.mxu1 %v2398_v1  ;;  %v825_v18 = vadd.f32 %v3303_v11, %v697_v10 }
 0x10e   : > { %v809_v13 = vpop.f32.mrf.mxu0 }
 0x10f   : > { %v935_v7 = vpop.f32.mrf.mxu1  ;;  %v951_v14 = vadd.f32 %v3323_v6, %v825_v18  ;;  %v823_v16 = vadd.f32 %v809_v13, %v689_v12 }
 0x110   : > { %v3304_v19 = vpop.f32.mrf.mxu0 }
 0x111   : > { %v3324_v8 = vpop.f32.mrf.mxu1  ;;  %v960_v22 = vsel %vm458_vm8, %v951_v14, 0.0  ;;  %v949_v23 = vadd.f32 %v935_v7, %v823_v16 }
 0x112   : > { %v3066_v25 = vpack.c.bf16 %v960_v22, %v960_v22  ;;  %v812_v27 = vpop.f32.mrf.mxu0  ;;  %v987_v35 = vmul.f32 %v960_v22, %v960_v22 }
 0x113   : > { %v958_v28 = vsel %vm456_vm9, %v949_v23, 0.0  ;;  %v824_v29 = vadd.f32 %v812_v27, %v692_v20  ;;  %v938_v30 = vpop.f32.mrf.mxu1 }
 0x114   : > { %976 = vst [vmem:[%s4359_s26 + $0x20] sm:$0xf] %v3066_v25  ;;  %v3064_v5 = vpack.c.bf16 %v958_v28, %v958_v28  ;;  %v985_v40 = vmul.f32 %v958_v28, %v958_v28 }
 0x115   : > { %v950_v31 = vadd.f32 %v938_v30, %v824_v29 }
 0x116   : > { %974 = vst [vmem:[%s4359_s26] sm:$0xf] %v3064_v5 }
 0x117   : > { %v959_v32 = vsel %vm457_vm10, %v950_v31, 0.0 }
 0x118   : > { %v3065_v33 = vpack.c.bf16 %v959_v32, %v959_v32  ;;  %v977_v34 = vadd.f32 %v959_v32, %v958_v28  ;;  %v986_v21 = vmul.f32 %v959_v32, %v959_v32 }
 0x11a   : > { %975 = vst [vmem:[%s4359_s26 + $0x10] sm:$0xf] %v3065_v33  ;;  %v978_v37 = vadd.f32 %v977_v34, %v960_v22  ;;  %v988_v39 = vadd.f32 %v986_v21, %v985_v40 }
 0x11c   : > { %v979_v41 = vrot.slane %v978_v37, 4  ;;  %v989_v42 = vadd.f32 %v988_v39, %v987_v35 }
 0x11e   : > { %v980_v43 = vadd.f32 %v979_v41, %v978_v37  ;;  %v990_v44 = vrot.slane %v989_v42, 4 }
 0x120   : > { %v981_v45 = vrot.slane %v980_v43, 2  ;;  %v991_v46 = vadd.f32 %v990_v44, %v989_v42 }
 0x122   : > { %v982_v38 = vadd.f32 %v981_v45, %v980_v43  ;;  %v992_v47 = vrot.slane %v991_v46, 2 }
 0x124   : > { %v983_v15 = vrot.slane %v982_v38, 1  ;;  %v993_v48 = vadd.f32 %v992_v47, %v991_v46 }
 0x126   : > { %v984_v50 = vadd.f32 %v983_v15, %v982_v38  ;;  %v994_v51 = vrot.slane %v993_v48, 1 }
 0x128   : > { %v995_v52 = vadd.f32 %v994_v51, %v993_v48  ;;  %996 = vst [vmem:[%s4375_s30] sm:$0xff] %v984_v50 }
 0x12a   : > { %997 = vst [vmem:[%s4380_s9] sm:$0xff] %v995_v52 }
 0x12c   : > { %v3343_v54 = vpop.f32.mrf.mxu0 }
 0x12d   : > { %v3363_v49 = vpop.f32.mrf.mxu1 }
 0x12e   : > { %v1120_v55 = vpop.f32.mrf.mxu0  ;;  %v1225_v60 = vadd.f32 %v3363_v49, %v3343_v54 }
 0x12f   : > { %v1216_v36 = vpop.f32.mrf.mxu1 }
 0x130   : > { %v3344_v56 = vpop.f32.mrf.mxu0  ;;  %v1217_v26 = vadd.f32 %v1216_v36, %v1120_v55 }
 0x131   : > { %v3364_v53 = vpop.f32.mrf.mxu1 }
 0x132   : > { %v1123_v59 = vpop.f32.mrf.mxu0 }
 0x133   : > { %v1219_v57 = vpop.f32.mrf.mxu1 }
 0x134   : > { %v1220_v7 = vadd.f32 %v1219_v57, %v1123_v59 }
 0x14c   : > { %v3383_v61 = vpop.f32.mrf.mxu0 }
 0x14d   : > { %v3403_v17 = vpop.f32.mrf.mxu1  ;;  %v1345_v63 = vadd.f32 %v3383_v61, %v1225_v60 }
 0x14e   : > { %v1329_v0 = vpop.f32.mrf.mxu0 }
 0x14f   : > { %v1451_v24 = vpop.f32.mrf.mxu1  ;;  %v1467_v1 = vadd.f32 %v3403_v17, %v1345_v63  ;;  %v1343_v4 = vadd.f32 %v1329_v0, %v1217_v26 }
 0x150   : > { %v3384_v6 = vpop.f32.mrf.mxu0 }
 0x151   : > { %v3404_v58 = vpop.f32.mrf.mxu1  ;;  %v1470_v8 = vsel %vm458_vm8, %v1467_v1, 0.0  ;;  %v1465_v9 = vadd.f32 %v1451_v24, %v1343_v4 }
 0x152   : > { %v3069_v10 = vpack.c.bf16 %v1470_v8, %v1470_v8  ;;  %v1332_v11 = vpop.f32.mrf.mxu0  ;;  %v1497_v27 = vmul.f32 %v1470_v8, %v1470_v8 }
 0x153   : > { %v1468_v12 = vsel %vm456_vm9, %v1465_v9, 0.0  ;;  %v1344_v18 = vadd.f32 %v1332_v11, %v1220_v7  ;;  %v1454_v14 = vpop.f32.mrf.mxu1 }
 0x154   : > { %1486 = vst [vmem:[%s4359_s26 + $0x24] sm:$0xf] %v3069_v10  ;;  %v3067_v13 = vpack.c.bf16 %v1468_v12, %v1468_v12  ;;  %v1495_v20 = vmul.f32 %v1468_v12, %v1468_v12 }
 0x155   : > { %v1466_v16 = vadd.f32 %v1454_v14, %v1344_v18 }
 0x156   : > { %1484 = vst [vmem:[%s4359_s26 + $0x4] sm:$0xf] %v3067_v13 }
 0x157   : > { %v1469_v19 = vsel %vm457_vm10, %v1466_v16, 0.0 }
 0x158   : > { %v3068_v22 = vpack.c.bf16 %v1469_v19, %v1469_v19  ;;  %v1487_v23 = vadd.f32 %v1469_v19, %v1468_v12  ;;  %v1496_v25 = vmul.f32 %v1469_v19, %v1469_v19 }
 0x15a   : > { %1485 = vst [vmem:[%s4359_s26 + $0x14] sm:$0xf] %v3068_v22  ;;  %v1488_v28 = vadd.f32 %v1487_v23, %v1470_v8  ;;  %v1498_v29 = vadd.f32 %v1496_v25, %v1495_v20 }
 0x15c   : > { %v1489_v5 = vrot.slane %v1488_v28, 4  ;;  %v1499_v30 = vadd.f32 %v1498_v29, %v1497_v27 }
 0x15e   : > { %v1490_v31 = vadd.f32 %v1489_v5, %v1488_v28  ;;  %v1500_v32 = vrot.slane %v1499_v30, 4 }
 0x160   : > { %v1491_v40 = vrot.slane %v1490_v31, 2  ;;  %v1501_v33 = vadd.f32 %v1500_v32, %v1499_v30 }
 0x162   : > { %v1492_v34 = vadd.f32 %v1491_v40, %v1490_v31  ;;  %v1502_v21 = vrot.slane %v1501_v33, 2 }
 0x164   : > { %v1493_v35 = vrot.slane %v1492_v34, 1  ;;  %v1503_v37 = vadd.f32 %v1502_v21, %v1501_v33 }
 0x166   : > { %v1494_v41 = vadd.f32 %v1493_v35, %v1492_v34  ;;  %v1504_v42 = vrot.slane %v1503_v37, 1 }
 0x168   : > { %v1505_v44 = vadd.f32 %v1504_v42, %v1503_v37  ;;  %1506 = vst [vmem:[%s4375_s30 + $0x8] sm:$0xff] %v1494_v41 }
 0x16a   : > { %1507 = vst [vmem:[%s4380_s9 + $0x8] sm:$0xff] %v1505_v44 }
 0x16c   : > { %v3423_v46 = vpop.f32.mrf.mxu0 }
 0x16d   : > { %v3443_v39 = vpop.f32.mrf.mxu1 }
 0x16e   : > { %v1624_v38 = vpop.f32.mrf.mxu0  ;;  %v1729_v36 = vadd.f32 %v3443_v39, %v3423_v46 }
 0x16f   : > { %v1720_v43 = vpop.f32.mrf.mxu1 }
 0x170   : > { %v3424_v47 = vpop.f32.mrf.mxu0  ;;  %v1721_v53 = vadd.f32 %v1720_v43, %v1624_v38 }
 0x171   : > { %v3444_v45 = vpop.f32.mrf.mxu1 }
 0x172   : > { %v1627_v51 = vpop.f32.mrf.mxu0 }
 0x173   : > { %v1723_v15 = vpop.f32.mrf.mxu1 }
 0x174   : > { %v1724_v24 = vadd.f32 %v1723_v15, %v1627_v51 }
 0x18c   : > { %v3463_v52 = vpop.f32.mrf.mxu0 }
 0x18d   : > { %v3483_v48 = vpop.f32.mrf.mxu1  ;;  %v1858_v54 = vadd.f32 %v3463_v52, %v1729_v36 }
 0x18e   : > { %v1842_v55 = vpop.f32.mrf.mxu0 }
 0x18f   : > { %v1977_v49 = vpop.f32.mrf.mxu1  ;;  %v1993_v56 = vadd.f32 %v3483_v48, %v1858_v54  ;;  %v1856_v57 = vadd.f32 %v1842_v55, %v1721_v53 }
 0x190   : > { %v3464_v17 = vpop.f32.mrf.mxu0 }
 0x191   : > { %v3484_v50 = vpop.f32.mrf.mxu1  ;;  %v1996_v58 = vsel %vm458_vm8, %v1993_v56, 0.0  ;;  %v1991_v59 = vadd.f32 %v1977_v49, %v1856_v57 }
 0x192   : > { %v3072_v60 = vpack.c.bf16 %v1996_v58, %v1996_v58  ;;  %v1845_v61 = vpop.f32.mrf.mxu0  ;;  %v2023_v11 = vmul.f32 %v1996_v58, %v1996_v58 }
 0x193   : > { %v1994_v26 = vsel %vm456_vm9, %v1991_v59, 0.0  ;;  %v1857_v63 = vadd.f32 %v1845_v61, %v1724_v24  ;;  %v1980_v1 = vpop.f32.mrf.mxu1 }
 0x194   : > { %2012 = vst [vmem:[%s4359_s26 + $0x28] sm:$0xf] %v3072_v60  ;;  %v3070_v0 = vpack.c.bf16 %v1994_v26, %v1994_v26  ;;  %v2021_v7 = vmul.f32 %v1994_v26, %v1994_v26 }
 0x195   : > { %v1992_v4 = vadd.f32 %v1980_v1, %v1857_v63 }
 0x196   : > { %2010 = vst [vmem:[%s4359_s26 + $0x8] sm:$0xf] %v3070_v0 }
 0x197   : > { %v1995_v6 = vsel %vm457_vm10, %v1992_v4, 0.0 }
 0x198   : > { %v3071_v8 = vpack.c.bf16 %v1995_v6, %v1995_v6  ;;  %v2013_v9 = vadd.f32 %v1995_v6, %v1994_v26  ;;  %v2022_v10 = vmul.f32 %v1995_v6, %v1995_v6 }
 0x19a   : > { %2011 = vst [vmem:[%s4359_s26 + $0x18] sm:$0xf] %v3071_v8  ;;  %v2014_v12 = vadd.f32 %v2013_v9, %v1996_v58  ;;  %v2024_v18 = vadd.f32 %v2022_v10, %v2021_v7 }
 0x19c   : > { %v2015_v13 = vrot.slane %v2014_v12, 4  ;;  %v2025_v14 = vadd.f32 %v2024_v18, %v2023_v11 }
 0x19e   : > { %v2016_v16 = vadd.f32 %v2015_v13, %v2014_v12  ;;  %v2026_v19 = vrot.slane %v2025_v14, 4 }
 0x1a0   : > { %v2017_v20 = vrot.slane %v2016_v16, 2  ;;  %v2027_v22 = vadd.f32 %v2026_v19, %v2025_v14 }
 0x1a2   : > { %v2018_v23 = vadd.f32 %v2017_v20, %v2016_v16  ;;  %v2028_v25 = vrot.slane %v2027_v22, 2 }
 0x1a4   : > { %v2019_v27 = vrot.slane %v2018_v23, 1  ;;  %v2029_v28 = vadd.f32 %v2028_v25, %v2027_v22 }
 0x1a6   : > { %v2020_v5 = vadd.f32 %v2019_v27, %v2018_v23  ;;  %v2030_v30 = vrot.slane %v2029_v28, 1 }
 0x1a8   : > { %v2031_v32 = vadd.f32 %v2030_v30, %v2029_v28  ;;  %2032 = vst [vmem:[%s4375_s30 + $0x10] sm:$0xff] %v2020_v5 }
 0x1aa   : > { %2033 = vst [vmem:[%s4380_s9 + $0x10] sm:$0xff] %v2031_v32 }
 0x1ac   : > { %v3503_v33 = vpop.f32.mrf.mxu0 }
 0x1ad   : > { %v3523_v29 = vpop.f32.mrf.mxu1 }
 0x1ae   : > { %v2150_v34 = vpop.f32.mrf.mxu0  ;;  %v2255_v43 = vadd.f32 %v3523_v29, %v3503_v33 }
 0x1af   : > { %v2246_v31 = vpop.f32.mrf.mxu1 }
 0x1b0   : > { %v3504_v21 = vpop.f32.mrf.mxu0  ;;  %v2247_v45 = vadd.f32 %v2246_v31, %v2150_v34 }
 0x1b1   : > { %v3524_v40 = vpop.f32.mrf.mxu1 }
 0x1b2   : > { %v2153_v42 = vpop.f32.mrf.mxu0 }
 0x1b3   : > { %v2249_v35 = vpop.f32.mrf.mxu1 }
 0x1b4   : > { %v2250_v49 = vadd.f32 %v2249_v35, %v2153_v42 }
 0x1cc   : > { %v3543_v44 = vpop.f32.mrf.mxu0 }
 0x1cd   : > { %v3563_v37 = vpop.f32.mrf.mxu1  ;;  %v2375_v46 = vadd.f32 %v3543_v44, %v2255_v43 }
 0x1ce   : > { %v2359_v38 = vpop.f32.mrf.mxu0 }
 0x1cf   : > { %v2483_v39 = vpop.f32.mrf.mxu1  ;;  %v2499_v47 = vadd.f32 %v3563_v37, %v2375_v46  ;;  %v2373_v15 = vadd.f32 %v2359_v38, %v2247_v45 }
 0x1d0   : > { %v3544_v48 = vpop.f32.mrf.mxu0 }
 0x1d1   : > { %v3564_v41 = vpop.f32.mrf.mxu1  ;;  %v2502_v50 = vsel %vm458_vm8, %v2499_v47, 0.0  ;;  %v2497_v51 = vadd.f32 %v2483_v39, %v2373_v15 }
 0x1d2   : > { %v3075_v36 = vpack.c.bf16 %v2502_v50, %v2502_v50  ;;  %v2362_v52 = vpop.f32.mrf.mxu0  ;;  %v2529_v60 = vmul.f32 %v2502_v50, %v2502_v50 }
 0x1d3   : > { %v2500_v53 = vsel %vm456_vm9, %v2497_v51, 0.0  ;;  %v2374_v54 = vadd.f32 %v2362_v52, %v2250_v49  ;;  %v2486_v56 = vpop.f32.mrf.mxu1 }
 0x1d4   : > { %2518 = vst [vmem:[%s4359_s26 + $0x2c] sm:$0xf] %v3075_v36  ;;  %v3073_v55 = vpack.c.bf16 %v2500_v53, %v2500_v53  ;;  %v2527_v24 = vmul.f32 %v2500_v53, %v2500_v53 }
 0x1d5   : > { %v2498_v57 = vadd.f32 %v2486_v56, %v2374_v54 }
 0x1d6   : > { %2516 = vst [vmem:[%s4359_s26 + $0xc] sm:$0xf] %v3073_v55 }
 0x1d7   : > { %v2501_v17 = vsel %vm457_vm10, %v2498_v57, 0.0 }
 0x1d8   : > { %v3074_v58 = vpack.c.bf16 %v2501_v17, %v2501_v17  ;;  %v2519_v3 = vadd.f32 %v2501_v17, %v2500_v53  ;;  %v2528_v59 = vmul.f32 %v2501_v17, %v2501_v17 }
 0x1da   : > { %2517 = vst [vmem:[%s4359_s26 + $0x1c] sm:$0xf] %v3074_v58  ;;  %v2520_v61 = vadd.f32 %v2519_v3, %v2502_v50  ;;  %v2530_v62 = vadd.f32 %v2528_v59, %v2527_v24 }
 0x1dc   : > { %v2521_v26 = vrot.slane %v2520_v61, 4  ;;  %v2531_v63 = vadd.f32 %v2530_v62, %v2529_v60 }
 0x1de   : > { %v2522_v0 = vadd.f32 %v2521_v26, %v2520_v61  ;;  %v2532_v1 = vrot.slane %v2531_v63, 4 }
 0x1e0   : > { %v2523_v4 = vrot.slane %v2522_v0, 2  ;;  %v2533_v6 = vadd.f32 %v2532_v1, %v2531_v63 }
 0x1e2   : > { %v2524_v7 = vadd.f32 %v2523_v4, %v2522_v0  ;;  %v2534_v8 = vrot.slane %v2533_v6, 2 }
 0x1e4   : > { %v2525_v2 = vrot.slane %v2524_v7, 1  ;;  %v2535_v9 = vadd.f32 %v2534_v8, %v2533_v6 }
 0x1e6   : > { %v2526_v10 = vadd.f32 %v2525_v2, %v2524_v7  ;;  %v2536_v11 = vrot.slane %v2535_v9, 1 }
 0x1e8   : > { %v2537_v12 = vadd.f32 %v2536_v11, %v2535_v9  ;;  %2538 = vst [vmem:[%s4375_s30 + $0x18] sm:$0xff] %v2526_v10 }
 0x1ea   : > { %2539 = vst [vmem:[%s4380_s9 + $0x18] sm:$0xff] %v2537_v12 }
 0x1eb PF: > { %s17_s21 = sadd.s32 1, %s3719_s21  }
 0x1ec   : > { %p14_p4 = scmp.ge.s32.totalorder %s17_s21, 4  }
 0x1ee   :  { %16 = sbr.rel (!%p14_p4) target bundleno = 1 (0x1), region = 105 }

// kernel: dcgan_g_forward.5
= control target key start
LH: loop header
LB: loop body
LE: loop exit
PB: predicated region body
PF: predicated region fallthrough
CT: control target
= control target key end

     0   :  { %s5066_s15 = smov 0   ;;  %s6679_s0 = inlined_call_operand.vmem [shape: bf16[2,104,128], index: 0, kind: input, shape index: {}]   ;;  %s6680_s1 = inlined_call_operand.vmem [shape: f32[1,128], index: 1, kind: input, shape index: {}]   ;;  %s6681_s2 = inlined_call_operand.vmem [shape: f32[1,128], index: 2, kind: input, shape index: {}]   ;;  %s6682_s3 = inlined_call_operand.vmem [shape: bf16[16,128,128], index: 3, kind: input, shape index: {}]   ;;  %s6683_s4 = inlined_call_operand.vmem [shape: f32[2,4,80,3], index: 4, kind: output, shape index: {}]  }
   0x1 LB: > { %s3470_s16 = sadd.s32 4294967295, %s5034_s15   ;;  %p3474_p0 = scmp.ge.s32.totalorder %s5034_s15, 1  ;;  %s5034_s15 = sphi %s5066_s15, %s14_s15  }
   0x2   : > { %p162_p1 = scmp.lt.s32.totalorder %s5034_s15, 3 }
   0x4   : > { %p163_p2 = pnand %p3474_p0, %p162_p1 }
   0x5   : > { %p188_p3 = scmp.lt.s32.totalorder (!%p163_p2), %s3470_s16, 1 }
   0x6   : > { %166 = sbr.rel (%p163_p2) target bundleno = 604 (0x25c), region = 36 }
   0xb   : > { %v4740_v0 = vld [vmem:[%s6682_s3 + $0x78] sm:$0xff]   ;;  %v5036_v1 = vmov 0.0   ;;  %v4742_v3 = vld [vmem:[%s6682_s3 + $0x70] sm:$0xff]   ;;  %vm5037_vm0 = vmmov 0   ;;  %s6703_s16 = smov (!%p188_p3, %s3470_s16), 1  ;;  %v278_v5 = vlaneseq  ;;  %v4744_v6 = vld [vmem:[%s6682_s3 + $0x68] sm:$0xff]  }
   0xc   : > { %4127 = vmatprep.subr.bf16.mxu0 %v5036_v1  ;;  %4163 = vmatprep.subr.bf16.mxu1 %v5036_v1  ;;  %v4741_v2 = vld [vmem:[%s6682_s3 + $0x38] sm:$0xff]   ;;  %v4743_v4 = vld [vmem:[%s6682_s3 + $0x30] sm:$0xff]   ;;  %v4745_v7 = vld [vmem:[%s6682_s3 + $0x28] sm:$0xff]   ;;  %s4703_s29 = smul.u32 52, %s6703_s16 }
   0xd   : > { %4128 = vmatpush3.bf16.msra.mxu0 %v4740_v0  ;;  %4143 = vmatprep.mubr.msk.bf16.mxu0 %vm5037_vm0, %v5036_v1  ;;  %v5105_v8 = vshrl.u32 %v278_v5, 7  ;;  %v4746_v9 = vld [vmem:[%s6682_s3 + $0x60] sm:$0xff]   ;;  %v4748_v12 = vld [vmem:[%s6682_s3 + $0x58] sm:$0xff]   ;;  %v4750_v19 = vld [vmem:[%s6682_s3 + $0x50] sm:$0xff]   ;;  %s4704_s14 = smul.u32 320, %s6703_s16 }
   0xe   : > { %4164 = vmatpush3.bf16.msra.mxu1 %v4741_v2  ;;  %4129 = vmatprep.subr.bf16.mxu0 %v5036_v1  ;;  %v4747_v10 = vld [vmem:[%s6682_s3 + $0x20] sm:$0xff]   ;;  %s5118_s10 = scalar_lea.vmem %s6679_s0, %s4703_s29  ;;  %v4749_v14 = vld [vmem:[%s6682_s3 + $0x18] sm:$0xff]   ;;  %v4751_v29 = vld [vmem:[%s6682_s3 + $0x10] sm:$0xff]  }
   0xf   : > { %4165 = vmatprep.subr.bf16.mxu1 %v5036_v1  ;;  %4179 = vmatprep.mubr.msk.bf16.mxu1 %vm5037_vm0, %v5036_v1  ;;  %v5121_v11 = vadd.s32 8, %v5105_v8  ;;  %v281_v13 = vadd.s32 16, %v5105_v8  ;;  %v200_v15 = vld [vmem:[%s5118_s10 + $0x4] sm:$0xf]  ;;  %v3914_v16 = vld [vmem:[%s5118_s10 + $0x8] sm:$0xff]   ;;  %v5140_v18 = vadd.s32 24, %v5105_v8 }
  0x10   : > { %v5137_v17 = vld [vmem:[%s6680_s1] ss:$0 sm:$0xff]  ;;  %v3896_v20 = vunpack.c.l.bf16 %v3914_v16  ;;  %v3897_v21 = vunpack.c.h.bf16 %v3914_v16  ;;  %v213_v22 = vunpack.c.l.bf16 %v200_v15  ;;  %v5151_v24 = vadd.s32 32, %v5105_v8  ;;  %v3915_v41 = vld [vmem:[%s5118_s10 + $0x10] sm:$0xff]   ;;  %v4752_v43 = vld [vmem:[%s6682_s3 + $0x48] sm:$0xff]  }
  0x11   : > { %4130 = vmatpush3.bf16.msra.mxu0 %v4742_v3  ;;  %v5148_v23 = vld [vmem:[%s6681_s2] ss:$0 sm:$0xff]  ;;  %v5154_v25 = vmul.u32.u64.low 3435973837, %v5121_v11  ;;  %v5155_v26 = vmul.u32.u64.high 3435973837, %v5121_v11, %v5154_v25  ;;  %v5157_v27 = vmul.u32.u64.low 3435973837, %v281_v13  ;;  %v5158_v28 = vmul.u32.u64.high 3435973837, %v281_v13, %v5157_v27 }
  0x12   : > { %4166 = vmatpush3.bf16.msra.mxu1 %v4743_v4  ;;  %4131 = vmatprep.subr.bf16.mxu0 %v5036_v1  ;;  %v233_v30 = vmul.f32 %v5137_v17, %v213_v22  ;;  %v234_v31 = vmul.f32 %v3896_v20, %v5137_v17  ;;  %v235_v32 = vmul.f32 %v3897_v21, %v5137_v17  ;;  %v5168_v33 = vadd.s32 40, %v5105_v8  ;;  %v4753_v44 = vld [vmem:[%s6682_s3 + $0x8] sm:$0xff]   ;;  %v4754_v53 = vld [vmem:[%s6682_s3 + $0x40] sm:$0xff]  }
  0x13   : > { %4167 = vmatprep.subr.bf16.mxu1 %v5036_v1  ;;  %v5172_v34 = vmul.u32.u64.low 3435973837, %v5140_v18  ;;  %v5173_v35 = vmul.u32.u64.high 3435973837, %v5140_v18, %v5172_v34  ;;  %v5176_v36 = vadd.s32 48, %v5105_v8  ;;  %v5179_v37 = vadd.s32 56, %v5105_v8  ;;  %v4755_v61 = vld [vmem:[%s6682_s3] sm:$0xff]  }
  0x14   : > { %v5182_v38 = vadd.f32 %v5148_v23, %v233_v30  ;;  %v5185_v39 = vadd.f32 %v5148_v23, %v234_v31  ;;  %v5188_v40 = vadd.f32 %v5148_v23, %v235_v32  ;;  %v5192_v42 = vadd.s32 64, %v5105_v8  ;;  %v4757_v30 = vld [vmem:[%s6682_s3 + $0xf8] sm:$0xff]  }
  0x15   : > { %4132 = vmatpush3.bf16.msra.mxu0 %v4744_v6  ;;  %v309_v45 = vshrl.u32 %v5155_v26, 3  ;;  %v320_v46 = vshrl.u32 %v5158_v28, 3  ;;  %vm501_vm1 = vcmp.ge.s32.totalorder %v5121_v11, 10  ;;  %v3900_v47 = vunpack.c.l.bf16 %v3915_v41 }
  0x16   : > { %4168 = vmatpush3.bf16.msra.mxu1 %v4745_v7  ;;  %4133 = vmatprep.subr.bf16.mxu0 %v5036_v1  ;;  %v3901_v48 = vunpack.c.h.bf16 %v3915_v41  ;;  %v266_v49 = vmax.f32 %v5182_v38, 0.0  ;;  %v267_v50 = vmax.f32 %v5185_v39, 0.0  ;;  %v5207_v51 = vadd.s32 72, %v5105_v8 }
  0x17   : > { %4169 = vmatprep.subr.bf16.mxu1 %v5036_v1  ;;  %v5210_v52 = vadd.s32 80, %v5105_v8  ;;  %v268_v54 = vmax.f32 %v5188_v40, 0.0  ;;  %v310_v55 = vmul.u32 10, %v309_v45  ;;  %v321_v56 = vmul.u32 10, %v320_v46 }
  0x18   : > { %v331_v57 = vshrl.u32 %v5173_v35, 3  ;;  %v236_v58 = vmul.f32 %v3900_v47, %v5137_v17  ;;  %v5220_v59 = vmul.u32.u64.low 3435973837, %v5151_v24  ;;  %v5221_v60 = vmul.u32.u64.high 3435973837, %v5151_v24, %v5220_v59 }
  0x19   : > { %4134 = vmatpush3.bf16.msra.mxu0 %v4746_v9  ;;  %v311_v62 = vsub.s32 %v5121_v11, %v310_v55  ;;  %v322_v63 = vsub.s32 %v281_v13, %v321_v56  ;;  %v237_v2 = vmul.f32 %v3901_v48, %v5137_v17  ;;  %v5232_v3 = vpack.c.bf16 %v266_v49, %v5036_v1  ;;  %v4759_v48 = vld [vmem:[%s6682_s3 + $0xf0] sm:$0xff]  }
  0x1a   : > { %4170 = vmatpush3.bf16.msra.mxu1 %v4747_v10  ;;  %4135 = vmatprep.subr.bf16.mxu0 %v5036_v1  ;;  %v332_v0 = vmul.u32 10, %v331_v57  ;;  %v5235_v4 = vmul.u32.u64.low 3435973837, %v5168_v33  ;;  %v5236_v5 = vmul.u32.u64.high 3435973837, %v5168_v33, %v5235_v4  ;;  %v5241_v10 = vadd.f32 %v5148_v23, %v236_v58 }
  0x1b   : > { %4171 = vmatprep.subr.bf16.mxu1 %v5036_v1  ;;  %vm436_vm2 = vcmp.ne.s32.totalorder %v311_v62, 0  ;;  %vm437_vm3 = vcmp.ne.s32.totalorder %v322_v63, 0  ;;  %vm449_vm4 = vcmp.lt.s32.totalorder %v311_v62, 0  ;;  %vm450_vm5 = vcmp.lt.s32.totalorder %v322_v63, 0 }
  0x1c   : > { %v333_v6 = vsub.s32 %v5140_v18, %v332_v0  ;;  %vm462_vm6 = vmand %vm449_vm4, %vm436_vm2  ;;  %v475_v7 = vadd.s32 10, %v311_v62  ;;  %v476_v9 = vadd.s32 10, %v322_v63  ;;  %v5244_v13 = vadd.f32 %v5148_v23, %v237_v2  ;;  %v4756_v0 = vld [vmem:[%s6682_s3 + $0xb8] sm:$0xff]   ;;  %v4767_v2 = vld [vmem:[%s6682_s3 + $0xd0] sm:$0xff]  }
  0x1d   : > { %4136 = vmatpush3.bf16.msra.mxu0 %v4748_v12  ;;  %vm463_vm9 = vmand %vm450_vm5, %vm437_vm3  ;;  %v342_v18 = vshrl.u32 %v5221_v60, 3  ;;  %vm670_vm4 = vsmask.f32 7424  ;;  %v269_v25 = vmax.f32 %v5241_v10, 0.0  ;;  %v5356_v40 = vadd.s32 88, %v5105_v8  ;;  %v4765_v10 = vld [vmem:[%s6682_s3 + $0xd8] sm:$0xff]  }
  0x1e   : > { %4172 = vmatpush3.bf16.msra.mxu1 %v4749_v14  ;;  %4137 = vmatprep.subr.bf16.mxu0 %v5036_v1  ;;  %vm438_vm7 = vcmp.ne.s32.totalorder %v333_v6, 0  ;;  %vm451_vm8 = vcmp.lt.s32.totalorder %v333_v6, 0  ;;  %v477_v12 = vadd.s32 10, %v333_v6  ;;  %v3916_v14 = vld [vmem:[%s5118_s10 + $0x18] sm:$0xff]   ;;  %v488_v15 = vsel %vm462_vm6, %v475_v7, %v311_v62  ;;  %v4761_v7 = vld [vmem:[%s6682_s3 + $0xe8] sm:$0xff]  }
  0x1f   : > { %4173 = vmatprep.subr.bf16.mxu1 %v5036_v1  ;;  %vm464_vm10 = vmand %vm451_vm8, %vm438_vm7  ;;  %v489_v16 = vsel %vm463_vm9, %v476_v9, %v322_v63  ;;  %vm540_vm11 = vcmp.ge.s32.totalorder %v488_v15, 1  ;;  %vm566_vm13 = vcmp.le.s32.totalorder %v488_v15, 8  ;;  %v343_v21 = vmul.u32 10, %v342_v18  ;;  %v5365_v15 = vld [vmem:[%s5118_s10 + $0x28] sm:$0xff]  }
  0x20   : > { %v490_v20 = vsel %vm464_vm10, %v477_v12, %v333_v6  ;;  %vm541_vm12 = vcmp.ge.s32.totalorder %v489_v16, 1  ;;  %vm553_vm15 = vmand %vm501_vm1, %vm540_vm11  ;;  %vm567_vm2 = vcmp.le.s32.totalorder %v489_v16, 8  ;;  %v3904_v27 = vunpack.c.l.bf16 %v3916_v14  ;;  %v4758_v16 = vld [vmem:[%s6682_s3 + $0xb0] sm:$0xff]  }
  0x21   : > { %4138 = vmatpush3.bf16.msra.mxu0 %v4750_v19  ;;  %v353_v19 = vshrl.u32 %v5236_v5, 3  ;;  %vm542_vm14 = vcmp.ge.s32.totalorder %v490_v20, 1  ;;  %vm568_vm3 = vcmp.le.s32.totalorder %v490_v20, 8  ;;  %vm5253_vm5 = vmand %vm553_vm15, %vm566_vm13  ;;  %v3905_v28 = vunpack.c.h.bf16 %v3916_v14 }
  0x22   : > { %4174 = vmatpush3.bf16.msra.mxu1 %v4751_v29  ;;  %4139 = vmatprep.subr.bf16.mxu0 %v5036_v1  ;;  %vm5258_vm6 = vmand %vm541_vm12, %vm567_vm2  ;;  %v618_v11 = vsel %vm5253_vm5, %v266_v49, 0.0  ;;  %v344_v31 = vsub.s32 %v5151_v24, %v343_v21  ;;  %v5271_v32 = vmul.u32.u64.low 3435973837, %v5176_v36  ;;  %v5272_v34 = vmul.u32.u64.high 3435973837, %v5176_v36, %v5271_v32 }
  0x23   : > { %4175 = vmatprep.subr.bf16.mxu1 %v5036_v1  ;;  %v354_v26 = vmul.u32 10, %v353_v19  ;;  %vm5275_vm1 = vmand %vm542_vm14, %vm568_vm3  ;;  %v619_v38 = vsel %vm5258_vm6, %v267_v50, 0.0  ;;  %v5284_v41 = vpack.c.bf16 %v618_v11, %v5036_v1  ;;  %v238_v24 = vmul.f32 %v3904_v27, %v5137_v17  ;;  %v4763_v27 = vld [vmem:[%s6682_s3 + $0xe0] sm:$0xff]  }
  0x24   : > { %vm5038_vm7 = vmmov 1   ;;  %vm439_vm9 = vcmp.ne.s32.totalorder %v344_v31, 0  ;;  %vm452_vm10 = vcmp.lt.s32.totalorder %v344_v31, 0  ;;  %v478_v45 = vadd.s32 10, %v344_v31 }
  0x25   : > { %4140 = vmatpush3.bf16.msra.mxu0 %v4752_v43  ;;  %v355_v43 = vsub.s32 %v5168_v33, %v354_v26  ;;  %vm3511_vm8 = vmpackc.low %vm5253_vm5, %vm5038_vm7  ;;  %v672_v47 = vshrl.u32 %v5284_v41, 16  ;;  %v674_v33 = vshll.u32 %v5284_v41, 16  ;;  %v270_v57 = vmax.f32 %v5244_v13, 0.0 }
  0x26   : > { %4176 = vmatpush3.bf16.msra.mxu1 %v4753_v44  ;;  %4141 = vmatprep.subr.bf16.mxu0 %v5036_v1  ;;  %v620_v44 = vsel %vm5275_vm1, %v268_v54, 0.0  ;;  %vm465_vm12 = vmand %vm452_vm10, %vm439_vm9  ;;  %v239_v59 = vmul.f32 %v3905_v28, %v5137_v17  ;;  %v5313_v60 = vadd.f32 %v5148_v23, %v238_v24  ;;  %v3515_v6 = vpack.c.bf16 %v268_v54, %v267_v50 }
  0x27   : > { %4177 = vmatprep.subr.bf16.mxu1 %v5036_v1  ;;  %v5294_v46 = vpack.c.bf16 %v620_v44, %v619_v38  ;;  %vm440_vm11 = vcmp.ne.s32.totalorder %v355_v43, 0  ;;  %vm453_vm13 = vcmp.lt.s32.totalorder %v355_v43, 0  ;;  %v479_v49 = vadd.s32 10, %v355_v43  ;;  %vm3514_vm9 = vmpackc.low %vm5275_vm1, %vm5258_vm6 }
  0x28   : > { %v676_v55 = vrot.slane %v674_v33, 1  ;;  %vm466_vm14 = vmand %vm453_vm13, %vm440_vm11  ;;  %v364_v9 = vshrl.u32 %v5272_v34, 3  ;;  %v5362_v54 = vadd.f32 %v5148_v23, %v239_v59  ;;  %v271_v8 = vmax.f32 %v5313_v60, 0.0 }
  0x29   : > { %4142 = vmatpush3.bf16.msra.mxu0 %v4754_v53  ;;  %v491_v53 = vsel %vm465_vm12, %v478_v45, %v344_v31  ;;  %v5307_v56 = vshll.u32 %v5294_v46, 16  ;;  %v492_v58 = vsel %vm466_vm14, %v479_v49, %v355_v43  ;;  %v5335_v5 = vshrl.u32 %v5294_v46, 16 }
  0x2a   : > { %4178 = vmatpush3.bf16.msra.mxu1 %v4755_v61  ;;  %4199 = vmatprep.subr.bf16.mxu0 %v5036_v1  ;;  %vm543_vm15 = vcmp.ge.s32.totalorder %v491_v53, 1  ;;  %vm569_vm2 = vcmp.le.s32.totalorder %v491_v53, 8  ;;  %v3917_v61 = vld [vmem:[%s5118_s10 + $0x20] sm:$0xff]   ;;  %v677_v62 = vor.u32 %v676_v55, %v672_v47  ;;  %vm544_vm3 = vcmp.ge.s32.totalorder %v492_v58, 1  ;;  %s6390_s10 = scalar_lea.vmem %s6683_s4, %s4704_s14 }
  0x2b   : > { %4235 = vmatprep.subr.bf16.mxu1 %v5036_v1  ;;  %v681_v63 = vrot.slane %v5307_v56, 1  ;;  %vm570_vm5 = vcmp.le.s32.totalorder %v492_v58, 8  ;;  %vm5322_vm7 = vmand %vm543_vm15, %vm569_vm2  ;;  %v3908_v39 = vunpack.c.l.bf16 %v3917_v61  ;;  %v365_v14 = vmul.u32 10, %v364_v9 }
  0x2c   : > { %v621_v4 = vsel %vm5322_vm7, %v269_v25, 0.0  ;;  %v5374_v18 = vmul.u32.u64.low 3435973837, %v5179_v37  ;;  %v5375_v19 = vmul.u32.u64.high 3435973837, %v5179_v37, %v5374_v18  ;;  %v3909_v20 = vunpack.c.h.bf16 %v3917_v61 }
  0x2d   : > { %4180 = vmatmul.mubr.msk.bf16.vlgmr.msra.gmra.mxu1 %vm3511_vm8, %v5232_v3  ;;  %vm5326_vm8 = vmand %vm544_vm3, %vm570_vm5  ;;  %v5346_v12 = vsel %vm670_vm4, %v677_v62, %v681_v63  ;;  %v685_v21 = vor.u32 %v5335_v5, %v681_v63  ;;  %v366_v26 = vsub.s32 %v5176_v36, %v365_v14  ;;  %v240_v28 = vmul.f32 %v3908_v39, %v5137_v17  ;;  %v4760_v36 = vld [vmem:[%s6682_s3 + $0xa8] sm:$0xff]   ;;  %v4762_v62 = vld [vmem:[%s6682_s3 + $0xa0] sm:$0xff]  }
  0x2e   : > { %4236 = vmatpush3.bf16.msra.mxu1 %v4757_v30  ;;  %4183 = vmatprep.mubr.msk.bf16.mxu1 %vm5037_vm0, %v5036_v1  ;;  %v622_v13 = vsel %vm5326_vm8, %v270_v57, 0.0  ;;  %v5395_v11 = vmul.u32.u64.low 3435973837, %v5192_v42  ;;  %v5396_v30 = vmul.u32.u64.high 3435973837, %v5192_v42, %v5395_v11  ;;  %v3912_v29 = vunpack.c.l.bf16 %v5365_v15  ;;  %vm3517_vm13 = vmpackc.low %vm5326_vm8, %vm5322_vm7 }
  0x2f   : > { %4237 = vmatprep.subr.bf16.mxu1 %v5036_v1  ;;  %4144 = vmatmul.mubr.bf16.vlgmr.msra.gmra.mxu0 %v5346_v12  ;;  %v5359_v50 = vpack.c.bf16 %v622_v13, %v621_v4  ;;  %vm441_vm6 = vcmp.ne.s32.totalorder %v366_v26, 0  ;;  %vm454_vm1 = vcmp.lt.s32.totalorder %v366_v26, 0  ;;  %v480_v32 = vadd.s32 10, %v366_v26 }
  0x30   : > { %4200 = vmatpush3.bf16.msra.mxu0 %v4756_v0  ;;  %4147 = vmatprep.mubr.msk.bf16.mxu0 %vm5037_vm0, %v5036_v1  ;;  %v272_v34 = vmax.f32 %v5362_v54, 0.0  ;;  %v375_v35 = vshrl.u32 %v5375_v19, 3  ;;  %vm467_vm10 = vmand %vm454_vm1, %vm441_vm6  ;;  %v3518_v38 = vpack.c.bf16 %v270_v57, %v269_v25  ;;  %v241_v43 = vmul.f32 %v3909_v20, %v5137_v17 }
  0x31   : > { %4201 = vmatprep.subr.bf16.mxu0 %v5036_v1  ;;  %v5380_v22 = vshll.u32 %v5359_v50, 16  ;;  %v493_v44 = vsel %vm467_vm10, %v480_v32, %v366_v26  ;;  %v5414_v45 = vshrl.u32 %v5359_v50, 16  ;;  %v3913_v25 = vunpack.c.h.bf16 %v5365_v15 }
  0x32   : > { %4238 = vmatpush3.bf16.msra.mxu1 %v4759_v48  ;;  %v5417_v48 = vadd.f32 %v5148_v23, %v240_v28  ;;  %v376_v49 = vmul.u32 10, %v375_v35  ;;  %vm545_vm11 = vcmp.ge.s32.totalorder %v493_v44, 1  ;;  %vm571_vm12 = vcmp.le.s32.totalorder %v493_v44, 8 }
  0x33   : > { %4239 = vmatprep.subr.bf16.mxu1 %v5036_v1  ;;  %v689_v31 = vrot.slane %v5380_v22, 1  ;;  %v386_v53 = vshrl.u32 %v5396_v30, 3  ;;  %v5431_v55 = vmul.u32.u64.low 3435973837, %v5207_v51  ;;  %v5432_v57 = vmul.u32.u64.high 3435973837, %v5207_v51, %v5431_v55  ;;  %vm5455_vm14 = vmand %vm545_vm11, %vm571_vm12 }
  0x34   : > { %4202 = vmatpush3.bf16.msra.mxu0 %v4758_v16  ;;  %v242_v58 = vmul.f32 %v3912_v29, %v5137_v17  ;;  %v5437_v59 = vrot.slane %v672_v47, 5  ;;  %v377_v61 = vsub.s32 %v5179_v37, %v376_v49  ;;  %v5446_v63 = vadd.f32 %v5148_v23, %v241_v43  ;;  %v4771_v43 = vld [vmem:[%s6682_s3 + $0xc0] sm:$0xff]  }
  0x35   : > { %4184 = vmatmul.mubr.msk.bf16.gmra.mxu1 %vm3514_vm9, %v3515_v6  ;;  %v5410_v24 = vsel %vm670_vm4, %v685_v21, %v689_v31  ;;  %4203 = vmatprep.subr.bf16.mxu0 %v5036_v1  ;;  %v3521_v0 = vpack.c.bf16 %v272_v34, %v271_v8  ;;  %v273_v37 = vmax.f32 %v5417_v48, 0.0  ;;  %v387_v4 = vmul.u32 10, %v386_v53 }
  0x36   : > { %4240 = vmatpush3.bf16.msra.mxu1 %v4761_v7  ;;  %4187 = vmatprep.mubr.msk.bf16.mxu1 %vm5037_vm0, %v5036_v1  ;;  %v5466_v6 = vmul.u32.u64.low 3435973837, %v5210_v52  ;;  %v5467_v7 = vmul.u32.u64.high 3435973837, %v5210_v52, %v5466_v6  ;;  %vm442_vm15 = vcmp.ne.s32.totalorder %v377_v61, 0  ;;  %vm455_vm2 = vcmp.lt.s32.totalorder %v377_v61, 0 }
  0x37   : > { %4241 = vmatprep.subr.bf16.mxu1 %v5036_v1  ;;  %4148 = vmatmul.mubr.bf16.gmra.mxu0 %v5410_v24  ;;  %v481_v9 = vadd.s32 10, %v377_v61  ;;  %v243_v3 = vmul.f32 %v3913_v25, %v5137_v17  ;;  %vm468_vm3 = vmand %vm455_vm2, %vm442_vm15  ;;  %v5476_v13 = vor.u32 %v5414_v45, %v689_v31  ;;  %v388_v39 = vsub.s32 %v5192_v42, %v387_v4  ;;  %v4764_v17 = vld [vmem:[%s6682_s3 + $0x98] sm:$0xff]   ;;  %v4770_v6 = vld [vmem:[%s6682_s3 + $0x80] sm:$0xff]  }
  0x38   : > { %4204 = vmatpush3.bf16.msra.mxu0 %v4760_v36  ;;  %4151 = vmatprep.mubr.msk.bf16.mxu0 %vm5037_vm0, %v5036_v1  ;;  %v397_v14 = vshrl.u32 %v5432_v57, 3  ;;  %v5482_v15 = vadd.f32 %v5148_v23, %v242_v58  ;;  %v623_v18 = vsel %vm5455_vm14, %v271_v8, 0.0  ;;  %v408_v26 = vshrl.u32 %v5467_v7, 3  ;;  %v4768_v57 = vld [vmem:[%s6682_s3 + $0x88] sm:$0xff]  }
  0x39   : > { %4205 = vmatprep.subr.bf16.mxu0 %v5036_v1  ;;  %v494_v16 = vsel %vm468_vm3, %v481_v9, %v377_v61  ;;  %v5492_v42 = vmul.u32.u64.low 3435973837, %v5356_v40  ;;  %v5493_v19 = vmul.u32.u64.high 3435973837, %v5356_v40, %v5492_v42  ;;  %vm443_vm8 = vcmp.ne.s32.totalorder %v388_v39, 0 }
  0x3a   : > { %4242 = vmatpush3.bf16.msra.mxu1 %v4763_v27  ;;  %vm546_vm5 = vcmp.ge.s32.totalorder %v494_v16, 1  ;;  %vm572_vm7 = vcmp.le.s32.totalorder %v494_v16, 8  ;;  %v398_v20 = vmul.u32 10, %v397_v14  ;;  %vm456_vm6 = vcmp.lt.s32.totalorder %v388_v39, 0  ;;  %v4769_v27 = vld [vmem:[%s6682_s3 + $0xc8] sm:$0xff]  }
  0x3b   : > { %4243 = vmatprep.subr.bf16.mxu1 %v5036_v1  ;;  %vm5496_vm9 = vmand %vm546_vm5, %vm572_vm7  ;;  %v482_v8 = vadd.s32 10, %v388_v39  ;;  %v5501_v21 = vadd.f32 %v5148_v23, %v243_v3  ;;  %v274_v11 = vmax.f32 %v5446_v63, 0.0  ;;  %v4766_v23 = vld [vmem:[%s6682_s3 + $0x90] sm:$0xff]   ;;  %v275_v29 = vmax.f32 %v5482_v15, 0.0 }
  0x3c   : > { %4206 = vmatpush3.bf16.msra.mxu0 %v4762_v62  ;;  %v624_v28 = vsel %vm5496_vm9, %v272_v34, 0.0  ;;  %v399_v30 = vsub.s32 %v5207_v51, %v398_v20  ;;  %vm469_vm1 = vmand %vm456_vm6, %vm443_vm8  ;;  %v409_v36 = vmul.u32 10, %v408_v26  ;;  %v419_v51 = vshrl.u32 %v5493_v19, 3 }
  0x3d   : > { %4188 = vmatmul.mubr.msk.bf16.gmra.mxu1 %vm3517_vm13, %v3518_v38  ;;  %4207 = vmatprep.subr.bf16.mxu0 %v5036_v1  ;;  %v5518_v31 = vpack.c.bf16 %v624_v28, %v623_v18  ;;  %v495_v54 = vsel %vm469_vm1, %v482_v8, %v388_v39  ;;  %vm3520_vm10 = vmpackc.low %vm5496_vm9, %vm5455_vm14  ;;  %vm524_vm11 = vcmp.lt.s32.totalorder %v5356_v40, 90  ;;  %v276_v35 = vmax.f32 %v5501_v21, 0.0 }
  0x3e   : > { %4191 = vmatprep.mubr.msk.bf16.mxu1 %vm5037_vm0, %v5036_v1  ;;  %4244 = vmatpush3.bf16.msra.mxu1 %v4765_v10  ;;  %vm444_vm12 = vcmp.ne.s32.totalorder %v399_v30, 0  ;;  %vm457_vm13 = vcmp.lt.s32.totalorder %v399_v30, 0  ;;  %v483_v32 = vadd.s32 10, %v399_v30  ;;  %vm547_vm15 = vcmp.ge.s32.totalorder %v495_v54, 1 }
  0x3f   : > { %4245 = vmatprep.subr.bf16.mxu1 %v5036_v1  ;;  %v5528_v34 = vshll.u32 %v5518_v31, 16  ;;  %vm470_vm2 = vmand %vm457_vm13, %vm444_vm12  ;;  %vm573_vm3 = vcmp.le.s32.totalorder %v495_v54, 8  ;;  %v410_v38 = vsub.s32 %v5210_v52, %v409_v36  ;;  %v5542_v10 = vshrl.u32 %v5518_v31, 16 }
  0x40   : > { %4208 = vmatpush3.bf16.msra.mxu0 %v4764_v17  ;;  %v496_v44 = vsel %vm470_vm2, %v483_v32, %v399_v30  ;;  %vm5537_vm14 = vmand %vm547_vm15, %vm573_vm3  ;;  %v420_v25 = vmul.u32 10, %v419_v51  ;;  %v3524_v53 = vpack.c.bf16 %v274_v11, %v273_v37  ;;  %v1154_v7 = vrot.slane %v5335_v5, 5  ;;  %v4779_v32 = vld [vmem:[%s6682_s3 + $0x120] sm:$0xff]  }
  0x41   : > { %4209 = vmatprep.subr.bf16.mxu0 %v5036_v1  ;;  %v697_v52 = vrot.slane %v5528_v34, 1  ;;  %vm548_vm5 = vcmp.ge.s32.totalorder %v496_v44, 1  ;;  %vm574_vm7 = vcmp.le.s32.totalorder %v496_v44, 8  ;;  %v625_v55 = vsel %vm5537_vm14, %v273_v37, 0.0 }
  0x42   : > { %4246 = vmatpush3.bf16.msra.mxu1 %v4767_v2  ;;  %vm5555_vm8 = vmand %vm548_vm5, %vm574_vm7  ;;  %v421_v61 = vsub.s32 %v5356_v40, %v420_v25  ;;  %vm445_vm9 = vcmp.ne.s32.totalorder %v410_v38, 0  ;;  %vm458_vm6 = vcmp.lt.s32.totalorder %v410_v38, 0  ;;  %v484_v62 = vadd.s32 10, %v410_v38  ;;  %v4773_v40 = vld [vmem:[%s6682_s3 + $0x138] sm:$0xff]  }
  0x43   : > { %4247 = vmatprep.subr.bf16.mxu1 %v5036_v1  ;;  %v5563_v48 = vsel %vm670_vm4, %v5476_v13, %v697_v52  ;;  %v626_v63 = vsel %vm5555_vm8, %v274_v11, 0.0  ;;  %vm471_vm1 = vmand %vm458_vm6, %vm445_vm9  ;;  %v701_v4 = vor.u32 %v5542_v10, %v697_v52  ;;  %v1155_v9 = vrot.slane %v5307_v56, 6  ;;  %v4777_v11 = vld [vmem:[%s6682_s3 + $0x128] sm:$0xff]  }
  0x44   : > { %4210 = vmatpush3.bf16.msra.mxu0 %v4766_v23  ;;  %v5570_v47 = vpack.c.bf16 %v626_v63, %v625_v55  ;;  %vm459_vm12 = vcmp.lt.s32.totalorder %v421_v61, 0  ;;  %v485_v37 = vadd.s32 10, %v421_v61  ;;  %vm3523_vm13 = vmpackc.low %vm5555_vm8, %vm5537_vm14  ;;  %vm1150_vm9 = vsmask.f32 2304  ;;  %v4785_v63 = vld [vmem:[%s6682_s3 + $0x108] sm:$0xff]  }
  0x45   : > { %4192 = vmatmul.mubr.msk.bf16.gmra.mxu1 %vm3520_vm10, %v3521_v0  ;;  %4211 = vmatprep.subr.bf16.mxu0 %v5036_v1  ;;  %v1152_v0 = vrot.slane %v674_v33, 6  ;;  %vm446_vm10 = vcmp.ne.s32.totalorder %v421_v61, 0  ;;  %v497_v33 = vsel %vm471_vm1, %v484_v62, %v410_v38  ;;  %v1156_v39 = vor.u32 %v1155_v9, %v1154_v7  ;;  %v4772_v38 = vld [vmem:[%s6682_s3 + $0x178] sm:$0xff]   ;;  %v4776_v62 = vld [vmem:[%s6682_s3 + $0x168] sm:$0xff]   ;;  %v4787_v9 = vld [vmem:[%s6682_s3 + $0x100] sm:$0xff]  }
  0x46   : > { %4195 = vmatprep.mubr.msk.bf16.mxu1 %vm5037_vm0, %v5036_v1  ;;  %4248 = vmatpush3.bf16.msra.mxu1 %v4769_v27  ;;  %vm472_vm15 = vmand %vm459_vm12, %vm446_vm10  ;;  %v5586_v2 = vshll.u32 %v5570_v47, 16  ;;  %vm549_vm2 = vcmp.ge.s32.totalorder %v497_v33, 1  ;;  %vm575_vm3 = vcmp.le.s32.totalorder %v497_v33, 8  ;;  %v5598_v18 = vshrl.u32 %v5570_v47, 16  ;;  %v4775_v27 = vld [vmem:[%s6682_s3 + $0x130] sm:$0xff]  }
  0x47   : > { %4249 = vmatprep.subr.bf16.mxu1 %v5036_v1  ;;  %4152 = vmatmul.mubr.bf16.gmra.mxu0 %v5563_v48  ;;  %v498_v3 = vsel %vm472_vm15, %v485_v37, %v421_v61  ;;  %vm588_vm7 = vmand %vm549_vm2, %vm575_vm3  ;;  %v1153_v13 = vor.u32 %v1152_v0, %v5437_v59  ;;  %v1158_v19 = vrot.slane %v5414_v45, 5  ;;  %v1159_v20 = vrot.slane %v5380_v22, 6 }
  0x48   : > { %4155 = vmatprep.mubr.msk.bf16.mxu0 %vm5037_vm0, %v5036_v1  ;;  %4212 = vmatpush3.bf16.msra.mxu0 %v4768_v57  ;;  %vm550_vm14 = vcmp.ge.s32.totalorder %v498_v3, 1  ;;  %vm576_vm5 = vcmp.le.s32.totalorder %v498_v3, 8  ;;  %v705_v14 = vrot.slane %v5586_v2, 1  ;;  %v627_v16 = vsel %vm588_vm7, %v275_v29, 0.0  ;;  %v4783_v57 = vld [vmem:[%s6682_s3 + $0x110] sm:$0xff]  }
  0x49   : > { %4213 = vmatprep.subr.bf16.mxu0 %v5036_v1  ;;  %vm563_vm8 = vmand %vm524_vm11, %vm550_vm14  ;;  %v5612_v42 = vsel %vm1150_vm9, %v1153_v13, %v1156_v39  ;;  %v1160_v26 = vor.u32 %v1159_v20, %v1158_v19  ;;  %v1162_v30 = vrot.slane %v5542_v10, 5  ;;  %v1163_v23 = vrot.slane %v5528_v34, 6  ;;  %v4780_v13 = vld [vmem:[%s6682_s3 + $0x158] sm:$0xff]  }
  0x4a   : > { %4250 = vmatpush3.bf16.msra.mxu1 %v4771_v43  ;;  %vm589_vm6 = vmand %vm563_vm8, %vm576_vm5  ;;  %v5601_v17 = vsel %vm670_vm4, %v701_v4, %v705_v14  ;;  %v709_v60 = vor.u32 %v5598_v18, %v705_v14  ;;  %v986_v54 = vrot.slane %v5284_v41, 5  ;;  %v987_v36 = vrot.slane %v5294_v46, 5  ;;  %v4781_v43 = vld [vmem:[%s6682_s3 + $0x118] sm:$0xff]  }
  0x4b   : > { %4307 = vmatprep.subr.bf16.mxu1 %v5036_v1  ;;  %v628_v59 = vsel %vm589_vm6, %v276_v35, 0.0  ;;  %v5640_v29 = vsel %vm1150_vm9, %v1156_v39, %v1160_v26  ;;  %v1164_v51 = vor.u32 %v1163_v23, %v1162_v30  ;;  %v1166_v49 = vrot.slane %v5598_v18, 5  ;;  %v4789_v19 = vld [vmem:[%s6682_s3 + $0x1f8] sm:$0xff]   ;;  %v4795_v30 = vld [vmem:[%s6682_s3 + $0x1e0] sm:$0xff]  }
  0x4c   : > { %4214 = vmatpush3.bf16.msra.mxu0 %v4770_v6  ;;  %v5609_v15 = vpack.c.bf16 %v628_v59, %v627_v16  ;;  %v1167_v25 = vrot.slane %v5586_v2, 6  ;;  %v989_v52 = vrot.slane %v5359_v50, 5  ;;  %v991_v33 = vrot.slane %v5518_v31, 5  ;;  %v4778_v6 = vld [vmem:[%s6682_s3 + $0x160] sm:$0xff]   ;;  %v4782_v16 = vld [vmem:[%s6682_s3 + $0x150] sm:$0xff]   ;;  %v4788_v23 = vld [vmem:[%s6682_s3 + $0x1b8] sm:$0xff]  }
  0x4d   : > { %4196 = vmatmul.mubr.msk.bf16.gmra.mxu1 %vm3523_vm13, %v3524_v53  ;;  %4271 = vmatprep.subr.bf16.mxu0 %v5036_v1  ;;  %v5665_v44 = vsel %vm1150_vm9, %v1160_v26, %v1164_v51  ;;  %v4774_v53 = vld [vmem:[%s6682_s3 + $0x170] sm:$0xff]   ;;  %v993_v14 = vrot.slane %v5570_v47, 5  ;;  %vm1417_vm11 = vcmask 1046528   ;;  %vm2519_vm1 = vsmask.f32 5376 }
  0x4e   : > { %4251 = vmatprep.mubr.msk.bf16.mxu1 %vm5037_vm0, %v5036_v1  ;;  %v5621_v8 = vshll.u32 %v5609_v15, 16  ;;  %v1168_v55 = vor.u32 %v1167_v25, %v1166_v49  ;;  %v1170_v58 = vshrl.u32 %v5609_v15, 16  ;;  %v995_v20 = vrot.slane %v5609_v15, 5 }
  0x4f   : > { %4156 = vmatmul.mubr.bf16.gmra.mxu0 %v5601_v17  ;;  %v2531_v49 = vrot.slane %v5598_v18, 2  ;;  %v2532_v25 = vrot.slane %v5586_v2, 3  ;;  %v1423_v2 = vrot.slane %v5518_v31, 1  ;;  %v4794_v18 = vld [vmem:[%s6682_s3 + $0x1a0] sm:$0xff]   ;;  %vm1841_vm10 = vcmask 1041408  }
  0x50   : > { %4159 = vmatprep.mubr.msk.bf16.mxu0 %vm5037_vm0, %v5036_v1  ;;  %v713_v21 = vrot.slane %v5621_v8, 1  ;;  %v5697_v0 = vsel %vm1150_vm9, %v1164_v51, %v1168_v55  ;;  %v1172_v37 = vrot.slane %v1170_v58, 5  ;;  %v1173_v4 = vrot.slane %v5621_v8, 6  ;;  %v4797_v51 = vld [vmem:[%s6682_s3 + $0x1d8] sm:$0xff]  }
  0x51   : > { %vm2354_vm12 = vcmask 1045504   ;;  %vm3196_vm13 = vcmask 1044480   ;;  %vm1372_vm15 = vcmask 23552  }
  0x52   : > { %v5632_v28 = vsel %vm670_vm4, %v709_v60, %v713_v21  ;;  %vm985_vm4 = vcmask 1042432   ;;  %v1174_v7 = vor.u32 %v1173_v4, %v1172_v37  ;;  %v4786_v60 = vld [vmem:[%s6682_s3 + $0x140] sm:$0xff]   ;;  %v4791_v21 = vld [vmem:[%s6682_s3 + $0x1f0] sm:$0xff]  }
  0x53   : > { %v5656_v35 = vsel %vm985_vm4, %v986_v54, %v987_v36  ;;  %v5687_v61 = vsel %vm985_vm4, %v987_v36, %v989_v52  ;;  %v5719_v3 = vsel %vm985_vm4, %v989_v52, %v991_v33  ;;  %v5741_v59 = vsel %vm985_vm4, %v991_v33, %v993_v14 }
  0x54   : > { %v5726_v39 = vsel %vm1150_vm9, %v1168_v55, %v1174_v7  ;;  %v5766_v26 = vsel %vm985_vm4, %v993_v14, %v995_v20  ;;  %v2527_v54 = vrot.slane %v5542_v10, 2  ;;  %v2528_v36 = vrot.slane %v5528_v34, 3  ;;  %v4790_v10 = vld [vmem:[%s6682_s3 + $0x1b0] sm:$0xff]  }
  0x55   : > { %4252 = vmatmul.mubr.bf16.vlgmr.msra.gmra.mxu1 %v5612_v42  ;;  %v1421_v34 = vrot.slane %v5359_v50, 1  ;;  %v2533_v52 = vor.u32 %v2532_v25, %v2531_v49  ;;  %v1843_v7 = vrot.slane %v5294_v46, 6  ;;  %v4819_v49 = vld [vmem:[%s6682_s3 + $0x200] sm:$0xff]   ;;  %v4812_v25 = vld [vmem:[%s6682_s3 + $0x258] sm:$0xff]  }
  0x56   : > { %4308 = vmatpush3.bf16.msra.mxu1 %v4773_v40  ;;  %4255 = vmatprep.mubr.msk.bf16.mxu1 %vm5037_vm0, %v5036_v1  ;;  %v4784_v40 = vld [vmem:[%s6682_s3 + $0x148] sm:$0xff]  }
  0x57   : > { %4309 = vmatprep.subr.bf16.mxu1 %v5036_v1  ;;  %4160 = vmatmul.mubr.bf16.gmra.mxu0 %v5632_v28  ;;  %v1424_v37 = vsel %vm1417_vm11, %v1421_v34, %v1423_v2 }
  0x58   : > { %4215 = vmatprep.mubr.msk.bf16.mxu0 %vm5037_vm0, %v5036_v1 }
  0x5a   : > { %4310 = vmatpush3.bf16.msra.mxu1 %v4775_v27  ;;  %v1418_v27 = vrot.slane %v5284_v41, 1 }
  0x5b   : > { %4311 = vmatprep.subr.bf16.mxu1 %v5036_v1 }
  0x5d   : > { %4256 = vmatmul.mubr.bf16.gmra.mxu1 %v5640_v29 }
  0x5e   : > { %4312 = vmatpush3.bf16.msra.mxu1 %v4777_v11  ;;  %4259 = vmatprep.mubr.msk.bf16.mxu1 %vm5037_vm0, %v5036_v1  ;;  %v1419_v11 = vrot.slane %v5294_v46, 1 }
  0x5f   : > { %4313 = vmatprep.subr.bf16.mxu1 %v5036_v1  ;;  %4216 = vmatmul.mubr.bf16.vlgmr.msra.gmra.mxu0 %v5656_v35 }
  0x60   : > { %4272 = vmatpush3.bf16.msra.mxu0 %v4772_v38  ;;  %4219 = vmatprep.mubr.msk.bf16.mxu0 %vm5037_vm0, %v5036_v1  ;;  %v4799_v38 = vld [vmem:[%s6682_s3 + $0x1d0] sm:$0xff]  }
  0x61   : > { %4273 = vmatprep.subr.bf16.mxu0 %v5036_v1 }
  0x62   : > { %4314 = vmatpush3.bf16.msra.mxu1 %v4779_v32  ;;  %v5794_v32 = vor.u32 %v2528_v36, %v2527_v54  ;;  %v4806_v54 = vld [vmem:[%s6682_s3 + $0x270] sm:$0xff]   ;;  %v1849_v36 = vrot.slane %v5570_v47, 6 }
  0x63   : > { %4315 = vmatprep.subr.bf16.mxu1 %v5036_v1 }
  0x64   : > { %4274 = vmatpush3.bf16.msra.mxu0 %v4774_v53  ;;  %v4801_v53 = vld [vmem:[%s6682_s3 + $0x1c8] sm:$0xff]   ;;  %v5823_v55 = vsel %vm2519_vm1, %v5794_v32, %v2533_v52 }
  0x65   : > { %4260 = vmatmul.mubr.bf16.gmra.mxu1 %v5665_v44  ;;  %4275 = vmatprep.subr.bf16.mxu0 %v5036_v1 }
  0x66   : > { %4263 = vmatprep.mubr.msk.bf16.mxu1 %vm5037_vm0, %v5036_v1  ;;  %4316 = vmatpush3.bf16.msra.mxu1 %v4781_v43  ;;  %v4792_v43 = vld [vmem:[%s6682_s3 + $0x1a8] sm:$0xff]  }
  0x67   : > { %4317 = vmatprep.subr.bf16.mxu1 %v5036_v1  ;;  %4220 = vmatmul.mubr.bf16.gmra.mxu0 %v5687_v61 }
  0x68   : > { %4276 = vmatpush3.bf16.msra.mxu0 %v4776_v62  ;;  %4223 = vmatprep.mubr.msk.bf16.mxu0 %vm5037_vm0, %v5036_v1  ;;  %v2535_v62 = vrot.slane %v1170_v58, 2  ;;  %v4798_v58 = vld [vmem:[%s6682_s3 + $0x190] sm:$0xff]  }
  0x69   : > { %4277 = vmatprep.subr.bf16.mxu0 %v5036_v1 }
  0x6a   : > { %4318 = vmatpush3.bf16.msra.mxu1 %v4783_v57  ;;  %v4803_v57 = vld [vmem:[%s6682_s3 + $0x1c0] sm:$0xff]  }
  0x6b   : > { %4319 = vmatprep.subr.bf16.mxu1 %v5036_v1 }
  0x6c   : > { %4278 = vmatpush3.bf16.msra.mxu0 %v4778_v6  ;;  %v1842_v6 = vrot.slane %v5284_v41, 6  ;;  %v1427_v41 = vrot.slane %v5609_v15, 1 }
  0x6d   : > { %4264 = vmatmul.mubr.bf16.gmra.mxu1 %v5697_v0  ;;  %4279 = vmatprep.subr.bf16.mxu0 %v5036_v1 }
  0x6e   : > { %4267 = vmatprep.mubr.msk.bf16.mxu1 %vm5037_vm0, %v5036_v1  ;;  %4320 = vmatpush3.bf16.msra.mxu1 %v4785_v63  ;;  %v2536_v63 = vrot.slane %v5621_v8, 3  ;;  %v1425_v8 = vrot.slane %v5570_v47, 1  ;;  %v5873_v14 = vsel %vm1841_vm10, %v1842_v6, %v1843_v7  ;;  %v4835_v6 = vld [vmem:[%s6682_s3 + $0x2c0] sm:$0xff]  }
  0x6f   : > { %4321 = vmatprep.subr.bf16.mxu1 %v5036_v1  ;;  %4224 = vmatmul.mubr.bf16.gmra.mxu0 %v5719_v3 }
  0x70   : > { %4280 = vmatpush3.bf16.msra.mxu0 %v4780_v13  ;;  %4227 = vmatprep.mubr.msk.bf16.mxu0 %vm5037_vm0, %v5036_v1  ;;  %v5847_v4 = vor.u32 %v2536_v63, %v2535_v62  ;;  %v4800_v13 = vld [vmem:[%s6682_s3 + $0x188] sm:$0xff]   ;;  %v1428_v20 = vsel %vm1417_vm11, %v1425_v8, %v1427_v41  ;;  %v4820_v63 = vld [vmem:[%s6682_s3 + $0x2b8] sm:$0xff]   ;;  %v4830_v41 = vld [vmem:[%s6682_s3 + $0x290] sm:$0xff]  }
  0x71   : > { %4281 = vmatprep.subr.bf16.mxu0 %v5036_v1  ;;  %v4825_v62 = vld [vmem:[%s6682_s3 + $0x2e8] sm:$0xff]  }
  0x72   : > { %4322 = vmatpush3.bf16.msra.mxu1 %v4787_v9  ;;  %v5852_v33 = vsel %vm2519_vm1, %v2533_v52, %v5847_v4  ;;  %v1426_v9 = vsel %vm1417_vm11, %v1423_v2, %v1425_v8  ;;  %v4816_v52 = vld [vmem:[%s6682_s3 + $0x248] sm:$0xff]   ;;  %v4821_v2 = vld [vmem:[%s6682_s3 + $0x2f8] sm:$0xff]  }
  0x73   : > { %4379 = vmatprep.subr.bf16.mxu1 %v5036_v1  ;;  %v4824_v8 = vld [vmem:[%s6682_s3 + $0x2a8] sm:$0xff]  }
  0x74   : > { %4282 = vmatpush3.bf16.msra.mxu0 %v4782_v16  ;;  %v4802_v16 = vld [vmem:[%s6682_s3 + $0x180] sm:$0xff]  }
  0x75   : > { %4268 = vmatmul.mubr.bf16.gmra.mxu1 %v5726_v39  ;;  %4283 = vmatprep.subr.bf16.mxu0 %v5036_v1 }
  0x76   : > { %4323 = vmatprep.mubr.msk.bf16.mxu1 %vm5037_vm0, %v5036_v1 }
  0x77   : > { %4228 = vmatmul.mubr.bf16.gmra.mxu0 %v5741_v59 }
  0x78   : > { %4231 = vmatprep.mubr.msk.bf16.mxu0 %vm5037_vm0, %v5036_v1  ;;  %4284 = vmatpush3.bf16.msra.mxu0 %v4784_v40  ;;  %v1845_v40 = vrot.slane %v5359_v50, 6 }
  0x79   : > { %4285 = vmatprep.subr.bf16.mxu0 %v5036_v1 }
  0x7c   : > { %4286 = vmatpush3.bf16.msra.mxu0 %v4786_v60  ;;  %v5896_v60 = vsel %vm1841_vm10, %v1843_v7, %v1845_v40  ;;  %v4828_v7 = vld [vmem:[%s6682_s3 + $0x298] sm:$0xff]  }
  0x7d   : > { %4324 = vmatmul.mubr.bf16.vlgmr.msra.gmra.mxu1 %v5346_v12  ;;  %4343 = vmatprep.subr.bf16.mxu0 %v5036_v1  ;;  %v4793_v12 = vld [vmem:[%s6682_s3 + $0x1e8] sm:$0xff]  }
  0x7e   : > { %4380 = vmatpush3.bf16.msra.mxu1 %v4789_v19  ;;  %4327 = vmatprep.mubr.msk.bf16.mxu1 %vm5037_vm0, %v5036_v1  ;;  %v4807_v19 = vld [vmem:[%s6682_s3 + $0x230] sm:$0xff]  }
  0x7f   : > { %4381 = vmatprep.subr.bf16.mxu1 %v5036_v1  ;;  %4232 = vmatmul.mubr.bf16.gmra.mxu0 %v5766_v26 }
  0x80   : > { %4287 = vmatprep.mubr.msk.bf16.mxu0 %vm5037_vm0, %v5036_v1 }
  0x82   : > { %4382 = vmatpush3.bf16.msra.mxu1 %v4791_v21  ;;  %v4809_v21 = vld [vmem:[%s6682_s3 + $0x228] sm:$0xff]  }
  0x83   : > { %4383 = vmatprep.subr.bf16.mxu1 %v5036_v1 }
  0x85   : > { %4328 = vmatmul.mubr.bf16.gmra.mxu1 %v5410_v24  ;;  %v1420_v24 = vsel %vm1417_vm11, %v1418_v27, %v1419_v11  ;;  %v4811_v27 = vld [vmem:[%s6682_s3 + $0x220] sm:$0xff]  }
  0x86   : > { %4384 = vmatpush3.bf16.msra.mxu1 %v4793_v12  ;;  %4331 = vmatprep.mubr.msk.bf16.mxu1 %vm5037_vm0, %v5036_v1  ;;  %v1847_v12 = vrot.slane %v5518_v31, 6 }
  0x87   : > { %4385 = vmatprep.subr.bf16.mxu1 %v5036_v1  ;;  %4288 = vmatmul.mubr.bf16.vlgmr.msra.gmra.mxu0 %v1420_v24  ;;  %v4815_v24 = vld [vmem:[%s6682_s3 + $0x210] sm:$0xff]  }
  0x88   : > { %4344 = vmatpush3.bf16.msra.mxu0 %v4788_v23  ;;  %4291 = vmatprep.mubr.msk.bf16.mxu0 %vm5037_vm0, %v5036_v1  ;;  %v4813_v23 = vld [vmem:[%s6682_s3 + $0x218] sm:$0xff]  }
  0x89   : > { %4345 = vmatprep.subr.bf16.mxu0 %v5036_v1 }
  0x8a   : > { %4386 = vmatpush3.bf16.msra.mxu1 %v4795_v30  ;;  %v5916_v30 = vsel %vm1841_vm10, %v1845_v40, %v1847_v12 }
  0x8b   : > { %4387 = vmatprep.subr.bf16.mxu1 %v5036_v1 }
  0x8c   : > { %4346 = vmatpush3.bf16.msra.mxu0 %v4790_v10  ;;  %v5942_v10 = vsel %vm1841_vm10, %v1847_v12, %v1849_v36  ;;  %v4834_v12 = vld [vmem:[%s6682_s3 + $0x280] sm:$0xff]  }
  0x8d   : > { %4332 = vmatmul.mubr.bf16.gmra.mxu1 %v5563_v48  ;;  %v1422_v48 = vsel %vm1417_vm11, %v1419_v11, %v1421_v34  ;;  %4347 = vmatprep.subr.bf16.mxu0 %v5036_v1  ;;  %v4804_v11 = vld [vmem:[%s6682_s3 + $0x278] sm:$0xff]   ;;  %v4817_v34 = vld [vmem:[%s6682_s3 + $0x208] sm:$0xff]  }
  0x8e   : > { %4335 = vmatprep.mubr.msk.bf16.mxu1 %vm5037_vm0, %v5036_v1  ;;  %4388 = vmatpush3.bf16.msra.mxu1 %v4797_v51  ;;  %v4808_v51 = vld [vmem:[%s6682_s3 + $0x268] sm:$0xff]  }
  0x8f   : > { %4389 = vmatprep.subr.bf16.mxu1 %v5036_v1  ;;  %4292 = vmatmul.mubr.bf16.gmra.mxu0 %v1422_v48 }
  0x90   : > { %4348 = vmatpush3.bf16.msra.mxu0 %v4792_v43  ;;  %4295 = vmatprep.mubr.msk.bf16.mxu0 %vm5037_vm0, %v5036_v1  ;;  %v1851_v43 = vrot.slane %v5609_v15, 6 }
  0x91   : > { %4349 = vmatprep.subr.bf16.mxu0 %v5036_v1 }
  0x92   : > { %4390 = vmatpush3.bf16.msra.mxu1 %v4799_v38  ;;  %v4810_v38 = vld [vmem:[%s6682_s3 + $0x260] sm:$0xff]   ;;  %v5968_v48 = vsel %vm1841_vm10, %v1849_v36, %v1851_v43 }
  0x93   : > { %4391 = vmatprep.subr.bf16.mxu1 %v5036_v1 }
  0x94   : > { %4350 = vmatpush3.bf16.msra.mxu0 %v4794_v18  ;;  %v4818_v18 = vld [vmem:[%s6682_s3 + $0x240] sm:$0xff]  }
  0x95   : > { %4336 = vmatmul.mubr.bf16.gmra.mxu1 %v5601_v17  ;;  %v4796_v17 = vld [vmem:[%s6682_s3 + $0x198] sm:$0xff]   ;;  %4351 = vmatprep.subr.bf16.mxu0 %v5036_v1 }
  0x96   : > { %4339 = vmatprep.mubr.msk.bf16.mxu1 %vm5037_vm0, %v5036_v1  ;;  %4392 = vmatpush3.bf16.msra.mxu1 %v4801_v53  ;;  %v4814_v53 = vld [vmem:[%s6682_s3 + $0x250] sm:$0xff]  }
  0x97   : > { %4393 = vmatprep.subr.bf16.mxu1 %v5036_v1  ;;  %4296 = vmatmul.mubr.bf16.gmra.mxu0 %v1424_v37  ;;  %v4829_v37 = vld [vmem:[%s6682_s3 + $0x2d8] sm:$0xff]  }
  0x98   : > { %4352 = vmatpush3.bf16.msra.mxu0 %v4796_v17  ;;  %4299 = vmatprep.mubr.msk.bf16.mxu0 %vm5037_vm0, %v5036_v1  ;;  %v4831_v17 = vld [vmem:[%s6682_s3 + $0x2d0] sm:$0xff]  }
  0x99   : > { %4353 = vmatprep.subr.bf16.mxu0 %v5036_v1 }
  0x9a   : > { %4394 = vmatpush3.bf16.msra.mxu1 %v4803_v57  ;;  %v4823_v57 = vld [vmem:[%s6682_s3 + $0x2f0] sm:$0xff]  }
  0x9b   : > { %4451 = vmatprep.subr.bf16.mxu1 %v5036_v1 }
  0x9c   : > { %4354 = vmatpush3.bf16.msra.mxu0 %v4798_v58  ;;  %v4826_v58 = vld [vmem:[%s6682_s3 + $0x2a0] sm:$0xff]  }
  0x9d   : > { %4340 = vmatmul.mubr.bf16.gmra.mxu1 %v5632_v28  ;;  %4355 = vmatprep.subr.bf16.mxu0 %v5036_v1  ;;  %v4805_v28 = vld [vmem:[%s6682_s3 + $0x238] sm:$0xff]  }
  0x9e   : > { %4395 = vmatprep.mubr.msk.bf16.mxu1 %vm5037_vm0, %v5036_v1 }
  0x9f   : > { %4300 = vmatmul.mubr.bf16.gmra.mxu0 %v1426_v9  ;;  %v2521_v9 = vrot.slane %v5307_v56, 3 }
  0xa0   : > { %4303 = vmatprep.mubr.msk.bf16.mxu0 %vm5037_vm0, %v5036_v1  ;;  %4356 = vmatpush3.bf16.msra.mxu0 %v4800_v13  ;;  %v2523_v13 = vrot.slane %v5414_v45, 2  ;;  %v4832_v45 = vld [vmem:[%s6682_s3 + $0x288] sm:$0xff]  }
  0xa1   : > { %4357 = vmatprep.subr.bf16.mxu0 %v5036_v1 }
  0xa4   : > { %4358 = vmatpush3.bf16.msra.mxu0 %v4802_v16 }
  0xa5   : > { %4396 = vmatmul.mubr.bf16.vlgmr.msra.gmra.mxu1 %v5873_v14  ;;  %4415 = vmatprep.subr.bf16.mxu0 %v5036_v1 }
  0xa6   : > { %4452 = vmatpush3.bf16.msra.mxu1 %v4805_v28  ;;  %4399 = vmatprep.mubr.msk.bf16.mxu1 %vm5037_vm0, %v5036_v1  ;;  %v2524_v28 = vrot.slane %v5380_v22, 3 }
  0xa7   : > { %4453 = vmatprep.subr.bf16.mxu1 %v5036_v1  ;;  %4304 = vmatmul.mubr.bf16.gmra.mxu0 %v1428_v20 }
  0xa8   : > { %4359 = vmatprep.mubr.msk.bf16.mxu0 %vm5037_vm0, %v5036_v1  ;;  %v2525_v22 = vor.u32 %v2524_v28, %v2523_v13  ;;  %v5039_v28 = vmov 0  }
  0xaa   : > { %4454 = vmatpush3.bf16.msra.mxu1 %v4807_v19 }
  0xab   : > { %4455 = vmatprep.subr.bf16.mxu1 %v5036_v1 }
  0xad   : > { %4400 = vmatmul.mubr.bf16.gmra.mxu1 %v5896_v60 }
  0xae   : > { %4456 = vmatpush3.bf16.msra.mxu1 %v4809_v21  ;;  %4403 = vmatprep.mubr.msk.bf16.mxu1 %vm5037_vm0, %v5036_v1 }
  0xaf   : > { %4457 = vmatprep.subr.bf16.mxu1 %v5036_v1  ;;  %4360 = vmatmul.mubr.bf16.vlgmr.msra.gmra.mxu0 %v5612_v42 }
  0xb0   : > { %4416 = vmatpush3.bf16.msra.mxu0 %v4804_v11  ;;  %4363 = vmatprep.mubr.msk.bf16.mxu0 %vm5037_vm0, %v5036_v1 }
  0xb1   : > { %4417 = vmatprep.subr.bf16.mxu0 %v5036_v1 }
  0xb2   : > { %4458 = vmatpush3.bf16.msra.mxu1 %v4811_v27 }
  0xb3   : > { %4459 = vmatprep.subr.bf16.mxu1 %v5036_v1 }
  0xb4   : > { %4418 = vmatpush3.bf16.msra.mxu0 %v4806_v54 }
  0xb5   : > { %4404 = vmatmul.mubr.bf16.gmra.mxu1 %v5916_v30  ;;  %4419 = vmatprep.subr.bf16.mxu0 %v5036_v1 }
  0xb6   : > { %4407 = vmatprep.mubr.msk.bf16.mxu1 %vm5037_vm0, %v5036_v1  ;;  %4460 = vmatpush3.bf16.msra.mxu1 %v4813_v23  ;;  %v4839_v23 = vld [vmem:[%s6682_s3 + $0x330] sm:$0xff]  }
  0xb7   : > { %4461 = vmatprep.subr.bf16.mxu1 %v5036_v1  ;;  %4364 = vmatmul.mubr.bf16.gmra.mxu0 %v5640_v29 }
  0xb8   : > { %4420 = vmatpush3.bf16.msra.mxu0 %v4808_v51  ;;  %4367 = vmatprep.mubr.msk.bf16.mxu0 %vm5037_vm0, %v5036_v1 }
  0xb9   : > { %4421 = vmatprep.subr.bf16.mxu0 %v5036_v1 }
  0xba   : > { %4462 = vmatpush3.bf16.msra.mxu1 %v4815_v24 }
  0xbb   : > { %4463 = vmatprep.subr.bf16.mxu1 %v5036_v1 }
  0xbc   : > { %4422 = vmatpush3.bf16.msra.mxu0 %v4810_v38  ;;  %v4841_v38 = vld [vmem:[%s6682_s3 + $0x328] sm:$0xff]  }
  0xbd   : > { %4408 = vmatmul.mubr.bf16.gmra.mxu1 %v5942_v10  ;;  %4423 = vmatprep.subr.bf16.mxu0 %v5036_v1 }
  0xbe   : > { %4411 = vmatprep.mubr.msk.bf16.mxu1 %vm5037_vm0, %v5036_v1  ;;  %4464 = vmatpush3.bf16.msra.mxu1 %v4817_v34  ;;  %v6118_v34 = vsel %vm2519_vm1, %v2525_v22, %v5794_v32  ;;  %v2356_v32 = vrot.slane %v5359_v50, 2 }
  0xbf   : > { %4465 = vmatprep.subr.bf16.mxu1 %v5036_v1  ;;  %4368 = vmatmul.mubr.bf16.gmra.mxu0 %v5665_v44 }
  0xc0   : > { %4424 = vmatpush3.bf16.msra.mxu0 %v4812_v25  ;;  %4371 = vmatprep.mubr.msk.bf16.mxu0 %vm5037_vm0, %v5036_v1  ;;  %v2355_v25 = vrot.slane %v5294_v46, 2 }
  0xc1   : > { %4425 = vmatprep.subr.bf16.mxu0 %v5036_v1 }
  0xc2   : > { %4466 = vmatpush3.bf16.msra.mxu1 %v4819_v49 }
  0xc3   : > { %4523 = vmatprep.subr.bf16.mxu1 %v5036_v1 }
  0xc4   : > { %4426 = vmatpush3.bf16.msra.mxu0 %v4814_v53 }
  0xc5   : > { %4412 = vmatmul.mubr.bf16.gmra.mxu1 %v5968_v48  ;;  %4427 = vmatprep.subr.bf16.mxu0 %v5036_v1 }
  0xc6   : > { %4467 = vmatprep.mubr.msk.bf16.mxu1 %vm5037_vm0, %v5036_v1 }
  0xc7   : > { %4372 = vmatmul.mubr.bf16.gmra.mxu0 %v5697_v0 }
  0xc8   : > { %4375 = vmatprep.mubr.msk.bf16.mxu0 %vm5037_vm0, %v5036_v1  ;;  %4428 = vmatpush3.bf16.msra.mxu0 %v4816_v52 }
  0xc9   : > { %4429 = vmatprep.subr.bf16.mxu0 %v5036_v1 }
  0xcc   : > { %4430 = vmatpush3.bf16.msra.mxu0 %v4818_v18 }
  0xcd   : > { %4468 = vmatmul.mubr.bf16.vlgmr.msra.gmra.mxu1 %v5656_v35  ;;  %4487 = vmatprep.subr.bf16.mxu0 %v5036_v1  ;;  %v4827_v35 = vld [vmem:[%s6682_s3 + $0x2e0] sm:$0xff]  }
  0xce   : > { %4524 = vmatpush3.bf16.msra.mxu1 %v4821_v2  ;;  %4471 = vmatprep.mubr.msk.bf16.mxu1 %vm5037_vm0, %v5036_v1  ;;  %v4843_v2 = vld [vmem:[%s6682_s3 + $0x320] sm:$0xff]  }
  0xcf   : > { %4525 = vmatprep.subr.bf16.mxu1 %v5036_v1  ;;  %4376 = vmatmul.mubr.bf16.gmra.mxu0 %v5726_v39 }
  0xd0   : > { %4431 = vmatprep.mubr.msk.bf16.mxu0 %vm5037_vm0, %v5036_v1 }
  0xd2   : > { %4526 = vmatpush3.bf16.msra.mxu1 %v4823_v57 }
  0xd3   : > { %4527 = vmatprep.subr.bf16.mxu1 %v5036_v1 }
  0xd5   : > { %4472 = vmatmul.mubr.bf16.gmra.mxu1 %v5687_v61  ;;  %v4822_v61 = vld [vmem:[%s6682_s3 + $0x2b0] sm:$0xff]  }
  0xd6   : > { %4528 = vmatpush3.bf16.msra.mxu1 %v4825_v62  ;;  %4475 = vmatprep.mubr.msk.bf16.mxu1 %vm5037_vm0, %v5036_v1  ;;  %v2357_v62 = vsel %vm2354_vm12, %v2355_v25, %v2356_v32  ;;  %v4844_v25 = vld [vmem:[%s6682_s3 + $0x358] sm:$0xff]  }
  0xd7   : > { %4529 = vmatprep.subr.bf16.mxu1 %v5036_v1  ;;  %4432 = vmatmul.mubr.bf16.vlgmr.msra.gmra.mxu0 %v5612_v42 }
  0xd8   : > { %4488 = vmatpush3.bf16.msra.mxu0 %v4820_v63  ;;  %4435 = vmatprep.mubr.msk.bf16.mxu0 %vm5037_vm0, %v5036_v1 }
  0xd9   : > { %4489 = vmatprep.subr.bf16.mxu0 %v5036_v1 }
  0xda   : > { %4530 = vmatpush3.bf16.msra.mxu1 %v4827_v35  ;;  %v4836_v35 = vld [vmem:[%s6682_s3 + $0x378] sm:$0xff]  }
  0xdb   : > { %4531 = vmatprep.subr.bf16.mxu1 %v5036_v1 }
  0xdc   : > { %4490 = vmatpush3.bf16.msra.mxu0 %v4822_v61  ;;  %v4845_v61 = vld [vmem:[%s6682_s3 + $0x318] sm:$0xff]  }
  0xdd   : > { %4476 = vmatmul.mubr.bf16.gmra.mxu1 %v5719_v3  ;;  %4491 = vmatprep.subr.bf16.mxu0 %v5036_v1  ;;  %v4833_v3 = vld [vmem:[%s6682_s3 + $0x2c8] sm:$0xff]  }
  0xde   : > { %4479 = vmatprep.mubr.msk.bf16.mxu1 %vm5037_vm0, %v5036_v1  ;;  %4532 = vmatpush3.bf16.msra.mxu1 %v4829_v37 }
  0xdf   : > { %4533 = vmatprep.subr.bf16.mxu1 %v5036_v1  ;;  %4436 = vmatmul.mubr.bf16.gmra.mxu0 %v5640_v29 }
  0xe0   : > { %4492 = vmatpush3.bf16.msra.mxu0 %v4824_v8  ;;  %4439 = vmatprep.mubr.msk.bf16.mxu0 %vm5037_vm0, %v5036_v1  ;;  %v4838_v8 = vld [vmem:[%s6682_s3 + $0x370] sm:$0xff]  }
  0xe1   : > { %4493 = vmatprep.subr.bf16.mxu0 %v5036_v1 }
  0xe2   : > { %4534 = vmatpush3.bf16.msra.mxu1 %v4831_v17 }
  0xe3   : > { %4535 = vmatprep.subr.bf16.mxu1 %v5036_v1 }
  0xe4   : > { %4494 = vmatpush3.bf16.msra.mxu0 %v4826_v58 }
  0xe5   : > { %4480 = vmatmul.mubr.bf16.gmra.mxu1 %v5741_v59  ;;  %4495 = vmatprep.subr.bf16.mxu0 %v5036_v1  ;;  %v2520_v59 = vrot.slane %v5335_v5, 2 }
  0xe6   : > { %4483 = vmatprep.mubr.msk.bf16.mxu1 %vm5037_vm0, %v5036_v1  ;;  %4536 = vmatpush3.bf16.msra.mxu1 %v4833_v3  ;;  %v2358_v3 = vrot.slane %v5518_v31, 2 }
  0xe7   : > { %4537 = vmatprep.subr.bf16.mxu1 %v5036_v1  ;;  %4440 = vmatmul.mubr.bf16.gmra.mxu0 %v5665_v44  ;;  %v2522_v5 = vor.u32 %v2521_v9, %v2520_v59  ;;  %v4840_v9 = vld [vmem:[%s6682_s3 + $0x368] sm:$0xff]  }
  0xe8   : > { %4496 = vmatpush3.bf16.msra.mxu0 %v4828_v7  ;;  %4443 = vmatprep.mubr.msk.bf16.mxu0 %vm5037_vm0, %v5036_v1  ;;  %v2359_v59 = vsel %vm2354_vm12, %v2356_v32, %v2358_v3 }
  0xe9   : > { %4497 = vmatprep.subr.bf16.mxu0 %v5036_v1  ;;  %v6088_v20 = vsel %vm2519_vm1, %v2522_v5, %v2525_v22  ;;  %v4849_v5 = vld [vmem:[%s6682_s3 + $0x308] sm:$0xff]  }
  0xea   : > { %4538 = vmatpush3.bf16.msra.mxu1 %v4835_v6  ;;  %v4847_v6 = vld [vmem:[%s6682_s3 + $0x310] sm:$0xff]  }
  0xeb   : > { %4595 = vmatprep.subr.bf16.mxu1 %v5036_v1 }
  0xec   : > { %4498 = vmatpush3.bf16.msra.mxu0 %v4830_v41  ;;  %v2542_v41 = vrot.slane %v5039_v28, 2 }
  0xed   : > { %v6075_v16 = vpop.f32.mrf.mxu1  ;;  %4484 = vmatmul.mubr.bf16.gmra.mxu1 %v5766_v26  ;;  %4499 = vmatprep.subr.bf16.mxu0 %v5036_v1  ;;  %v4837_v26 = vld [vmem:[%s6682_s3 + $0x338] sm:$0xff]  }
  0xee   : > { %4539 = vmatprep.mubr.msk.bf16.mxu1 %vm5037_vm0, %v5036_v1 }
  0xef   : > { %v4181_v56 = vpop.f32.mrf.mxu1  ;;  %4444 = vmatmul.mubr.bf16.gmra.mxu0 %v5697_v0  ;;  %v6094_v21 = vpop.f32.mrf.mxu0 }
  0xf0   : > { %4447 = vmatprep.mubr.msk.bf16.mxu0 %vm5037_vm0, %v5036_v1  ;;  %4500 = vmatpush3.bf16.msra.mxu0 %v4832_v45  ;;  %v2545_v56 = vrot.slane %v5039_v28, 3 }
  0xf1   : > { %v6084_v40 = vpop.f32.mrf.mxu1  ;;  %v4145_v27 = vpop.f32.mrf.mxu0  ;;  %4501 = vmatprep.subr.bf16.mxu0 %v5036_v1 }
  0xf3   : > { %v4182_v19 = vpop.f32.mrf.mxu1  ;;  %v6110_v54 = vpop.f32.mrf.mxu0 }
  0xf4   : > { %4502 = vmatpush3.bf16.msra.mxu0 %v4834_v12  ;;  %v2360_v19 = vrot.slane %v5570_v47, 2 }
  0xf5   : > { %v6102_v11 = vpop.f32.mrf.mxu1  ;;  %4540 = vmatmul.mubr.bf16.vlgmr.msra.gmra.mxu1 %v6088_v20  ;;  %v4146_v24 = vpop.f32.mrf.mxu0  ;;  %4559 = vmatprep.subr.bf16.mxu0 %v5036_v1 }
  0xf6   : > { %4596 = vmatpush3.bf16.msra.mxu1 %v4837_v26  ;;  %4543 = vmatprep.mubr.msk.bf16.mxu1 %vm5037_vm0, %v5036_v1  ;;  %v4842_v26 = vld [vmem:[%s6682_s3 + $0x360] sm:$0xff]  }
  0xf7   : > { %v4185_v36 = vpop.f32.mrf.mxu1  ;;  %4597 = vmatprep.subr.bf16.mxu1 %v5036_v1  ;;  %4448 = vmatmul.mubr.bf16.gmra.mxu0 %v5726_v39  ;;  %v6124_v43 = vpop.f32.mrf.mxu0 }
  0xf8   : > { %4503 = vmatprep.mubr.msk.bf16.mxu0 %vm5037_vm0, %v5036_v1  ;;  %v4851_v36 = vld [vmem:[%s6682_s3 + $0x300] sm:$0xff]  }
  0xf9   : > { %v6114_v51 = vpop.f32.mrf.mxu1  ;;  %v4149_v53 = vpop.f32.mrf.mxu0 }
  0xfa   : > { %4598 = vmatpush3.bf16.msra.mxu1 %v4839_v23  ;;  %v2546_v23 = vor.u32 %v2545_v56, %v2542_v41  ;;  %v5040_v56 = vmov 0.0|0.0  }
  0xfb   : > { %v4186_v49 = vpop.f32.mrf.mxu1  ;;  %4599 = vmatprep.subr.bf16.mxu1 %v5036_v1  ;;  %v6139_v18 = vpop.f32.mrf.mxu0 }
  0xfc   : > { %v2361_v49 = vsel %vm2354_vm12, %v2358_v3, %v2360_v19 }
  0xfd   : > { %v6131_v52 = vpop.f32.mrf.mxu1  ;;  %4544 = vmatmul.mubr.bf16.gmra.mxu1 %v6118_v34  ;;  %v4150_v63 = vpop.f32.mrf.mxu0 }
  0xfe   : > { %4600 = vmatpush3.bf16.msra.mxu1 %v4841_v38  ;;  %4547 = vmatprep.mubr.msk.bf16.mxu1 %vm5037_vm0, %v5036_v1  ;;  %v4846_v63 = vld [vmem:[%s6682_s3 + $0x350] sm:$0xff]  }
  0xff   : > { %v4189_v57 = vpop.f32.mrf.mxu1  ;;  %4601 = vmatprep.subr.bf16.mxu1 %v5036_v1  ;;  %4504 = vmatmul.mubr.bf16.vlgmr.msra.gmra.mxu0 %v2357_v62 }
 0x100   : > { %4560 = vmatpush3.bf16.msra.mxu0 %v4836_v35  ;;  %4507 = vmatprep.mubr.msk.bf16.mxu0 %vm5037_vm0, %v5036_v1  ;;  %v2362_v35 = vrot.slane %v5609_v15, 2 }
 0x101   : > { %v6146_v37 = vpop.f32.mrf.mxu1  ;;  %4561 = vmatprep.subr.bf16.mxu0 %v5036_v1 }
 0x102   : > { %4602 = vmatpush3.bf16.msra.mxu1 %v4843_v2  ;;  %v6208_v2 = vsel %vm2519_vm1, %v5847_v4, %v2546_v23  ;;  %v2363_v3 = vsel %vm2354_vm12, %v2360_v19, %v2362_v35 }
 0x103   : > { %v4190_v17 = vpop.f32.mrf.mxu1  ;;  %4603 = vmatprep.subr.bf16.mxu1 %v5036_v1 }
 0x104   : > { %4562 = vmatpush3.bf16.msra.mxu0 %v4838_v8 }
 0x105   : > { %v6159_v58 = vpop.f32.mrf.mxu1  ;;  %4548 = vmatmul.mubr.bf16.gmra.mxu1 %v5823_v55  ;;  %4563 = vmatprep.subr.bf16.mxu0 %v5036_v1 }
 0x106   : > { %4551 = vmatprep.mubr.msk.bf16.mxu1 %vm5037_vm0, %v5036_v1  ;;  %4604 = vmatpush3.bf16.msra.mxu1 %v4845_v61 }
 0x107   : > { %v4193_v7 = vpop.f32.mrf.mxu1  ;;  %4605 = vmatprep.subr.bf16.mxu1 %v5036_v1  ;;  %v6178_v22 = vpop.f32.mrf.mxu0  ;;  %4508 = vmatmul.mubr.bf16.gmra.mxu0 %v2359_v59 }
 0x108   : > { %4564 = vmatpush3.bf16.msra.mxu0 %v4840_v9  ;;  %4511 = vmatprep.mubr.msk.bf16.mxu0 %vm5037_vm0, %v5036_v1  ;;  %v4853_v9 = vld [vmem:[%s6682_s3 + $0x3f8] sm:$0xff]  }
 0x109   : > { %v6173_v13 = vpop.f32.mrf.mxu1  ;;  %v4153_v12 = vpop.f32.mrf.mxu0  ;;  %4565 = vmatprep.subr.bf16.mxu0 %v5036_v1 }
 0x10a   : > { %4606 = vmatpush3.bf16.msra.mxu1 %v4847_v6  ;;  %v4848_v6 = vld [vmem:[%s6682_s3 + $0x348] sm:$0xff]   ;;  %v4855_v12 = vld [vmem:[%s6682_s3 + $0x3f0] sm:$0xff]  }
 0x10b   : > { %v4194_v45 = vpop.f32.mrf.mxu1  ;;  %4607 = vmatprep.subr.bf16.mxu1 %v5036_v1  ;;  %v6196_v24 = vpop.f32.mrf.mxu0 }
 0x10c   : > { %4566 = vmatpush3.bf16.msra.mxu0 %v4842_v26  ;;  %v4850_v45 = vld [vmem:[%s6682_s3 + $0x340] sm:$0xff]  }
 0x10d   : > { %v6188_v27 = vpop.f32.mrf.mxu1  ;;  %4552 = vmatmul.mubr.bf16.gmra.mxu1 %v5852_v33  ;;  %v4154_v32 = vpop.f32.mrf.mxu0  ;;  %4567 = vmatprep.subr.bf16.mxu0 %v5036_v1 }
 0x10e   : > { %4555 = vmatprep.mubr.msk.bf16.mxu1 %vm5037_vm0, %v5036_v1  ;;  %4608 = vmatpush3.bf16.msra.mxu1 %v4849_v5  ;;  %v2364_v5 = vrot.slane %v5040_v56, 2  ;;  %v4857_v32 = vld [vmem:[%s6682_s3 + $0x3e8] sm:$0xff]  }
 0x10f   : > { %v4197_v38 = vpop.f32.mrf.mxu1  ;;  %4609 = vmatprep.subr.bf16.mxu1 %v5036_v1  ;;  %v6210_v57 = vpop.f32.mrf.mxu0  ;;  %4512 = vmatmul.mubr.bf16.gmra.mxu0 %v2361_v49 }
 0x110   : > { %4568 = vmatpush3.bf16.msra.mxu0 %v4844_v25  ;;  %4515 = vmatprep.mubr.msk.bf16.mxu0 %vm5037_vm0, %v5036_v1  ;;  %v2365_v38 = vsel %vm2354_vm12, %v2362_v35, %v2364_v5  ;;  %v924_v25 = vadd.f32 %v6075_v16, %v6094_v21  ;;  %v927_v16 = vadd.f32 %v6084_v40, %v6110_v54 }
 0x111   : > { %v6204_v53 = vpop.f32.mrf.mxu1  ;;  %v4157_v61 = vpop.f32.mrf.mxu0  ;;  %4569 = vmatprep.subr.bf16.mxu0 %v5036_v1 }
 0x112   : > { %4610 = vmatpush3.bf16.msra.mxu1 %v4851_v36 }
 0x113   : > { %v4198_v62 = vpop.f32.mrf.mxu1  ;;  %4667 = vmatprep.subr.bf16.mxu1 %v5036_v1  ;;  %v6223_v17 = vpop.f32.mrf.mxu0 }
 0x114   : > { %4570 = vmatpush3.bf16.msra.mxu0 %v4846_v63 }
 0x115   : > { %v1263_v4 = vpop.f32.mrf.mxu1  ;;  %4556 = vmatmul.mubr.bf16.gmra.mxu1 %v6208_v2  ;;  %v4158_v7 = vpop.f32.mrf.mxu0  ;;  %4571 = vmatprep.subr.bf16.mxu0 %v5036_v1 }
 0x116   : > { %4611 = vmatprep.mubr.msk.bf16.mxu1 %vm5037_vm0, %v5036_v1 }
 0x117   : > { %v4253_v8 = vpop.f32.mrf.mxu1  ;;  %v6233_v28 = vpop.f32.mrf.mxu0  ;;  %4516 = vmatmul.mubr.bf16.gmra.mxu0 %v2363_v3  ;;  %v4859_v3 = vld [vmem:[%s6682_s3 + $0x3e0] sm:$0xff]  }
 0x118   : > { %4519 = vmatprep.mubr.msk.bf16.mxu0 %vm5037_vm0, %v5036_v1  ;;  %4572 = vmatpush3.bf16.msra.mxu0 %v4848_v6 }
 0x119   : > { %v1266_v59 = vpop.f32.mrf.mxu1  ;;  %v4161_v19 = vpop.f32.mrf.mxu0  ;;  %4573 = vmatprep.subr.bf16.mxu0 %v5036_v1 }
 0x11a   : > { %v4861_v19 = vld [vmem:[%s6682_s3 + $0x3d8] sm:$0xff]  }
 0x11b   : > { %v4254_v41 = vpop.f32.mrf.mxu1  ;;  %v6248_v23 = vpop.f32.mrf.mxu0 }
 0x11c   : > { %4574 = vmatpush3.bf16.msra.mxu0 %v4850_v45 }
 0x11d   : > { %v1271_v26 = vpop.f32.mrf.mxu1  ;;  %4612 = vmatmul.mubr.bf16.vlgmr.msra.gmra.mxu1 %v5612_v42  ;;  %v4162_v49 = vpop.f32.mrf.mxu0  ;;  %4631 = vmatprep.subr.bf16.mxu0 %v5036_v1 }
 0x11e   : > { %4668 = vmatpush3.bf16.msra.mxu1 %v4853_v9  ;;  %4615 = vmatprep.mubr.msk.bf16.mxu1 %vm5037_vm0, %v5036_v1 }
 0x11f   : > { %v4257_v36 = vpop.f32.mrf.mxu1  ;;  %4669 = vmatprep.subr.bf16.mxu1 %v5036_v1  ;;  %v1084_v62 = vpop.f32.mrf.mxu0  ;;  %4520 = vmatmul.mubr.bf16.gmra.mxu0 %v2365_v38 }
 0x120   : > { %v1123_v35 = vadd.f32 %v1084_v62, %v924_v25  ;;  %4575 = vmatprep.mubr.msk.bf16.mxu0 %vm5037_vm0, %v5036_v1  ;;  %v4863_v62 = vld [vmem:[%s6682_s3 + $0x3d0] sm:$0xff]  }
 0x121   : > { %v6253_v42 = vpop.f32.mrf.mxu1  ;;  %v4217_v61 = vpop.f32.mrf.mxu0 }
 0x122   : > { %4670 = vmatpush3.bf16.msra.mxu1 %v4855_v12  ;;  %v1302_v21 = vadd.f32 %v1263_v4, %v1123_v35  ;;  %v932_v4 = vadd.f32 %v6102_v11, %v6124_v43  ;;  %v4854_v11 = vld [vmem:[%s6682_s3 + $0x3b0] sm:$0xff]  }
 0x123   : > { %v4258_v63 = vpop.f32.mrf.mxu1  ;;  %4671 = vmatprep.subr.bf16.mxu1 %v5036_v1  ;;  %v1087_v6 = vpop.f32.mrf.mxu0 }
 0x124   : > { %v1312_v9 = vsub.f32 0.0, %v1302_v21  ;;  %v1124_v41 = vadd.f32 %v1087_v6, %v927_v16  ;;  %v940_v16 = vadd.f32 %v6131_v52, %v6178_v22  ;;  %v4865_v6 = vld [vmem:[%s6682_s3 + $0x3c8] sm:$0xff]   ;;  %v4858_v52 = vld [vmem:[%s6682_s3 + $0x3a0] sm:$0xff]  }
 0x125   : > { %v6263_v8 = vpop.f32.mrf.mxu1  ;;  %4616 = vmatmul.mubr.bf16.gmra.mxu1 %v5640_v29  ;;  %v4852_v29 = vld [vmem:[%s6682_s3 + $0x3b8] sm:$0xff]   ;;  %v4218_v40 = vpop.f32.mrf.mxu0 }
 0x126   : > { %4672 = vmatpush3.bf16.msra.mxu1 %v4857_v32  ;;  %4619 = vmatprep.mubr.msk.bf16.mxu1 %vm5037_vm0, %v5036_v1  ;;  %v1322_v5 = vmul.f32 1.442695, %v1312_v9  ;;  %v1303_v45 = vadd.f32 %v1266_v59, %v1124_v41 }
 0x127   : > { %v4261_v7 = vpop.f32.mrf.mxu1  ;;  %4673 = vmatprep.subr.bf16.mxu1 %v5036_v1  ;;  %v1092_v12 = vpop.f32.mrf.mxu0  ;;  %4576 = vmatmul.mubr.bf16.vlgmr.msra.gmra.mxu0 %v5873_v14  ;;  %v935_v14 = vadd.f32 %v6114_v51, %v6139_v18  ;;  %v4856_v51 = vld [vmem:[%s6682_s3 + $0x3a8] sm:$0xff]  }
 0x128   : > { %4868 = vpow2.f32 %v1322_v5  ;;  %v1313_v38 = vsub.f32 0.0, %v1303_v45  ;;  %v1125_v49 = vadd.f32 %v1092_v12, %v932_v4  ;;  %4632 = vmatpush3.bf16.msra.mxu0 %v4852_v29  ;;  %4579 = vmatprep.mubr.msk.bf16.mxu0 %vm5037_vm0, %v5036_v1  ;;  %v4867_v5 = vld [vmem:[%s6682_s3 + $0x3c0] sm:$0xff]  }
 0x129   : > { %v6277_v54 = vpop.f32.mrf.mxu1  ;;  %v4221_v43 = vpop.f32.mrf.mxu0  ;;  %4633 = vmatprep.subr.bf16.mxu0 %v5036_v1 }
 0x12a   : > { %4674 = vmatpush3.bf16.msra.mxu1 %v4859_v3  ;;  %v1324_v25 = vmul.f32 1.442695, %v1313_v38  ;;  %v1304_v32 = vadd.f32 %v1271_v26, %v1125_v49  ;;  %v948_v38 = vadd.f32 %v6159_v58, %v6210_v57  ;;  %v4862_v58 = vld [vmem:[%s6682_s3 + $0x390] sm:$0xff]  }
 0x12b   : > { %v4262_v36 = vpop.f32.mrf.mxu1  ;;  %4675 = vmatprep.subr.bf16.mxu1 %v5036_v1  ;;  %v1095_v63 = vpop.f32.mrf.mxu0 }
 0x12c   : > { %4870 = vpow2.f32 %v1324_v25  ;;  %v1314_v61 = vsub.f32 0.0, %v1304_v32  ;;  %4634 = vmatpush3.bf16.msra.mxu0 %v4854_v11 }
 0x12d   : > { %v6292_v59 = vpop.f32.mrf.mxu1  ;;  %4620 = vmatmul.mubr.bf16.gmra.mxu1 %v5665_v44  ;;  %v1126_v44 = vadd.f32 %v1095_v63, %v935_v14  ;;  %v4222_v18 = vpop.f32.mrf.mxu0  ;;  %4635 = vmatprep.subr.bf16.mxu0 %v5036_v1 }
 0x12e   : > { %4623 = vmatprep.mubr.msk.bf16.mxu1 %vm5037_vm0, %v5036_v1  ;;  %4676 = vmatpush3.bf16.msra.mxu1 %v4861_v19  ;;  %v1326_v21 = vmul.f32 1.442695, %v1314_v61  ;;  %v951_v61 = vadd.f32 %v6173_v13, %v6223_v17 }
 0x12f   : > { %v4265_v35 = vpop.f32.mrf.mxu1  ;;  %4677 = vmatprep.subr.bf16.mxu1 %v5036_v1  ;;  %v1305_v3 = vadd.f32 %v6253_v42, %v1126_v44  ;;  %v1100_v7 = vpop.f32.mrf.mxu0  ;;  %4580 = vmatmul.mubr.bf16.gmra.mxu0 %v5896_v60  ;;  %v943_v60 = vadd.f32 %v6146_v37, %v6196_v24  ;;  %v4860_v37 = vld [vmem:[%s6682_s3 + $0x398] sm:$0xff]  }
 0x130   : > { %4872 = vpow2.f32 %v1326_v21  ;;  %v1127_v29 = vadd.f32 %v1100_v7, %v940_v16  ;;  %4636 = vmatpush3.bf16.msra.mxu0 %v4856_v51  ;;  %4583 = vmatprep.mubr.msk.bf16.mxu0 %vm5037_vm0, %v5036_v1  ;;  %v3198_v35 = vrot.slane %v5359_v50, 3 }
 0x131   : > { %v6307_v26 = vpop.f32.mrf.mxu1  ;;  %v1315_v41 = vsub.f32 0.0, %v1305_v3  ;;  %v4225_v22 = vpop.f32.mrf.mxu0  ;;  %4637 = vmatprep.subr.bf16.mxu0 %v5036_v1 }
 0x132   : > { %4678 = vmatpush3.bf16.msra.mxu1 %v4863_v62  ;;  %v1306_v4 = vadd.f32 %v6263_v8, %v1127_v29 }
 0x133   : > { %v4266_v9 = vpop.f32.mrf.mxu1  ;;  %4679 = vmatprep.subr.bf16.mxu1 %v5036_v1  ;;  %v1328_v40 = vmul.f32 1.442695, %v1315_v41  ;;  %v1103_v45 = vpop.f32.mrf.mxu0 }
 0x134   : > { %v1128_v12 = vadd.f32 %v1103_v45, %v943_v60  ;;  %4638 = vmatpush3.bf16.msra.mxu0 %v4858_v52 }
 0x135   : > { %v6323_v42 = vpop.f32.mrf.mxu1  ;;  %4624 = vmatmul.mubr.bf16.gmra.mxu1 %v5697_v0  ;;  %4874 = vpow2.f32 %v1328_v40  ;;  %v1316_v0 = vsub.f32 0.0, %v1306_v4  ;;  %v4869_v24 = vpop.eup %4868  ;;  %4639 = vmatprep.subr.bf16.mxu0 %v5036_v1  ;;  %v959_v4 = vadd.f32 %v6204_v53, %v6248_v23 }
 0x136   : > { %4627 = vmatprep.mubr.msk.bf16.mxu1 %vm5037_vm0, %v5036_v1  ;;  %4680 = vmatpush3.bf16.msra.mxu1 %v4865_v6  ;;  %v4226_v8 = vpop.f32.mrf.mxu0  ;;  %v1342_v49 = vadd.f32 1.0, %v4869_v24  ;;  %v1307_v43 = vadd.f32 %v6277_v54, %v1128_v12  ;;  %v956_v6 = vadd.f32 %v6188_v27, %v6233_v28  ;;  %v4866_v27 = vld [vmem:[%s6682_s3 + $0x380] sm:$0xff]  }
 0x137   : > { %v4269_v19 = vpop.f32.mrf.mxu1  ;;  %4681 = vmatprep.subr.bf16.mxu1 %v5036_v1  ;;  %v1330_v11 = vmul.f32 1.442695, %v1316_v0  ;;  %4584 = vmatmul.mubr.bf16.gmra.mxu0 %v5916_v30  ;;  %v3197_v30 = vrot.slane %v5294_v46, 3  ;;  %v4864_v46 = vld [vmem:[%s6682_s3 + $0x388] sm:$0xff]  }
 0x138   : > { %v1108_v14 = vpop.f32.mrf.mxu0  ;;  %4876 = vrcp.f32 %v1342_v49  ;;  %v1317_v32 = vsub.f32 0.0, %v1307_v43  ;;  %4640 = vmatpush3.bf16.msra.mxu0 %v4860_v37  ;;  %4587 = vmatprep.mubr.msk.bf16.mxu0 %vm5037_vm0, %v5036_v1 }
 0x139   : > { %v6339_v36 = vpop.f32.mrf.mxu1  ;;  %v1129_v62 = vadd.f32 %v1108_v14, %v948_v38  ;;  %v4871_v57 = vpop.eup %4870  ;;  %4878 = vpow2.f32 %v1330_v11  ;;  %4641 = vmatprep.subr.bf16.mxu0 %v5036_v1 }
 0x13a   : > { %4682 = vmatpush3.bf16.msra.mxu1 %v4867_v5  ;;  %v4229_v63 = vpop.f32.mrf.mxu0  ;;  %v1343_v44 = vadd.f32 1.0, %v4871_v57  ;;  %v1332_v51 = vmul.f32 1.442695, %v1317_v32 }
 0x13b   : > { %v4270_v25 = vpop.f32.mrf.mxu1  ;;  %v1308_v18 = vadd.f32 %v6292_v59, %v1129_v62  ;;  %v3199_v59 = vsel %vm3196_vm13, %v3197_v30, %v3198_v35 }
 0x13c   : > { %v1111_v16 = vpop.f32.mrf.mxu0  ;;  %4880 = vrcp.f32 %v1343_v44  ;;  %4642 = vmatpush3.bf16.msra.mxu0 %v4862_v58 }
 0x13d   : > { %v6351_v54 = vpop.f32.mrf.mxu1  ;;  %4628 = vmatmul.mubr.bf16.gmra.mxu1 %v5726_v39  ;;  %v1318_v39 = vsub.f32 0.0, %v1308_v18  ;;  %v1130_v3 = vadd.f32 %v1111_v16, %v951_v61  ;;  %v4873_v50 = vpop.eup %4872  ;;  %4882 = vpow2.f32 %v1332_v51  ;;  %4643 = vmatprep.subr.bf16.mxu0 %v5036_v1 }
 0x13e   : > { %4683 = vmatprep.mubr.msk.bf16.mxu1 %vm5037_vm0, %v5036_v1  ;;  %v4230_v13 = vpop.f32.mrf.mxu0  ;;  %v1344_v7 = vadd.f32 1.0, %v4873_v50 }
 0x13f   : > { %v4325_v21 = vpop.f32.mrf.mxu1  ;;  %v1334_v9 = vmul.f32 1.442695, %v1318_v39  ;;  %v1309_v41 = vadd.f32 %v6307_v26, %v1130_v3  ;;  %4588 = vmatmul.mubr.bf16.gmra.mxu0 %v5942_v10  ;;  %v3200_v10 = vrot.slane %v5518_v31, 3 }
 0x140   : > { %v1116_v29 = vpop.f32.mrf.mxu0  ;;  %4884 = vrcp.f32 %v1344_v7  ;;  %4591 = vmatprep.mubr.msk.bf16.mxu0 %vm5037_vm0, %v5036_v1  ;;  %4644 = vmatpush3.bf16.msra.mxu0 %v4864_v46 }
 0x141   : > { %v6365_v17 = vpop.f32.mrf.mxu1  ;;  %v1319_v22 = vsub.f32 0.0, %v1309_v41  ;;  %v1131_v60 = vadd.f32 %v1116_v29, %v956_v6  ;;  %4886 = vpow2.f32 %v1334_v9  ;;  %4645 = vmatprep.subr.bf16.mxu0 %v5036_v1  ;;  %v3201_v49 = vsel %vm3196_vm13, %v3198_v35, %v3200_v10 }
 0x142   : > { %v4875_v28 = vpop.eup %4874  ;;  %v4233_v40 = vpop.f32.mrf.mxu0 }
 0x143   : > { %v4326_v52 = vpop.f32.mrf.mxu1  ;;  %v1345_v5 = vadd.f32 1.0, %v4875_v28  ;;  %v1336_v45 = vmul.f32 1.442695, %v1319_v22  ;;  %v1310_v19 = vadd.f32 %v6323_v42, %v1131_v60 }
 0x144   : > { %v1119_v0 = vpop.f32.mrf.mxu0  ;;  %4646 = vmatpush3.bf16.msra.mxu0 %v4866_v27 }
 0x145   : > { %v6379_v26 = vpop.f32.mrf.mxu1  ;;  %4684 = vmatmul.mubr.bf16.vlgmr.msra.gmra.mxu1 %v3199_v59  ;;  %4888 = vrcp.f32 %v1345_v5  ;;  %v1320_v31 = vsub.f32 0.0, %v1310_v19  ;;  %v1132_v37 = vadd.f32 %v1119_v0, %v959_v4  ;;  %v4877_v53 = vpop.eup %4876  ;;  %v3204_v59 = vrot.slane %v5609_v15, 3 }
 0x146   : > { %4687 = vmatprep.mubr.msk.bf16.mxu1 %vm5037_vm0, %v5036_v1  ;;  %4890 = vpow2.f32 %v1336_v45  ;;  %v4234_v23 = vpop.f32.mrf.mxu0  ;;  %v4879_v24 = vpop.eup %4878  ;;  %1373 = vst.msk [vmem:[%s6390_s10] sm:$0xff] %vm1372_vm15, %v4877_v53  ;;  %v3206_v45 = vrot.slane %v5040_v56, 3 }
 0x147   : > { %v4329_v12 = vpop.f32.mrf.mxu1  ;;  %v1338_v8 = vmul.f32 1.442695, %v1320_v31  ;;  %v1311_v38 = vadd.f32 %v6339_v36, %v1132_v37  ;;  %v1346_v11 = vadd.f32 1.0, %v4879_v24  ;;  %4592 = vmatmul.mubr.bf16.gmra.mxu0 %v5968_v48  ;;  %v3202_v48 = vrot.slane %v5570_v47, 3 }
 0x148   : > { %v6398_v43 = vpop.f32.mrf.mxu0  ;;  %4647 = vmatprep.mubr.msk.bf16.mxu0 %vm5037_vm0, %v5036_v1  ;;  %v3207_v37 = vsel %vm3196_vm13, %v3204_v59, %v3206_v45 }
 0x149   : > { %v6392_v42 = vpop.f32.mrf.mxu1  ;;  %4892 = vpow2.f32 %v1338_v8  ;;  %v1321_v25 = vsub.f32 0.0, %v1311_v38  ;;  %v4881_v32 = vpop.eup %4880  ;;  %v3203_v16 = vsel %vm3196_vm13, %v3200_v10, %v3202_v48  ;;  %v3205_v60 = vsel %vm3196_vm13, %v3202_v48, %v3204_v59 }
 0x14a   : > { %4894 = vrcp.f32 %v1346_v11  ;;  %v4289_v62 = vpop.f32.mrf.mxu0  ;;  %v4883_v36 = vpop.eup %4882  ;;  %1374 = vst.msk [vmem:[%s6390_s10 + $0x8] sm:$0xff] %vm1372_vm15, %v4881_v32 }
 0x14b   : > { %v4330_v14 = vpop.f32.mrf.mxu1  ;;  %v1340_v57 = vmul.f32 1.442695, %v1321_v25  ;;  %v1347_v63 = vadd.f32 1.0, %v4883_v36 }
 0x14c   : > { %v6410_v30 = vpop.f32.mrf.mxu0 }
 0x14d   : > { %v6403_v58 = vpop.f32.mrf.mxu1  ;;  %4688 = vmatmul.mubr.bf16.gmra.mxu1 %v3201_v49  ;;  %4896 = vpow2.f32 %v1340_v57  ;;  %v4885_v61 = vpop.eup %4884 }
 0x14e   : > { %4691 = vmatprep.mubr.msk.bf16.mxu1 %vm5037_vm0, %v5036_v1  ;;  %4898 = vrcp.f32 %v1347_v63  ;;  %v4290_v44 = vpop.f32.mrf.mxu0  ;;  %v4887_v18 = vpop.eup %4886  ;;  %1375 = vst.msk [vmem:[%s6390_s10 + $0x10] sm:$0xff] %vm1372_vm15, %v4885_v61 }
 0x14f   : > { %v4333_v35 = vpop.f32.mrf.mxu1  ;;  %v1348_v21 = vadd.f32 1.0, %v4887_v18  ;;  %4648 = vmatmul.mubr.bf16.vlgmr.msra.gmra.mxu0 %v6088_v20  ;;  %v1638_v44 = vadd.f32 %v6351_v54, %v6398_v43 }
 0x150   : > { %v6417_v39 = vpop.f32.mrf.mxu0  ;;  %4651 = vmatprep.mubr.msk.bf16.mxu0 %vm5037_vm0, %v5036_v1 }
 0x151   : > { %v6412_v51 = vpop.f32.mrf.mxu1  ;;  %4900 = vrcp.f32 %v1348_v21  ;;  %v1646_v54 = vadd.f32 %v6379_v26, %v6417_v39 }
 0x152   : > { %v4889_v3 = vpop.eup %4888  ;;  %v4293_v46 = vpop.f32.mrf.mxu0 }
 0x153   : > { %v4334_v47 = vpop.f32.mrf.mxu1  ;;  %v4891_v13 = vpop.eup %4890  ;;  %1376 = vst.msk [vmem:[%s6390_s10 + $0x18] sm:$0xff] %vm1372_vm15, %v4889_v3 }
 0x154   : > { %v1349_v20 = vadd.f32 1.0, %v4891_v13  ;;  %v6429_v6 = vpop.f32.mrf.mxu0  ;;  %v1641_v47 = vadd.f32 %v6365_v17, %v6410_v30 }
 0x155   : > { %v6422_v50 = vpop.f32.mrf.mxu1  ;;  %4692 = vmatmul.mubr.bf16.gmra.mxu1 %v3203_v16  ;;  %v1649_v17 = vadd.f32 %v6392_v42, %v6429_v6 }
 0x156   : > { %4695 = vmatprep.mubr.msk.bf16.mxu1 %vm5037_vm0, %v5036_v1  ;;  %v4893_v9 = vpop.eup %4892  ;;  %4902 = vrcp.f32 %v1349_v20  ;;  %v4294_v41 = vpop.f32.mrf.mxu0 }
 0x157   : > { %v4337_v7 = vpop.f32.mrf.mxu1  ;;  %v4895_v52 = vpop.eup %4894  ;;  %v1350_v22 = vadd.f32 1.0, %v4893_v9  ;;  %4652 = vmatmul.mubr.bf16.gmra.mxu0 %v6118_v34 }
 0x158   : > { %1377 = vst.msk [vmem:[%s6390_s10 + $0x20] sm:$0xff] %vm1372_vm15, %v4895_v52  ;;  %v6436_v27 = vpop.f32.mrf.mxu0  ;;  %4655 = vmatprep.mubr.msk.bf16.mxu0 %vm5037_vm0, %v5036_v1 }
 0x159   : > { %v6431_v29 = vpop.f32.mrf.mxu1  ;;  %4904 = vrcp.f32 %v1350_v22 }
 0x15a   : > { %v4897_v28 = vpop.eup %4896  ;;  %v4297_v40 = vpop.f32.mrf.mxu0 }
 0x15b   : > { %v4338_v15 = vpop.f32.mrf.mxu1  ;;  %v4899_v4 = vpop.eup %4898  ;;  %v1351_v5 = vadd.f32 1.0, %v4897_v28 }
 0x15c   : > { %1378 = vst.msk [vmem:[%s6390_s10 + $0x28] sm:$0xff] %vm1372_vm15, %v4899_v4  ;;  %v6448_v34 = vpop.f32.mrf.mxu0 }
 0x15d   : > { %v6441_v10 = vpop.f32.mrf.mxu1  ;;  %4696 = vmatmul.mubr.bf16.gmra.mxu1 %v3205_v60  ;;  %4906 = vrcp.f32 %v1351_v5 }
 0x15e   : > { %4699 = vmatprep.mubr.msk.bf16.mxu1 %vm5037_vm0, %v5036_v1  ;;  %v4298_v0 = vpop.f32.mrf.mxu0  ;;  %v4901_v31 = vpop.eup %4900 }
 0x15f   : > { %v4341_v19 = vpop.f32.mrf.mxu1  ;;  %1379 = vst.msk [vmem:[%s6390_s10 + $0x30] sm:$0xff] %vm1372_vm15, %v4901_v31  ;;  %4656 = vmatmul.mubr.bf16.gmra.mxu0 %v5823_v55  ;;  %v1654_v0 = vadd.f32 %v6403_v58, %v6436_v27 }
 0x160   : > { %v6455_v53 = vpop.f32.mrf.mxu0  ;;  %4659 = vmatprep.mubr.msk.bf16.mxu0 %vm5037_vm0, %v5036_v1 }
 0x161   : > { %v6450_v12 = vpop.f32.mrf.mxu1 }
 0x162   : > { %v4301_v23 = vpop.f32.mrf.mxu0 }
 0x163   : > { %v4342_v56 = vpop.f32.mrf.mxu1  ;;  %v4903_v8 = vpop.eup %4902 }
 0x164   : > { %1380 = vst.msk [vmem:[%s6390_s10 + $0x38] sm:$0xff] %vm1372_vm15, %v4903_v8  ;;  %v6462_v38 = vpop.f32.mrf.mxu0 }
 0x165   : > { %v1940_v24 = vpop.f32.mrf.mxu1  ;;  %4700 = vmatmul.mubr.bf16.gmra.mxu1 %v3207_v37 }
 0x166   : > { %v4905_v11 = vpop.eup %4904  ;;  %v4302_v14 = vpop.f32.mrf.mxu0 }
 0x167   : > { %v4397_v49 = vpop.f32.mrf.mxu1  ;;  %1381 = vst.msk [vmem:[%s6390_s10 + $0x40] sm:$0xff] %vm1372_vm15, %v4905_v11  ;;  %4660 = vmatmul.mubr.bf16.gmra.mxu0 %v5852_v33 }
 0x168   : > { %v6466_v55 = vpop.f32.mrf.mxu0  ;;  %4663 = vmatprep.mubr.msk.bf16.mxu0 %vm5037_vm0, %v5036_v1  ;;  %v1657_v49 = vadd.f32 %v6412_v51, %v6448_v34 }
 0x169   : > { %v1943_v25 = vpop.f32.mrf.mxu1 }
 0x16a   : > { %v4907_v62 = vpop.eup %4906  ;;  %v4305_v36 = vpop.f32.mrf.mxu0 }
 0x16b   : > { %v4398_v32 = vpop.f32.mrf.mxu1  ;;  %1382 = vst.msk [vmem:[%s6390_s10 + $0x48] sm:$0xff] %vm1372_vm15, %v4907_v62 }
 0x16c   : > { %v6473_v48 = vpop.f32.mrf.mxu0 }
 0x16d   : > { %v1948_v57 = vpop.f32.mrf.mxu1 }
 0x16e   : > { %v4306_v35 = vpop.f32.mrf.mxu0 }
 0x16f   : > { %v4401_v63 = vpop.f32.mrf.mxu1  ;;  %4664 = vmatmul.mubr.bf16.gmra.mxu0 %v6208_v2 }
 0x170   : > { %v1775_v18 = vpop.f32.mrf.mxu0  ;;  %v1662_v63 = vadd.f32 %v6422_v50, %v6455_v53 }
 0x171   : > { %v1951_v61 = vpop.f32.mrf.mxu1  ;;  %v1814_v16 = vadd.f32 %v1775_v18, %v1638_v44 }
 0x172   : > { %v4361_v21 = vpop.f32.mrf.mxu0 }
 0x173   : > { %v4402_v33 = vpop.f32.mrf.mxu1  ;;  %v1979_v3 = vadd.f32 %v1940_v24, %v1814_v16 }
 0x174   : > { %v1778_v46 = vpop.f32.mrf.mxu0 }
 0x175   : > { %v1956_v1 = vpop.f32.mrf.mxu1  ;;  %v1989_v59 = vsub.f32 0.0, %v1979_v3  ;;  %v1815_v20 = vadd.f32 %v1778_v46, %v1641_v47  ;;  %v1665_v47 = vadd.f32 %v6431_v29, %v6462_v38 }
 0x176   : > { %v4362_v7 = vpop.f32.mrf.mxu0 }
 0x177   : > { %v4405_v13 = vpop.f32.mrf.mxu1  ;;  %v1999_v43 = vmul.f32 1.442695, %v1989_v59  ;;  %v1980_v41 = vadd.f32 %v1943_v25, %v1815_v20 }
 0x178   : > { %v1783_v2 = vpop.f32.mrf.mxu0 }
 0x179   : > { %v1959_v9 = vpop.f32.mrf.mxu1  ;;  %4908 = vpow2.f32 %v1999_v43  ;;  %v1990_v22 = vsub.f32 0.0, %v1980_v41  ;;  %v1816_v60 = vadd.f32 %v1783_v2, %v1646_v54  ;;  %v1670_v43 = vadd.f32 %v6441_v10, %v6466_v55 }
 0x17a   : > { %v4365_v15 = vpop.f32.mrf.mxu0 }
 0x17b   : > { %v4406_v52 = vpop.f32.mrf.mxu1  ;;  %v2001_v30 = vmul.f32 1.442695, %v1990_v22  ;;  %v1981_v40 = vadd.f32 %v1948_v57, %v1816_v60 }
 0x17c   : > { %v1786_v4 = vpop.f32.mrf.mxu0 }
 0x17d   : > { %v1964_v28 = vpop.f32.mrf.mxu1  ;;  %4910 = vpow2.f32 %v2001_v30  ;;  %v1991_v45 = vsub.f32 0.0, %v1981_v40  ;;  %v1817_v19 = vadd.f32 %v1786_v4, %v1649_v17  ;;  %v1673_v30 = vadd.f32 %v6450_v12, %v6473_v48 }
 0x17e   : > { %v4366_v26 = vpop.f32.mrf.mxu0 }
 0x17f   : > { %v4409_v5 = vpop.f32.mrf.mxu1  ;;  %v2003_v31 = vmul.f32 1.442695, %v1991_v45  ;;  %v1982_v37 = vadd.f32 %v1951_v61, %v1817_v19 }
 0x180   : > { %v1791_v56 = vpop.f32.mrf.mxu0 }
 0x181   : > { %v1967_v39 = vpop.f32.mrf.mxu1  ;;  %4912 = vpow2.f32 %v2003_v31  ;;  %v1992_v24 = vsub.f32 0.0, %v1982_v37  ;;  %v1818_v8 = vadd.f32 %v1791_v56, %v1654_v0 }
 0x182   : > { %v4369_v42 = vpop.f32.mrf.mxu0 }
 0x183   : > { %v4410_v23 = vpop.f32.mrf.mxu1  ;;  %v2005_v11 = vmul.f32 1.442695, %v1992_v24  ;;  %v1983_v14 = vadd.f32 %v1956_v1, %v1818_v8 }
 0x184   : > { %v1794_v25 = vpop.f32.mrf.mxu0 }
 0x185   : > { %v1972_v6 = vpop.f32.mrf.mxu1  ;;  %4914 = vpow2.f32 %v2005_v11  ;;  %v1993_v62 = vsub.f32 0.0, %v1983_v14  ;;  %v1819_v36 = vadd.f32 %v1794_v25, %v1657_v49 }
 0x186   : > { %v4909_v58 = vpop.eup %4908  ;;  %v4370_v27 = vpop.f32.mrf.mxu0 }
 0x187   : > { %v4413_v32 = vpop.f32.mrf.mxu1  ;;  %v2019_v35 = vadd.f32 1.0, %v4909_v58  ;;  %v2007_v61 = vmul.f32 1.442695, %v1993_v62  ;;  %v1984_v44 = vadd.f32 %v1959_v9, %v1819_v36 }
 0x188   : > { %v1799_v18 = vpop.f32.mrf.mxu0 }
 0x189   : > { %v1975_v57 = vpop.f32.mrf.mxu1  ;;  %4916 = vrcp.f32 %v2019_v35  ;;  %v1994_v51 = vsub.f32 0.0, %v1984_v44  ;;  %v1820_v34 = vadd.f32 %v1799_v18, %v1662_v63 }
 0x18a   : > { %v4911_v16 = vpop.eup %4910  ;;  %4918 = vpow2.f32 %v2007_v61  ;;  %v4373_v21 = vpop.f32.mrf.mxu0 }
 0x18b   : > { %v4414_v33 = vpop.f32.mrf.mxu1  ;;  %v2020_v3 = vadd.f32 1.0, %v4911_v16  ;;  %v2009_v46 = vmul.f32 1.442695, %v1994_v51  ;;  %v1985_v13 = vadd.f32 %v1964_v28, %v1820_v34 }
 0x18c   : > { %v1802_v50 = vpop.f32.mrf.mxu0 }
 0x18d   : > { %v6490_v1 = vpop.f32.mrf.mxu1  ;;  %4920 = vrcp.f32 %v2020_v3  ;;  %v1995_v59 = vsub.f32 0.0, %v1985_v13  ;;  %v1821_v20 = vadd.f32 %v1802_v50, %v1665_v47 }
 0x18e   : > { %v4913_v7 = vpop.eup %4912  ;;  %4922 = vpow2.f32 %v2009_v46  ;;  %v4374_v9 = vpop.f32.mrf.mxu0 }
 0x18f   : > { %v4469_v53 = vpop.f32.mrf.mxu1  ;;  %v2021_v41 = vadd.f32 1.0, %v4913_v7  ;;  %v2011_v2 = vmul.f32 1.442695, %v1995_v59  ;;  %v1986_v52 = vadd.f32 %v1967_v39, %v1821_v20 }
 0x190   : > { %v1807_v29 = vpop.f32.mrf.mxu0 }
 0x191   : > { %v6494_v54 = vpop.f32.mrf.mxu1  ;;  %4924 = vrcp.f32 %v2021_v41  ;;  %v1996_v22 = vsub.f32 0.0, %v1986_v52  ;;  %v1822_v60 = vadd.f32 %v1807_v29, %v1670_v43 }
 0x192   : > { %v4915_v15 = vpop.eup %4914  ;;  %4926 = vpow2.f32 %v2011_v2  ;;  %v4377_v28 = vpop.f32.mrf.mxu0 }
 0x193   : > { %v4470_v38 = vpop.f32.mrf.mxu1  ;;  %v2022_v40 = vadd.f32 1.0, %v4915_v15  ;;  %v2013_v4 = vmul.f32 1.442695, %v1996_v22  ;;  %v1987_v10 = vadd.f32 %v1972_v6, %v1822_v60 }
 0x194   : > { %v1810_v55 = vpop.f32.mrf.mxu0 }
 0x195   : > { %v6498_v17 = vpop.f32.mrf.mxu1  ;;  %4928 = vrcp.f32 %v2022_v40  ;;  %v1997_v45 = vsub.f32 0.0, %v1987_v10  ;;  %v1823_v19 = vadd.f32 %v1810_v55, %v1673_v30 }
 0x196   : > { %v4917_v26 = vpop.eup %4916  ;;  %4930 = vpow2.f32 %v2013_v4  ;;  %v4378_v39 = vpop.f32.mrf.mxu0 }
 0x197   : > { %v4473_v5 = vpop.f32.mrf.mxu1  ;;  %v4919_v31 = vpop.eup %4918  ;;  %3670 = vst.msk [vmem:[%s6390_s10 + $0x50] sm:$0xff] %vm1372_vm15, %v4917_v26  ;;  %v2015_v37 = vmul.f32 1.442695, %v1997_v45  ;;  %v1988_v56 = vadd.f32 %v1975_v57, %v1823_v19 }
 0x198   : > { %v2023_v12 = vadd.f32 1.0, %v4919_v31  ;;  %v6506_v48 = vpop.f32.mrf.mxu0 }
 0x199   : > { %v6502_v0 = vpop.f32.mrf.mxu1  ;;  %4932 = vpow2.f32 %v2015_v37  ;;  %v1998_v24 = vsub.f32 0.0, %v1988_v56 }
 0x19a   : > { %v4921_v8 = vpop.eup %4920  ;;  %4934 = vrcp.f32 %v2023_v12  ;;  %v4433_v42 = vpop.f32.mrf.mxu0 }
 0x19b   : > { %v4474_v23 = vpop.f32.mrf.mxu1  ;;  %v4923_v49 = vpop.eup %4922  ;;  %3671 = vst.msk [vmem:[%s6390_s10 + $0x58] sm:$0xff] %vm1372_vm15, %v4921_v8  ;;  %v2017_v11 = vmul.f32 1.442695, %v1998_v24  ;;  %v2298_v24 = vadd.f32 %v6490_v1, %v6506_v48 }
 0x19c   : > { %v2024_v14 = vadd.f32 1.0, %v4923_v49  ;;  %v6512_v25 = vpop.f32.mrf.mxu0 }
 0x19d   : > { %v6508_v6 = vpop.f32.mrf.mxu1  ;;  %4936 = vpow2.f32 %v2017_v11 }
 0x19e   : > { %v4925_v62 = vpop.eup %4924  ;;  %4938 = vrcp.f32 %v2024_v14  ;;  %v4434_v36 = vpop.f32.mrf.mxu0 }
 0x19f   : > { %v4477_v32 = vpop.f32.mrf.mxu1  ;;  %v4927_v27 = vpop.eup %4926  ;;  %3672 = vst.msk [vmem:[%s6390_s10 + $0x60] sm:$0xff] %vm1372_vm15, %v4925_v62 }
 0x1a0   : > { %v2025_v57 = vadd.f32 1.0, %v4927_v27  ;;  %v6518_v63 = vpop.f32.mrf.mxu0  ;;  %v2301_v32 = vadd.f32 %v6494_v54, %v6512_v25 }
 0x1a1   : > { %v6514_v58 = vpop.f32.mrf.mxu1 }
 0x1a2   : > { %v4929_v61 = vpop.eup %4928  ;;  %4940 = vrcp.f32 %v2025_v57  ;;  %v4437_v44 = vpop.f32.mrf.mxu0 }
 0x1a3   : > { %v4478_v35 = vpop.f32.mrf.mxu1  ;;  %v4931_v33 = vpop.eup %4930  ;;  %3673 = vst.msk [vmem:[%s6390_s10 + $0x68] sm:$0xff] %vm1372_vm15, %v4929_v61 }
 0x1a4   : > { %v2026_v51 = vadd.f32 1.0, %v4931_v33  ;;  %v6524_v34 = vpop.f32.mrf.mxu0  ;;  %v2306_v33 = vadd.f32 %v6498_v17, %v6518_v63 }
 0x1a5   : > { %v6520_v18 = vpop.f32.mrf.mxu1  ;;  %v2309_v54 = vadd.f32 %v6502_v0, %v6524_v34 }
 0x1a6   : > { %v4933_v21 = vpop.eup %4932  ;;  %4942 = vrcp.f32 %v2026_v51  ;;  %v4438_v47 = vpop.f32.mrf.mxu0 }
 0x1a7   : > { %v4481_v16 = vpop.f32.mrf.mxu1  ;;  %v4935_v46 = vpop.eup %4934  ;;  %v2027_v13 = vadd.f32 1.0, %v4933_v21 }
 0x1a8   : > { %3674 = vst.msk [vmem:[%s6390_s10 + $0x70] sm:$0xff] %vm1372_vm15, %v4935_v46  ;;  %v6530_v50 = vpop.f32.mrf.mxu0 }
 0x1a9   : > { %v6526_v3 = vpop.f32.mrf.mxu1  ;;  %4944 = vrcp.f32 %v2027_v13 }
 0x1aa   : > { %v4937_v59 = vpop.eup %4936  ;;  %v4441_v20 = vpop.f32.mrf.mxu0 }
 0x1ab   : > { %v4482_v53 = vpop.f32.mrf.mxu1  ;;  %v4939_v9 = vpop.eup %4938  ;;  %v2028_v43 = vadd.f32 1.0, %v4937_v59 }
 0x1ac   : > { %3675 = vst.msk [vmem:[%s6390_s10 + $0x78] sm:$0xff] %vm1372_vm15, %v4939_v9  ;;  %v6536_v41 = vpop.f32.mrf.mxu0 }
 0x1ad   : > { %v6532_v7 = vpop.f32.mrf.mxu1  ;;  %4946 = vrcp.f32 %v2028_v43 }
 0x1ae   : > { %v4442_v52 = vpop.f32.mrf.mxu0 }
 0x1af   : > { %v4485_v2 = vpop.f32.mrf.mxu1  ;;  %v4941_v38 = vpop.eup %4940 }
 0x1b0   : > { %3676 = vst.msk [vmem:[%s6390_s10 + $0x80] sm:$0xff] %vm1372_vm15, %v4941_v38  ;;  %v6542_v22 = vpop.f32.mrf.mxu0  ;;  %v2314_v2 = vadd.f32 %v6508_v6, %v6530_v50 }
 0x1b1   : > { %v6538_v29 = vpop.f32.mrf.mxu1 }
 0x1b2   : > { %v4445_v15 = vpop.f32.mrf.mxu0 }
 0x1b3   : > { %v4486_v60 = vpop.f32.mrf.mxu1  ;;  %v4943_v30 = vpop.eup %4942 }
 0x1b4   : > { %3677 = vst.msk [vmem:[%s6390_s10 + $0x88] sm:$0xff] %vm1372_vm15, %v4943_v30  ;;  %v6546_v40 = vpop.f32.mrf.mxu0 }
 0x1b5   : > { %v2635_v28 = vpop.f32.mrf.mxu1 }
 0x1b6   : > { %v4945_v10 = vpop.eup %4944  ;;  %v4446_v55 = vpop.f32.mrf.mxu0 }
 0x1b7   : > { %v4541_v4 = vpop.f32.mrf.mxu1  ;;  %3678 = vst.msk [vmem:[%s6390_s10 + $0x90] sm:$0xff] %vm1372_vm15, %v4945_v10 }
 0x1b8   : > { %v6550_v45 = vpop.f32.mrf.mxu0  ;;  %v2317_v4 = vadd.f32 %v6514_v58, %v6536_v41 }
 0x1b9   : > { %v2638_v5 = vpop.f32.mrf.mxu1 }
 0x1ba   : > { %v4947_v26 = vpop.eup %4946  ;;  %v4449_v39 = vpop.f32.mrf.mxu0 }
 0x1bb   : > { %v4542_v19 = vpop.f32.mrf.mxu1  ;;  %3679 = vst.msk [vmem:[%s6390_s10 + $0x98] sm:$0xff] %vm1372_vm15, %v4947_v26 }
 0x1bc   : > { %v6554_v37 = vpop.f32.mrf.mxu0 }
 0x1bd   : > { %v2643_v31 = vpop.f32.mrf.mxu1 }
 0x1be   : > { %v4450_v12 = vpop.f32.mrf.mxu0 }
 0x1bf   : > { %v4545_v56 = vpop.f32.mrf.mxu1 }
 0x1c0   : > { %v2453_v8 = vpop.f32.mrf.mxu0  ;;  %v2322_v56 = vadd.f32 %v6520_v18, %v6542_v22 }
 0x1c1   : > { %v2646_v23 = vpop.f32.mrf.mxu1  ;;  %v2492_v49 = vadd.f32 %v2453_v8, %v2298_v24 }
 0x1c2   : > { %v4505_v11 = vpop.f32.mrf.mxu0 }
 0x1c3   : > { %v4546_v42 = vpop.f32.mrf.mxu1  ;;  %v2674_v62 = vadd.f32 %v2635_v28, %v2492_v49 }
 0x1c4   : > { %v2456_v36 = vpop.f32.mrf.mxu0 }
 0x1c5   : > { %v2651_v14 = vpop.f32.mrf.mxu1  ;;  %v2684_v57 = vsub.f32 0.0, %v2674_v62  ;;  %v2493_v35 = vadd.f32 %v2456_v36, %v2301_v32  ;;  %v2325_v32 = vadd.f32 %v6526_v3, %v6546_v40 }
 0x1c6   : > { %v4506_v61 = vpop.f32.mrf.mxu0 }
 0x1c7   : > { %v4549_v27 = vpop.f32.mrf.mxu1  ;;  %v2694_v51 = vmul.f32 1.442695, %v2684_v57  ;;  %v2675_v1 = vadd.f32 %v2638_v5, %v2493_v35 }
 0x1c8   : > { %v2461_v48 = vpop.f32.mrf.mxu0 }
 0x1c9   : > { %v2654_v44 = vpop.f32.mrf.mxu1  ;;  %4948 = vpow2.f32 %v2694_v51  ;;  %v2685_v21 = vsub.f32 0.0, %v2675_v1  ;;  %v2494_v47 = vadd.f32 %v2461_v48, %v2306_v33  ;;  %v2330_v51 = vadd.f32 %v6532_v7, %v6550_v45 }
 0x1ca   : > { %v4509_v46 = vpop.f32.mrf.mxu0 }
 0x1cb   : > { %v4550_v16 = vpop.f32.mrf.mxu1  ;;  %v2696_v25 = vmul.f32 1.442695, %v2685_v21  ;;  %v2676_v53 = vadd.f32 %v2643_v31, %v2494_v47 }
 0x1cc   : > { %v2464_v59 = vpop.f32.mrf.mxu0 }
 0x1cd   : > { %v2659_v13 = vpop.f32.mrf.mxu1  ;;  %4950 = vpow2.f32 %v2696_v25  ;;  %v2686_v9 = vsub.f32 0.0, %v2676_v53  ;;  %v2495_v43 = vadd.f32 %v2464_v59, %v2309_v54  ;;  %v2333_v25 = vadd.f32 %v6538_v29, %v6554_v37 }
 0x1ce   : > { %v4510_v17 = vpop.f32.mrf.mxu0 }
 0x1cf   : > { %v4553_v20 = vpop.f32.mrf.mxu1  ;;  %v2698_v52 = vmul.f32 1.442695, %v2686_v9  ;;  %v2677_v38 = vadd.f32 %v2646_v23, %v2495_v43 }
 0x1d0   : > { %v2469_v60 = vpop.f32.mrf.mxu0 }
 0x1d1   : > { %v2662_v63 = vpop.f32.mrf.mxu1  ;;  %4952 = vpow2.f32 %v2698_v52  ;;  %v2687_v28 = vsub.f32 0.0, %v2677_v38  ;;  %v2496_v30 = vadd.f32 %v2469_v60, %v2314_v2 }
 0x1d2   : > { %v4513_v0 = vpop.f32.mrf.mxu0 }
 0x1d3   : > { %v4554_v15 = vpop.f32.mrf.mxu1  ;;  %v2700_v10 = vmul.f32 1.442695, %v2687_v28  ;;  %v2678_v55 = vadd.f32 %v2651_v14, %v2496_v30 }
 0x1d4   : > { %v2472_v5 = vpop.f32.mrf.mxu0 }
 0x1d5   : > { %v2667_v34 = vpop.f32.mrf.mxu1  ;;  %4954 = vpow2.f32 %v2700_v10  ;;  %v2688_v26 = vsub.f32 0.0, %v2678_v55  ;;  %v2497_v39 = vadd.f32 %v2472_v5, %v2317_v4 }
 0x1d6   : > { %v4949_v6 = vpop.eup %4948  ;;  %v4514_v50 = vpop.f32.mrf.mxu0 }
 0x1d7   : > { %v4557_v19 = vpop.f32.mrf.mxu1  ;;  %v2714_v12 = vadd.f32 1.0, %v4949_v6  ;;  %v2702_v23 = vmul.f32 1.442695, %v2688_v26  ;;  %v2679_v24 = vadd.f32 %v2654_v44, %v2497_v39 }
 0x1d8   : > { %v2477_v8 = vpop.f32.mrf.mxu0 }
 0x1d9   : > { %v2670_v31 = vpop.f32.mrf.mxu1  ;;  %4956 = vrcp.f32 %v2714_v12  ;;  %v2689_v58 = vsub.f32 0.0, %v2679_v24  ;;  %v2498_v41 = vadd.f32 %v2477_v8, %v2322_v56 }
 0x1da   : > { %v4951_v49 = vpop.eup %4950  ;;  %4958 = vpow2.f32 %v2702_v23  ;;  %v4517_v11 = vpop.f32.mrf.mxu0 }
 0x1db   : > { %v4558_v42 = vpop.f32.mrf.mxu1  ;;  %v2715_v62 = vadd.f32 1.0, %v4951_v49  ;;  %v2704_v36 = vmul.f32 1.442695, %v2689_v58  ;;  %v2680_v27 = vadd.f32 %v2659_v13, %v2498_v41 }
 0x1dc   : > { %v2480_v18 = vpop.f32.mrf.mxu0 }
 0x1dd   : > { %v6570_v14 = vpop.f32.mrf.mxu1  ;;  %4960 = vrcp.f32 %v2715_v62  ;;  %v2690_v57 = vsub.f32 0.0, %v2680_v27  ;;  %v2499_v35 = vadd.f32 %v2480_v18, %v2325_v32 }
 0x1de   : > { %v4953_v61 = vpop.eup %4952  ;;  %4962 = vpow2.f32 %v2704_v36  ;;  %v4518_v44 = vpop.f32.mrf.mxu0 }
 0x1df   : > { %v4613_v22 = vpop.f32.mrf.mxu1  ;;  %v2716_v1 = vadd.f32 1.0, %v4953_v61  ;;  %v2706_v48 = vmul.f32 1.442695, %v2690_v57  ;;  %v2681_v16 = vadd.f32 %v2662_v63, %v2499_v35 }
 0x1e0   : > { %v2485_v3 = vpop.f32.mrf.mxu0 }
 0x1e1   : > { %v6574_v33 = vpop.f32.mrf.mxu1  ;;  %4964 = vrcp.f32 %v2716_v1  ;;  %v2691_v21 = vsub.f32 0.0, %v2681_v16  ;;  %v2500_v47 = vadd.f32 %v2485_v3, %v2330_v51 }
 0x1e2   : > { %v4955_v46 = vpop.eup %4954  ;;  %4966 = vpow2.f32 %v2706_v48  ;;  %v4521_v13 = vpop.f32.mrf.mxu0 }
 0x1e3   : > { %v4614_v40 = vpop.f32.mrf.mxu1  ;;  %v2717_v53 = vadd.f32 1.0, %v4955_v46  ;;  %v2708_v59 = vmul.f32 1.442695, %v2691_v21  ;;  %v2682_v7 = vadd.f32 %v2667_v34, %v2500_v47 }
 0x1e4   : > { %v2488_v45 = vpop.f32.mrf.mxu0 }
 0x1e5   : > { %v6578_v54 = vpop.f32.mrf.mxu1  ;;  %4968 = vrcp.f32 %v2717_v53  ;;  %v2692_v9 = vsub.f32 0.0, %v2682_v7  ;;  %v2501_v43 = vadd.f32 %v2488_v45, %v2333_v25 }
 0x1e6   : > { %v4957_v17 = vpop.eup %4956  ;;  %4970 = vpow2.f32 %v2708_v59  ;;  %v4522_v63 = vpop.f32.mrf.mxu0 }
 0x1e7   : > { %v4617_v20 = vpop.f32.mrf.mxu1  ;;  %v4959_v52 = vpop.eup %4958  ;;  %3776 = vst.msk [vmem:[%s6390_s10 + $0xa0] sm:$0xff] %vm1372_vm15, %v4957_v17  ;;  %v2710_v38 = vmul.f32 1.442695, %v2692_v9  ;;  %v2683_v60 = vadd.f32 %v2670_v31, %v2501_v43 }
 0x1e8   : > { %v2718_v29 = vadd.f32 1.0, %v4959_v52  ;;  %v6586_v37 = vpop.f32.mrf.mxu0 }
 0x1e9   : > { %v6582_v2 = vpop.f32.mrf.mxu1  ;;  %4972 = vpow2.f32 %v2710_v38  ;;  %v2693_v28 = vsub.f32 0.0, %v2683_v60 }
 0x1ea   : > { %v4961_v30 = vpop.eup %4960  ;;  %4974 = vrcp.f32 %v2718_v29  ;;  %v4577_v0 = vpop.f32.mrf.mxu0 }
 0x1eb   : > { %v4618_v15 = vpop.f32.mrf.mxu1  ;;  %v4963_v4 = vpop.eup %4962  ;;  %3777 = vst.msk [vmem:[%s6390_s10 + $0xa8] sm:$0xff] %vm1372_vm15, %v4961_v30  ;;  %v2712_v10 = vmul.f32 1.442695, %v2693_v28  ;;  %v2993_v28 = vadd.f32 %v6570_v14, %v6586_v37 }
 0x1ec   : > { %v2719_v55 = vadd.f32 1.0, %v4963_v4  ;;  %v6592_v5 = vpop.f32.mrf.mxu0 }
 0x1ed   : > { %v6588_v34 = vpop.f32.mrf.mxu1  ;;  %4976 = vpow2.f32 %v2712_v10 }
 0x1ee   : > { %v4965_v26 = vpop.eup %4964  ;;  %4978 = vrcp.f32 %v2719_v55  ;;  %v4578_v39 = vpop.f32.mrf.mxu0 }
 0x1ef   : > { %v4621_v19 = vpop.f32.mrf.mxu1  ;;  %v4967_v50 = vpop.eup %4966  ;;  %3778 = vst.msk [vmem:[%s6390_s10 + $0xb0] sm:$0xff] %vm1372_vm15, %v4965_v26 }
 0x1f0   : > { %v2720_v31 = vadd.f32 1.0, %v4967_v50  ;;  %v6598_v56 = vpop.f32.mrf.mxu0  ;;  %v2996_v19 = vadd.f32 %v6574_v33, %v6592_v5 }
 0x1f1   : > { %v6594_v6 = vpop.f32.mrf.mxu1 }
 0x1f2   : > { %v4969_v23 = vpop.eup %4968  ;;  %4980 = vrcp.f32 %v2720_v31  ;;  %v4581_v24 = vpop.f32.mrf.mxu0 }
 0x1f3   : > { %v4622_v12 = vpop.f32.mrf.mxu1  ;;  %v4971_v42 = vpop.eup %4970  ;;  %3779 = vst.msk [vmem:[%s6390_s10 + $0xb8] sm:$0xff] %vm1372_vm15, %v4969_v23 }
 0x1f4   : > { %v2721_v58 = vadd.f32 1.0, %v4971_v42  ;;  %v6604_v41 = vpop.f32.mrf.mxu0  ;;  %v3001_v42 = vadd.f32 %v6578_v54, %v6598_v56 }
 0x1f5   : > { %v6600_v8 = vpop.f32.mrf.mxu1  ;;  %v3004_v33 = vadd.f32 %v6582_v2, %v6604_v41 }
 0x1f6   : > { %v4973_v11 = vpop.eup %4972  ;;  %4982 = vrcp.f32 %v2721_v58  ;;  %v4582_v32 = vpop.f32.mrf.mxu0 }
 0x1f7   : > { %v4625_v49 = vpop.f32.mrf.mxu1  ;;  %v4975_v36 = vpop.eup %4974  ;;  %v2722_v27 = vadd.f32 1.0, %v4973_v11 }
 0x1f8   : > { %3780 = vst.msk [vmem:[%s6390_s10 + $0xc0] sm:$0xff] %vm1372_vm15, %v4975_v36  ;;  %v6610_v18 = vpop.f32.mrf.mxu0 }
 0x1f9   : > { %v6606_v62 = vpop.f32.mrf.mxu1  ;;  %4984 = vrcp.f32 %v2722_v27 }
 0x1fa   : > { %v4977_v57 = vpop.eup %4976  ;;  %v4585_v35 = vpop.f32.mrf.mxu0 }
 0x1fb   : > { %v4626_v22 = vpop.f32.mrf.mxu1  ;;  %v4979_v44 = vpop.eup %4978  ;;  %v2723_v51 = vadd.f32 1.0, %v4977_v57 }
 0x1fc   : > { %3781 = vst.msk [vmem:[%s6390_s10 + $0xc8] sm:$0xff] %vm1372_vm15, %v4979_v44  ;;  %v6616_v1 = vpop.f32.mrf.mxu0 }
 0x1fd   : > { %v6612_v61 = vpop.f32.mrf.mxu1  ;;  %4986 = vrcp.f32 %v2723_v51 }
 0x1fe   : > { %v4586_v16 = vpop.f32.mrf.mxu0 }
 0x1ff   : > { %v4629_v48 = vpop.f32.mrf.mxu1  ;;  %v4981_v40 = vpop.eup %4980 }
 0x200   : > { %3782 = vst.msk [vmem:[%s6390_s10 + $0xd0] sm:$0xff] %vm1372_vm15, %v4981_v40  ;;  %v6622_v21 = vpop.f32.mrf.mxu0  ;;  %v3009_v48 = vadd.f32 %v6588_v34, %v6610_v18 }
 0x201   : > { %v6618_v3 = vpop.f32.mrf.mxu1 }
 0x202   : > { %v4589_v46 = vpop.f32.mrf.mxu0 }
 0x203   : > { %v4630_v47 = vpop.f32.mrf.mxu1  ;;  %v4983_v25 = vpop.eup %4982 }
 0x204   : > { %3783 = vst.msk [vmem:[%s6390_s10 + $0xd8] sm:$0xff] %vm1372_vm15, %v4983_v25  ;;  %v6626_v53 = vpop.f32.mrf.mxu0 }
 0x205   : > { %v3295_v13 = vpop.f32.mrf.mxu1 }
 0x206   : > { %v4985_v7 = vpop.eup %4984  ;;  %v4590_v45 = vpop.f32.mrf.mxu0 }
 0x207   : > { %v4685_v59 = vpop.f32.mrf.mxu1  ;;  %3784 = vst.msk [vmem:[%s6390_s10 + $0xe0] sm:$0xff] %vm1372_vm15, %v4985_v7 }
 0x208   : > { %v6630_v9 = vpop.f32.mrf.mxu0  ;;  %v3012_v59 = vadd.f32 %v6594_v6, %v6616_v1 }
 0x209   : > { %v3298_v20 = vpop.f32.mrf.mxu1 }
 0x20a   : > { %v4987_v17 = vpop.eup %4986  ;;  %v4593_v63 = vpop.f32.mrf.mxu0 }
 0x20b   : > { %v4686_v43 = vpop.f32.mrf.mxu1  ;;  %3785 = vst.msk [vmem:[%s6390_s10 + $0xe8] sm:$0xff] %vm1372_vm15, %v4987_v17 }
 0x20c   : > { %v6634_v38 = vpop.f32.mrf.mxu0 }
 0x20d   : > { %v3303_v52 = vpop.f32.mrf.mxu1 }
 0x20e   : > { %v4594_v29 = vpop.f32.mrf.mxu0 }
 0x20f   : > { %v4689_v60 = vpop.f32.mrf.mxu1 }
 0x210   : > { %v3130_v30 = vpop.f32.mrf.mxu0  ;;  %v3017_v60 = vadd.f32 %v6600_v8, %v6622_v21 }
 0x211   : > { %v3306_v15 = vpop.f32.mrf.mxu1  ;;  %v3169_v4 = vadd.f32 %v3130_v30, %v2993_v28 }
 0x212   : > { %v4649_v10 = vpop.f32.mrf.mxu0 }
 0x213   : > { %v4690_v0 = vpop.f32.mrf.mxu1  ;;  %v3334_v26 = vadd.f32 %v3295_v13, %v3169_v4 }
 0x214   : > { %v3133_v39 = vpop.f32.mrf.mxu0 }
 0x215   : > { %v3311_v55 = vpop.f32.mrf.mxu1  ;;  %v3344_v31 = vsub.f32 0.0, %v3334_v26  ;;  %v3170_v12 = vadd.f32 %v3133_v39, %v2996_v19 }
 0x216   : > { %v4650_v23 = vpop.f32.mrf.mxu0 }
 0x217   : > { %v4693_v50 = vpop.f32.mrf.mxu1  ;;  %v3354_v58 = vmul.f32 1.442695, %v3344_v31  ;;  %v3335_v14 = vadd.f32 %v3298_v20, %v3170_v12  ;;  %v3025_v23 = vadd.f32 %v6612_v61, %v6630_v9 }
 0x218   : > { %v3138_v37 = vpop.f32.mrf.mxu0 }
 0x219   : > { %v3314_v24 = vpop.f32.mrf.mxu1  ;;  %4988 = vpow2.f32 %v3354_v58  ;;  %v3345_v11 = vsub.f32 0.0, %v3335_v14  ;;  %v3171_v32 = vadd.f32 %v3138_v37, %v3001_v42 }
 0x21a   : > { %v4653_v36 = vpop.f32.mrf.mxu0 }
 0x21b   : > { %v4694_v49 = vpop.f32.mrf.mxu1  ;;  %v3356_v5 = vmul.f32 1.442695, %v3345_v11  ;;  %v3336_v22 = vadd.f32 %v3303_v52, %v3171_v32  ;;  %v3028_v11 = vadd.f32 %v6618_v3, %v6634_v38 }
 0x21c   : > { %v3141_v57 = vpop.f32.mrf.mxu0 }
 0x21d   : > { %v3319_v27 = vpop.f32.mrf.mxu1  ;;  %4990 = vpow2.f32 %v3356_v5  ;;  %v3346_v44 = vsub.f32 0.0, %v3336_v22  ;;  %v3172_v51 = vadd.f32 %v3141_v57, %v3004_v33 }
 0x21e   : > { %v4654_v54 = vpop.f32.mrf.mxu0 }
 0x21f   : > { %v4697_v35 = vpop.f32.mrf.mxu1  ;;  %v3358_v16 = vmul.f32 1.442695, %v3346_v44  ;;  %v3337_v40 = vadd.f32 %v3306_v15, %v3172_v51 }
 0x220   : > { %v3146_v47 = vpop.f32.mrf.mxu0 }
 0x221   : > { %v3322_v56 = vpop.f32.mrf.mxu1  ;;  %4992 = vpow2.f32 %v3358_v16  ;;  %v3347_v13 = vsub.f32 0.0, %v3337_v40  ;;  %v3173_v25 = vadd.f32 %v3146_v47, %v3009_v48 }
 0x222   : > { %v4657_v2 = vpop.f32.mrf.mxu0 }
 0x223   : > { %v4698_v46 = vpop.f32.mrf.mxu1  ;;  %v3360_v7 = vmul.f32 1.442695, %v3347_v13  ;;  %v3338_v45 = vadd.f32 %v3311_v55, %v3173_v25  ;;  %v3020_v55 = vadd.f32 %v6606_v62, %v6626_v53 }
 0x224   : > { %v3149_v20 = vpop.f32.mrf.mxu0 }
 0x225   : > { %v3327_v41 = vpop.f32.mrf.mxu1  ;;  %4994 = vpow2.f32 %v3360_v7  ;;  %v3348_v17 = vsub.f32 0.0, %v3338_v45  ;;  %v3174_v63 = vadd.f32 %v3149_v20, %v3012_v59 }
 0x226   : > { %v4989_v34 = vpop.eup %4988  ;;  %v4658_v18 = vpop.f32.mrf.mxu0 }
 0x227   : > { %v4701_v43 = vpop.f32.mrf.mxu1  ;;  %v3374_v29 = vadd.f32 1.0, %v4989_v34  ;;  %v3362_v15 = vmul.f32 1.442695, %v3348_v17  ;;  %v3339_v28 = vadd.f32 %v3314_v24, %v3174_v63 }
 0x228   : > { %v3154_v30 = vpop.f32.mrf.mxu0 }
 0x229   : > { %v3330_v52 = vpop.f32.mrf.mxu1  ;;  %4996 = vrcp.f32 %v3374_v29  ;;  %v3349_v6 = vsub.f32 0.0, %v3339_v28  ;;  %v3175_v1 = vadd.f32 %v3154_v30, %v3017_v60 }
 0x22a   : > { %v4991_v4 = vpop.eup %4990  ;;  %4998 = vpow2.f32 %v3362_v15  ;;  %v4661_v10 = vpop.f32.mrf.mxu0 }
 0x22b   : > { %v4702_v0 = vpop.f32.mrf.mxu1  ;;  %v3375_v19 = vadd.f32 1.0, %v4991_v4  ;;  %v3364_v26 = vmul.f32 1.442695, %v3349_v6  ;;  %v3340_v39 = vadd.f32 %v3319_v27, %v3175_v1 }
 0x22c   : > { %v3157_v50 = vpop.f32.mrf.mxu0 }
 0x22d   : > { %5000 = vrcp.f32 %v3375_v19  ;;  %v3350_v8 = vsub.f32 0.0, %v3340_v39  ;;  %v3176_v21 = vadd.f32 %v3157_v50, %v3020_v55 }
 0x22e   : > { %v4993_v31 = vpop.eup %4992  ;;  %5002 = vpow2.f32 %v3364_v26  ;;  %v4662_v12 = vpop.f32.mrf.mxu0 }
 0x22f   : > { %v3376_v24 = vadd.f32 1.0, %v4993_v31  ;;  %v3366_v42 = vmul.f32 1.442695, %v3350_v8  ;;  %v3341_v58 = vadd.f32 %v3322_v56, %v3176_v21 }
 0x230   : > { %v3162_v14 = vpop.f32.mrf.mxu0 }
 0x231   : > { %5004 = vrcp.f32 %v3376_v24  ;;  %v3351_v37 = vsub.f32 0.0, %v3341_v58  ;;  %v3177_v62 = vadd.f32 %v3162_v14, %v3025_v23 }
 0x232   : > { %v4995_v53 = vpop.eup %4994  ;;  %5006 = vpow2.f32 %v3366_v42  ;;  %v4665_v49 = vpop.f32.mrf.mxu0 }
 0x233   : > { %v3377_v32 = vadd.f32 1.0, %v4995_v53  ;;  %v3368_v36 = vmul.f32 1.442695, %v3351_v37  ;;  %v3342_v27 = vadd.f32 %v3327_v41, %v3177_v62 }
 0x234   : > { %v3165_v33 = vpop.f32.mrf.mxu0 }
 0x235   : > { %5008 = vrcp.f32 %v3377_v32  ;;  %v3352_v61 = vsub.f32 0.0, %v3342_v27  ;;  %v3178_v9 = vadd.f32 %v3165_v33, %v3028_v11 }
 0x236   : > { %v4997_v5 = vpop.eup %4996  ;;  %5010 = vpow2.f32 %v3368_v36  ;;  %v4666_v22 = vpop.f32.mrf.mxu0 }
 0x237   : > { %v4999_v57 = vpop.eup %4998  ;;  %3882 = vst.msk [vmem:[%s6390_s10 + $0xf0] sm:$0xff] %vm1372_vm15, %v4997_v5  ;;  %v3370_v35 = vmul.f32 1.442695, %v3352_v61  ;;  %v3343_v44 = vadd.f32 %v3330_v52, %v3178_v9 }
 0x238   : > { %v3378_v51 = vadd.f32 1.0, %v4999_v57 }
 0x239   : > { %5012 = vpow2.f32 %v3370_v35  ;;  %v3353_v3 = vsub.f32 0.0, %v3343_v44 }
 0x23a   : > { %v5001_v38 = vpop.eup %5000  ;;  %5014 = vrcp.f32 %v3378_v51 }
 0x23b   : > { %v5003_v54 = vpop.eup %5002  ;;  %3883 = vst.msk [vmem:[%s6390_s10 + $0xf8] sm:$0xff] %vm1372_vm15, %v5001_v38  ;;  %v3372_v56 = vmul.f32 1.442695, %v3353_v3 }
 0x23c   : > { %v3379_v48 = vadd.f32 1.0, %v5003_v54 }
 0x23d   : > { %5016 = vpow2.f32 %v3372_v56 }
 0x23e   : > { %v5005_v16 = vpop.eup %5004  ;;  %5018 = vrcp.f32 %v3379_v48 }
 0x23f   : > { %v5007_v40 = vpop.eup %5006  ;;  %3884 = vst.msk [vmem:[%s6390_s10 + $0x100] sm:$0xff] %vm1372_vm15, %v5005_v16 }
 0x240   : > { %v3380_v47 = vadd.f32 1.0, %v5007_v40 }
 0x242   : > { %v5009_v46 = vpop.eup %5008  ;;  %5020 = vrcp.f32 %v3380_v47 }
 0x243   : > { %v5011_v13 = vpop.eup %5010  ;;  %3885 = vst.msk [vmem:[%s6390_s10 + $0x108] sm:$0xff] %vm1372_vm15, %v5009_v46 }
 0x244   : > { %v3381_v25 = vadd.f32 1.0, %v5011_v13 }
 0x246   : > { %v5013_v2 = vpop.eup %5012  ;;  %5022 = vrcp.f32 %v3381_v25 }
 0x247   : > { %v5015_v41 = vpop.eup %5014  ;;  %v3382_v59 = vadd.f32 1.0, %v5013_v2 }
 0x248   : > { %3886 = vst.msk [vmem:[%s6390_s10 + $0x110] sm:$0xff] %vm1372_vm15, %v5015_v41 }
 0x249   : > { %5024 = vrcp.f32 %v3382_v59 }
 0x24a   : > { %v5017_v7 = vpop.eup %5016 }
 0x24b   : > { %v5019_v45 = vpop.eup %5018  ;;  %v3383_v20 = vadd.f32 1.0, %v5017_v7 }
 0x24c   : > { %3887 = vst.msk [vmem:[%s6390_s10 + $0x118] sm:$0xff] %vm1372_vm15, %v5019_v45 }
 0x24d   : > { %5026 = vrcp.f32 %v3383_v20 }
 0x24f   : > { %v5021_v43 = vpop.eup %5020 }
 0x250   : > { %3888 = vst.msk [vmem:[%s6390_s10 + $0x120] sm:$0xff] %vm1372_vm15, %v5021_v43 }
 0x253   : > { %v5023_v17 = vpop.eup %5022 }
 0x254   : > { %3889 = vst.msk [vmem:[%s6390_s10 + $0x128] sm:$0xff] %vm1372_vm15, %v5023_v17 }
 0x256   : > { %v5025_v63 = vpop.eup %5024 }
 0x257   : > { %3890 = vst.msk [vmem:[%s6390_s10 + $0x130] sm:$0xff] %vm1372_vm15, %v5025_v63 }
 0x25a   : > { %v5027_v34 = vpop.eup %5026 }
 0x25b   : > { %3891 = vst.msk [vmem:[%s6390_s10 + $0x138] sm:$0xff] %vm1372_vm15, %v5027_v34 }
 0x25c PF: > { %s14_s15 = sadd.s32 1, %s5034_s15  }
 0x25d   : > { %p11_p4 = scmp.ge.s32.totalorder %s14_s15, 4  }
 0x25f   :  { %13 = sbr.rel (!%p11_p4) target bundleno = 1 (0x1), region = 84 }

</bundles_post_ra>
